<compile_context>
chip_gen: v7x
topology: tpu7x:2x2x1
jax: 0.10.0
libtpu: 0.0.40
codegen_flags: <defaults>
</compile_context>

<pallas_src>
import jax
import jax.numpy as jnp
from jax.experimental import pallas as pl
from jax.experimental.pallas import tpu as pltpu

IMAGES_PER_STEP = 64  # per-grid-step tile over the batch (multiple of 8)


def _round_up(n, m):
    return (n + m - 1) // m * m


# ----------------------------------------------------------------------------
# Fused LeNet kernel: conv1 + pool + conv2 + pool + fc stack, per batch tile.
#   x_ref  : (28, nb, 28)        bf16   (image row leading, batch in sublanes)
#   cw*    : (K, Win*Cin, Wo*Co) bf16   banded conv weights, [even|odd] columns
#   cb*    : (1, Wo*Co)          f32    lane-tiled biases
#   fw*/fb*: 128-padded, lane-dense FC weights/biases
#   o_ref  : (nb, 128)           f32    logits in lanes 0..9, zeros elsewhere
# ----------------------------------------------------------------------------
def _lenet_kernel(x_ref, cw1_ref, cb1_ref, cw2_ref, cb2_ref,
                  fw1_ref, fb1_ref, fw2_ref, fb2_ref, fw3_ref, fb3_ref, o_ref):
    nb = x_ref.shape[1]

    def sigmoid(z):
        # exp + reciprocal both run on the EUP slot (VALU stays free).
        return pl.reciprocal(1.0 + jnp.exp(-z), approx=True)

    def conv_sigmoid_pool(x, w_ref, b_ref):
        # x: (Hin, nb, Win*Cin) bf16.  Returns pooled (Ho//2, nb, (Wo//2)*Cout)
        # bf16 activation in natural (w, c) lane order.
        K, win_c, wo_c = w_ref.shape
        ho = x.shape[0] - K + 1
        # Conv as K banded matmuls batched over (output_row, image): M = ho*nb.
        # The leading-dim slice + tile-granularity collapse (nb % 8 == 0) is
        # layout-preserving, so each tap is a single big MXU matmul.
        acc = jnp.dot(x[0:ho].reshape(ho * nb, win_c), w_ref[0],
                      preferred_element_type=jnp.float32)
        for dh in range(1, K):
            acc = acc + jnp.dot(x[dh:dh + ho].reshape(ho * nb, win_c), w_ref[dh],
                                preferred_element_type=jnp.float32)
        y = sigmoid(acc + b_ref[...])                      # (ho*nb, wo_c) f32
        # Row pool: rows are output-row-major / image-minor, so consecutive
        # output rows are two tile-aligned sublane halves of a (2*nb)-row group.
        y = y.reshape(ho // 2, 2 * nb, wo_c)
        y = jnp.maximum(y[:, :nb, :], y[:, nb:, :])        # (ho//2, nb, wo_c)
        # Column pool: weight columns were pre-ordered [even ow | odd ow], so
        # this is a max of two contiguous lane halves.
        half = wo_c // 2
        y = jnp.maximum(y[:, :, :half], y[:, :, half:])    # (ho//2, nb, wo_c//2)
        return y.astype(jnp.bfloat16)

    x = x_ref[...]                                         # (28, nb, 28) bf16
    a1 = conv_sigmoid_pool(x, cw1_ref, cb1_ref)            # (12, nb, 192)
    a2 = conv_sigmoid_pool(a1, cw2_ref, cb2_ref)           # (4,  nb, 128)

    # Flatten to (nb, 512) in (h, w, c) feature order with a lane concat of the
    # four 128-wide pooled rows, then the fused FC stack (intermediates stay in
    # VMEM; hidden widths are zero-padded 120/84 -> 128 for lane-dense matmuls).
    flat = jnp.concatenate([a2[0], a2[1], a2[2], a2[3]], axis=1)   # (nb, 512)
    h = jnp.dot(flat, fw1_ref[...], preferred_element_type=jnp.float32)
    h = sigmoid(h + fb1_ref[...]).astype(jnp.bfloat16)
    h = jnp.dot(h, fw2_ref[...], preferred_element_type=jnp.float32)
    h = sigmoid(h + fb2_ref[...]).astype(jnp.bfloat16)
    out = jnp.dot(h, fw3_ref[...], preferred_element_type=jnp.float32) + fb3_ref[...]
    o_ref[...] = out.astype(o_ref.dtype)


# ----------------------------------------------------------------------------
# One-time parameter preparation (hoisted out of the forward pass).
# ----------------------------------------------------------------------------
def _banded_conv_weight(w_oikk, w_in):
    """PyTorch conv weight (O, I, K, K) -> banded matmul weights (K, w_in*I,
    Wo*O) such that conv(x) == sum_dh X[dh:dh+Ho, :] @ Wb[dh] for X laid out as
    (H, W*I) with lane order (w, ci).  Output columns are reordered into
    [even ow | odd ow] slabs so the in-kernel 2x2 column pool is a max of two
    contiguous lane halves."""
    O, I, K, _ = w_oikk.shape
    Wo = w_in - K + 1
    mats = []
    for dh in range(K):
        m = jnp.zeros((w_in * I, Wo * O), jnp.float32)
        for dw in range(K):
            band = jnp.eye(w_in, Wo, k=-dw, dtype=jnp.float32)  # [w,ow]=(w==ow+dw)
            m = m + jnp.kron(band, w_oikk[:, :, dh, dw].T.astype(jnp.float32))
        mats.append(m)
    wb = jnp.stack(mats)                                   # (K, w_in*I, Wo*O)
    wb = wb.reshape(K, w_in * I, Wo, O)
    wb = jnp.concatenate([wb[:, :, 0::2, :], wb[:, :, 1::2, :]], axis=2)
    return wb.reshape(K, w_in * I, Wo * O).astype(jnp.bfloat16)


def prepare_params(params):
    p = {}
    # conv1: 28x28x1 -> 24x24x16 -> pool -> 12x12x16
    p["cw1"] = _banded_conv_weight(params["conv1"]["w"], 28)          # (5, 28, 384)
    p["cb1"] = jnp.tile(params["conv1"]["b"], 24).reshape(1, -1).astype(jnp.float32)
    # conv2: 12x12x16 -> 8x8x32 -> pool -> 4x4x32
    p["cw2"] = _banded_conv_weight(params["conv2"]["w"], 12)          # (5, 192, 256)
    p["cb2"] = jnp.tile(params["conv2"]["b"], 8).reshape(1, -1).astype(jnp.float32)
    # fc1: permute input columns from PyTorch's (c, h, w) flatten to our (h, w, c),
    # then zero-pad the 120-wide output to 128 lanes.
    fw = params["fc1"]["w"].reshape(120, 32, 4, 4).transpose(0, 2, 3, 1)
    fw1 = fw.reshape(120, 512).T                                       # (512, 120)
    p["fw1"] = jnp.pad(fw1, ((0, 0), (0, 8))).astype(jnp.bfloat16)     # (512, 128)
    p["fb1"] = jnp.pad(params["fc1"]["b"], (0, 8)).reshape(1, -1).astype(jnp.float32)
    # fc2: pad K 120->128 (zero rows kill the sigmoid(0)=0.5 pad units) and N 84->128.
    p["fw2"] = jnp.pad(params["fc2"]["w"].T, ((0, 8), (0, 44))).astype(jnp.bfloat16)
    p["fb2"] = jnp.pad(params["fc2"]["b"], (0, 44)).reshape(1, -1).astype(jnp.float32)
    # fc3: pad K 84->128 and N 10->128 (logits live in lanes 0..9).
    p["fw3"] = jnp.pad(params["fc3"]["w"].T, ((0, 44), (0, 118))).astype(jnp.bfloat16)
    p["fb3"] = jnp.pad(params["fc3"]["b"], (0, 118)).reshape(1, -1).astype(jnp.float32)
    return p


# ----------------------------------------------------------------------------
# Full LeNet forward: one fused pallas_call, grid over the (padded) batch.
# ----------------------------------------------------------------------------
@jax.jit
def lenet_forward(x_nchw, prep):
    B = x_nchw.shape[0]
    nb = min(IMAGES_PER_STEP, _round_up(B, 8))   # images per grid step (mult. of 8)
    B_pad = _round_up(B, nb)                     # pad the batch, never shrink the tile

    x = x_nchw.reshape(B, 28, 28).astype(jnp.bfloat16)
    if B_pad != B:
        x = jnp.pad(x, ((0, B_pad - B), (0, 0), (0, 0)))
    # (image row, batch, width) layout: batched-M matmuls and tile-aligned pools.
    x = jnp.transpose(x, (1, 0, 2))              # (28, B_pad, 28), done by XLA

    out = pl.pallas_call(
        _lenet_kernel,
        out_shape=jax.ShapeDtypeStruct((B_pad, 128), jnp.float32),
        grid=(B_pad // nb,),
        in_specs=[
            pl.BlockSpec((28, nb, 28), lambda i: (0, i, 0)),     # input tile
            pl.BlockSpec((5, 28, 384), lambda i: (0, 0, 0)),     # conv1 w (resident)
            pl.BlockSpec((1, 384), lambda i: (0, 0)),            # conv1 b
            pl.BlockSpec((5, 192, 256), lambda i: (0, 0, 0)),    # conv2 w
            pl.BlockSpec((1, 256), lambda i: (0, 0)),            # conv2 b
            pl.BlockSpec((512, 128), lambda i: (0, 0)),          # fc1 w
            pl.BlockSpec((1, 128), lambda i: (0, 0)),            # fc1 b
            pl.BlockSpec((128, 128), lambda i: (0, 0)),          # fc2 w
            pl.BlockSpec((1, 128), lambda i: (0, 0)),            # fc2 b
            pl.BlockSpec((128, 128), lambda i: (0, 0)),          # fc3 w
            pl.BlockSpec((1, 128), lambda i: (0, 0)),            # fc3 b
        ],
        out_specs=pl.BlockSpec((nb, 128), lambda i: (i, 0)),
        compiler_params=pltpu.CompilerParams(
            dimension_semantics=("parallel",)),
    )(x, prep["cw1"], prep["cb1"], prep["cw2"], prep["cb2"],
      prep["fw1"], prep["fb1"], prep["fw2"], prep["fb2"],
      prep["fw3"], prep["fb3"])
    return out[:B, :10]


# ----------------------------------------------------------------------------
# Deterministic synthetic parameters (PyTorch-style uniform init) + f32 reference
# ----------------------------------------------------------------------------
def init_params(key):
    def conv(k, cin, cout, ks):
        k1, k2 = jax.random.split(k)
        bound = 1.0 / float(jnp.sqrt(cin * ks * ks))
        return dict(
            w=jax.random.uniform(k1, (cout, cin, ks, ks), jnp.float32, -bound, bound),
            b=jax.random.uniform(k2, (cout,), jnp.float32, -bound, bound))

    def linear(k, fin, fout):
        k1, k2 = jax.random.split(k)
        bound = 1.0 / float(jnp.sqrt(fin))
        return dict(
            w=jax.random.uniform(k1, (fout, fin), jnp.float32, -bound, bound),
            b=jax.random.uniform(k2, (fout,), jnp.float32, -bound, bound))

    ks = jax.random.split(key, 5)
    return dict(conv1=conv(ks[0], 1, 16, 5), conv2=conv(ks[1], 16, 32, 5),
                fc1=linear(ks[2], 512, 120), fc2=linear(ks[3], 120, 84),
                fc3=linear(ks[4], 84, 10))


def lenet_reference(x_nchw, params):
    """Pure-JAX f32 reference matching the PyTorch module."""
    x = x_nchw.astype(jnp.float32)

    def conv_block(x, p):
        y = jax.lax.conv_general_dilated(
            x, p["w"], window_strides=(1, 1), padding="VALID",
            dimension_numbers=("NCHW", "OIHW", "NCHW"))
        y = jax.nn.sigmoid(y + p["b"][None, :, None, None])
        return jax.lax.reduce_window(y, -jnp.inf, jax.lax.max,
                                     (1, 1, 2, 2), (1, 1, 2, 2), "VALID")

    x = conv_block(x, params["conv1"])
    x = conv_block(x, params["conv2"])
    x = x.reshape(x.shape[0], -1)
    x = jax.nn.sigmoid(x @ params["fc1"]["w"].T + params["fc1"]["b"])
    x = jax.nn.sigmoid(x @ params["fc2"]["w"].T + params["fc2"]["b"])
    return x @ params["fc3"]["w"].T + params["fc3"]["b"]


if __name__ == "__main__":
    key = jax.random.PRNGKey(0)
    k_x, k_p = jax.random.split(key)
    # LeNet's spatial arithmetic (32*4*4 flatten) requires 28x28 single-channel input.
    x = jax.random.normal(k_x, (2, 1, 28, 28), jnp.float32)
    params = init_params(k_p)

    prep = prepare_params(params)            # one-time weight prep (hoisted)
    out = jax.block_until_ready(lenet_forward(x, prep))

    assert out.shape == (2, 10), out.shape
    assert out.dtype == jnp.float32
    assert bool(jnp.all(jnp.isfinite(out)))

    # Numerical check vs the f32 reference (bf16 matmul operands -> small error).
    ref = lenet_reference(x, params)
    max_err = float(jnp.max(jnp.abs(out - ref)))
    assert max_err < 0.1, f"mismatch vs reference: {max_err}"
    print("KERNEL_OK")
</pallas_src>

<mosaic_0001>
module attributes {stable_mosaic.version = 11 : i64} {
  func.func @_lenet_kernel(%arg0: i32, %arg1: memref<28x8x28xbf16, #tpu.memory_space<vmem>>, %arg2: memref<5x28x384xbf16, #tpu.memory_space<vmem>>, %arg3: memref<1x384xf32, #tpu.memory_space<vmem>>, %arg4: memref<5x192x256xbf16, #tpu.memory_space<vmem>>, %arg5: memref<1x256xf32, #tpu.memory_space<vmem>>, %arg6: memref<512x128xbf16, #tpu.memory_space<vmem>>, %arg7: memref<1x128xf32, #tpu.memory_space<vmem>>, %arg8: memref<128x128xbf16, #tpu.memory_space<vmem>>, %arg9: memref<1x128xf32, #tpu.memory_space<vmem>>, %arg10: memref<128x128xbf16, #tpu.memory_space<vmem>>, %arg11: memref<1x128xf32, #tpu.memory_space<vmem>>, %arg12: memref<8x128xf32, #tpu.memory_space<vmem>>) attributes {dimension_semantics = [#tpu.dimension_semantics<parallel>], iteration_bounds = array<i64: 1>, scalar_prefetch = 0 : i64, scratch_operands = 0 : i64, tpu.core_type = #tpu.core_type<tc>, window_params = [{transform_indices = @transform_0, window_bounds = array<i64: 28, 8, 28>}, {pipeline_mode = #tpu.pipeline_mode<synchronous>, transform_indices = @transform_1, window_bounds = array<i64: 5, 28, 384>}, {pipeline_mode = #tpu.pipeline_mode<synchronous>, transform_indices = @transform_2, window_bounds = array<i64: 1, 384>}, {pipeline_mode = #tpu.pipeline_mode<synchronous>, transform_indices = @transform_3, window_bounds = array<i64: 5, 192, 256>}, {pipeline_mode = #tpu.pipeline_mode<synchronous>, transform_indices = @transform_4, window_bounds = array<i64: 1, 256>}, {pipeline_mode = #tpu.pipeline_mode<synchronous>, transform_indices = @transform_5, window_bounds = array<i64: 512, 128>}, {pipeline_mode = #tpu.pipeline_mode<synchronous>, transform_indices = @transform_6, window_bounds = array<i64: 1, 128>}, {pipeline_mode = #tpu.pipeline_mode<synchronous>, transform_indices = @transform_7, window_bounds = array<i64: 128, 128>}, {pipeline_mode = #tpu.pipeline_mode<synchronous>, transform_indices = @transform_8, window_bounds = array<i64: 1, 128>}, {pipeline_mode = #tpu.pipeline_mode<synchronous>, transform_indices = @transform_9, window_bounds = array<i64: 128, 128>}, {pipeline_mode = #tpu.pipeline_mode<synchronous>, transform_indices = @transform_10, window_bounds = array<i64: 1, 128>}, {transform_indices = @transform_11, window_bounds = array<i64: 8, 128>}]} {
    %c0 = arith.constant 0 : index
    %c0_0 = arith.constant 0 : index
    %c0_1 = arith.constant 0 : index
    %0 = vector.load %arg1[%c0, %c0_0, %c0_1] : memref<28x8x28xbf16, #tpu.memory_space<vmem>>, vector<28x8x28xbf16>
    %1 = vector.extract_strided_slice %0 {offsets = [0, 0, 0], sizes = [24, 8, 28], strides = [1, 1, 1]} : vector<28x8x28xbf16> to vector<24x8x28xbf16>
    %2 = vector.shape_cast %1 : vector<24x8x28xbf16> to vector<192x28xbf16>
    %c0_2 = arith.constant 0 : index
    %c0_3 = arith.constant 0 : index
    %c0_4 = arith.constant 0 : index
    %3 = vector.load %arg2[%c0_2, %c0_3, %c0_4] : memref<5x28x384xbf16, #tpu.memory_space<vmem>>, vector<1x28x384xbf16>
    %4 = vector.shape_cast %3 : vector<1x28x384xbf16> to vector<28x384xbf16>
    %cst = arith.constant dense<0.000000e+00> : vector<192x384xf32>
    %5 = tpu.matmul %2, %4, %cst {dimension_numbers = #tpu.dot_dimension_numbers<[1], [0], [0], [1], [0, 0, 1, 1], [], []>} : vector<192x28xbf16>, vector<28x384xbf16>, vector<192x384xf32> -> vector<192x384xf32>
    %6 = vector.extract_strided_slice %0 {offsets = [1, 0, 0], sizes = [24, 8, 28], strides = [1, 1, 1]} : vector<28x8x28xbf16> to vector<24x8x28xbf16>
    %7 = vector.shape_cast %6 : vector<24x8x28xbf16> to vector<192x28xbf16>
    %c1 = arith.constant 1 : index
    %c0_5 = arith.constant 0 : index
    %c0_6 = arith.constant 0 : index
    %8 = vector.load %arg2[%c1, %c0_5, %c0_6] : memref<5x28x384xbf16, #tpu.memory_space<vmem>>, vector<1x28x384xbf16>
    %9 = vector.shape_cast %8 : vector<1x28x384xbf16> to vector<28x384xbf16>
    %cst_7 = arith.constant dense<0.000000e+00> : vector<192x384xf32>
    %10 = tpu.matmul %7, %9, %cst_7 {dimension_numbers = #tpu.dot_dimension_numbers<[1], [0], [0], [1], [0, 0, 1, 1], [], []>} : vector<192x28xbf16>, vector<28x384xbf16>, vector<192x384xf32> -> vector<192x384xf32>
    %11 = arith.addf %5, %10 : vector<192x384xf32>
    %12 = vector.extract_strided_slice %0 {offsets = [2, 0, 0], sizes = [24, 8, 28], strides = [1, 1, 1]} : vector<28x8x28xbf16> to vector<24x8x28xbf16>
    %13 = vector.shape_cast %12 : vector<24x8x28xbf16> to vector<192x28xbf16>
    %c2 = arith.constant 2 : index
    %c0_8 = arith.constant 0 : index
    %c0_9 = arith.constant 0 : index
    %14 = vector.load %arg2[%c2, %c0_8, %c0_9] : memref<5x28x384xbf16, #tpu.memory_space<vmem>>, vector<1x28x384xbf16>
    %15 = vector.shape_cast %14 : vector<1x28x384xbf16> to vector<28x384xbf16>
    %cst_10 = arith.constant dense<0.000000e+00> : vector<192x384xf32>
    %16 = tpu.matmul %13, %15, %cst_10 {dimension_numbers = #tpu.dot_dimension_numbers<[1], [0], [0], [1], [0, 0, 1, 1], [], []>} : vector<192x28xbf16>, vector<28x384xbf16>, vector<192x384xf32> -> vector<192x384xf32>
    %17 = arith.addf %11, %16 : vector<192x384xf32>
    %18 = vector.extract_strided_slice %0 {offsets = [3, 0, 0], sizes = [24, 8, 28], strides = [1, 1, 1]} : vector<28x8x28xbf16> to vector<24x8x28xbf16>
    %19 = vector.shape_cast %18 : vector<24x8x28xbf16> to vector<192x28xbf16>
    %c3 = arith.constant 3 : index
    %c0_11 = arith.constant 0 : index
    %c0_12 = arith.constant 0 : index
    %20 = vector.load %arg2[%c3, %c0_11, %c0_12] : memref<5x28x384xbf16, #tpu.memory_space<vmem>>, vector<1x28x384xbf16>
    %21 = vector.shape_cast %20 : vector<1x28x384xbf16> to vector<28x384xbf16>
    %cst_13 = arith.constant dense<0.000000e+00> : vector<192x384xf32>
    %22 = tpu.matmul %19, %21, %cst_13 {dimension_numbers = #tpu.dot_dimension_numbers<[1], [0], [0], [1], [0, 0, 1, 1], [], []>} : vector<192x28xbf16>, vector<28x384xbf16>, vector<192x384xf32> -> vector<192x384xf32>
    %23 = arith.addf %17, %22 : vector<192x384xf32>
    %24 = vector.extract_strided_slice %0 {offsets = [4, 0, 0], sizes = [24, 8, 28], strides = [1, 1, 1]} : vector<28x8x28xbf16> to vector<24x8x28xbf16>
    %25 = vector.shape_cast %24 : vector<24x8x28xbf16> to vector<192x28xbf16>
    %c4 = arith.constant 4 : index
    %c0_14 = arith.constant 0 : index
    %c0_15 = arith.constant 0 : index
    %26 = vector.load %arg2[%c4, %c0_14, %c0_15] : memref<5x28x384xbf16, #tpu.memory_space<vmem>>, vector<1x28x384xbf16>
    %27 = vector.shape_cast %26 : vector<1x28x384xbf16> to vector<28x384xbf16>
    %cst_16 = arith.constant dense<0.000000e+00> : vector<192x384xf32>
    %28 = tpu.matmul %25, %27, %cst_16 {dimension_numbers = #tpu.dot_dimension_numbers<[1], [0], [0], [1], [0, 0, 1, 1], [], []>} : vector<192x28xbf16>, vector<28x384xbf16>, vector<192x384xf32> -> vector<192x384xf32>
    %29 = arith.addf %23, %28 : vector<192x384xf32>
    %c0_17 = arith.constant 0 : index
    %c0_18 = arith.constant 0 : index
    %30 = vector.load %arg3[%c0_17, %c0_18] : memref<1x384xf32, #tpu.memory_space<vmem>>, vector<1x384xf32>
    %31 = vector.broadcast %30 : vector<1x384xf32> to vector<192x384xf32>
    %32 = arith.addf %29, %31 : vector<192x384xf32>
    %cst_19 = arith.constant 0.000000e+00 : f32
    %33 = vector.broadcast %cst_19 : f32 to vector<192x384xf32>
    %34 = arith.subf %33, %32 : vector<192x384xf32>
    %35 = math.exp %34 : vector<192x384xf32>
    %cst_20 = arith.constant 1.000000e+00 : f32
    %36 = vector.broadcast %cst_20 : f32 to vector<192x384xf32>
    %37 = arith.addf %36, %35 : vector<192x384xf32>
    %38 = tpu.reciprocal %37 {approx = true} : vector<192x384xf32> -> vector<192x384xf32>
    %39 = vector.shape_cast %38 : vector<192x384xf32> to vector<12x16x384xf32>
    %40 = vector.extract_strided_slice %39 {offsets = [0, 0, 0], sizes = [12, 8, 384], strides = [1, 1, 1]} : vector<12x16x384xf32> to vector<12x8x384xf32>
    %41 = vector.extract_strided_slice %39 {offsets = [0, 8, 0], sizes = [12, 8, 384], strides = [1, 1, 1]} : vector<12x16x384xf32> to vector<12x8x384xf32>
    %42 = arith.maximumf %40, %41 : vector<12x8x384xf32>
    %43 = vector.extract_strided_slice %42 {offsets = [0, 0, 0], sizes = [12, 8, 192], strides = [1, 1, 1]} : vector<12x8x384xf32> to vector<12x8x192xf32>
    %44 = vector.extract_strided_slice %42 {offsets = [0, 0, 192], sizes = [12, 8, 192], strides = [1, 1, 1]} : vector<12x8x384xf32> to vector<12x8x192xf32>
    %45 = arith.maximumf %43, %44 : vector<12x8x192xf32>
    %46 = arith.truncf %45 : vector<12x8x192xf32> to vector<12x8x192xbf16>
    %47 = vector.extract_strided_slice %46 {offsets = [0, 0, 0], sizes = [8, 8, 192], strides = [1, 1, 1]} : vector<12x8x192xbf16> to vector<8x8x192xbf16>
    %48 = vector.shape_cast %47 : vector<8x8x192xbf16> to vector<64x192xbf16>
    %c0_21 = arith.constant 0 : index
    %c0_22 = arith.constant 0 : index
    %c0_23 = arith.constant 0 : index
    %49 = vector.load %arg4[%c0_21, %c0_22, %c0_23] : memref<5x192x256xbf16, #tpu.memory_space<vmem>>, vector<1x192x256xbf16>
    %50 = vector.shape_cast %49 : vector<1x192x256xbf16> to vector<192x256xbf16>
    %cst_24 = arith.constant dense<0.000000e+00> : vector<64x256xf32>
    %51 = tpu.matmul %48, %50, %cst_24 {dimension_numbers = #tpu.dot_dimension_numbers<[1], [0], [0], [1], [0, 0, 1, 1], [], []>} : vector<64x192xbf16>, vector<192x256xbf16>, vector<64x256xf32> -> vector<64x256xf32>
    %52 = vector.extract_strided_slice %46 {offsets = [1, 0, 0], sizes = [8, 8, 192], strides = [1, 1, 1]} : vector<12x8x192xbf16> to vector<8x8x192xbf16>
    %53 = vector.shape_cast %52 : vector<8x8x192xbf16> to vector<64x192xbf16>
    %c1_25 = arith.constant 1 : index
    %c0_26 = arith.constant 0 : index
    %c0_27 = arith.constant 0 : index
    %54 = vector.load %arg4[%c1_25, %c0_26, %c0_27] : memref<5x192x256xbf16, #tpu.memory_space<vmem>>, vector<1x192x256xbf16>
    %55 = vector.shape_cast %54 : vector<1x192x256xbf16> to vector<192x256xbf16>
    %cst_28 = arith.constant dense<0.000000e+00> : vector<64x256xf32>
    %56 = tpu.matmul %53, %55, %cst_28 {dimension_numbers = #tpu.dot_dimension_numbers<[1], [0], [0], [1], [0, 0, 1, 1], [], []>} : vector<64x192xbf16>, vector<192x256xbf16>, vector<64x256xf32> -> vector<64x256xf32>
    %57 = arith.addf %51, %56 : vector<64x256xf32>
    %58 = vector.extract_strided_slice %46 {offsets = [2, 0, 0], sizes = [8, 8, 192], strides = [1, 1, 1]} : vector<12x8x192xbf16> to vector<8x8x192xbf16>
    %59 = vector.shape_cast %58 : vector<8x8x192xbf16> to vector<64x192xbf16>
    %c2_29 = arith.constant 2 : index
    %c0_30 = arith.constant 0 : index
    %c0_31 = arith.constant 0 : index
    %60 = vector.load %arg4[%c2_29, %c0_30, %c0_31] : memref<5x192x256xbf16, #tpu.memory_space<vmem>>, vector<1x192x256xbf16>
    %61 = vector.shape_cast %60 : vector<1x192x256xbf16> to vector<192x256xbf16>
    %cst_32 = arith.constant dense<0.000000e+00> : vector<64x256xf32>
    %62 = tpu.matmul %59, %61, %cst_32 {dimension_numbers = #tpu.dot_dimension_numbers<[1], [0], [0], [1], [0, 0, 1, 1], [], []>} : vector<64x192xbf16>, vector<192x256xbf16>, vector<64x256xf32> -> vector<64x256xf32>
    %63 = arith.addf %57, %62 : vector<64x256xf32>
    %64 = vector.extract_strided_slice %46 {offsets = [3, 0, 0], sizes = [8, 8, 192], strides = [1, 1, 1]} : vector<12x8x192xbf16> to vector<8x8x192xbf16>
    %65 = vector.shape_cast %64 : vector<8x8x192xbf16> to vector<64x192xbf16>
    %c3_33 = arith.constant 3 : index
    %c0_34 = arith.constant 0 : index
    %c0_35 = arith.constant 0 : index
    %66 = vector.load %arg4[%c3_33, %c0_34, %c0_35] : memref<5x192x256xbf16, #tpu.memory_space<vmem>>, vector<1x192x256xbf16>
    %67 = vector.shape_cast %66 : vector<1x192x256xbf16> to vector<192x256xbf16>
    %cst_36 = arith.constant dense<0.000000e+00> : vector<64x256xf32>
    %68 = tpu.matmul %65, %67, %cst_36 {dimension_numbers = #tpu.dot_dimension_numbers<[1], [0], [0], [1], [0, 0, 1, 1], [], []>} : vector<64x192xbf16>, vector<192x256xbf16>, vector<64x256xf32> -> vector<64x256xf32>
    %69 = arith.addf %63, %68 : vector<64x256xf32>
    %70 = vector.extract_strided_slice %46 {offsets = [4, 0, 0], sizes = [8, 8, 192], strides = [1, 1, 1]} : vector<12x8x192xbf16> to vector<8x8x192xbf16>
    %71 = vector.shape_cast %70 : vector<8x8x192xbf16> to vector<64x192xbf16>
    %c4_37 = arith.constant 4 : index
    %c0_38 = arith.constant 0 : index
    %c0_39 = arith.constant 0 : index
    %72 = vector.load %arg4[%c4_37, %c0_38, %c0_39] : memref<5x192x256xbf16, #tpu.memory_space<vmem>>, vector<1x192x256xbf16>
    %73 = vector.shape_cast %72 : vector<1x192x256xbf16> to vector<192x256xbf16>
    %cst_40 = arith.constant dense<0.000000e+00> : vector<64x256xf32>
    %74 = tpu.matmul %71, %73, %cst_40 {dimension_numbers = #tpu.dot_dimension_numbers<[1], [0], [0], [1], [0, 0, 1, 1], [], []>} : vector<64x192xbf16>, vector<192x256xbf16>, vector<64x256xf32> -> vector<64x256xf32>
    %75 = arith.addf %69, %74 : vector<64x256xf32>
    %c0_41 = arith.constant 0 : index
    %c0_42 = arith.constant 0 : index
    %76 = vector.load %arg5[%c0_41, %c0_42] : memref<1x256xf32, #tpu.memory_space<vmem>>, vector<1x256xf32>
    %77 = vector.broadcast %76 : vector<1x256xf32> to vector<64x256xf32>
    %78 = arith.addf %75, %77 : vector<64x256xf32>
    %cst_43 = arith.constant 0.000000e+00 : f32
    %79 = vector.broadcast %cst_43 : f32 to vector<64x256xf32>
    %80 = arith.subf %79, %78 : vector<64x256xf32>
    %81 = math.exp %80 : vector<64x256xf32>
    %cst_44 = arith.constant 1.000000e+00 : f32
    %82 = vector.broadcast %cst_44 : f32 to vector<64x256xf32>
    %83 = arith.addf %82, %81 : vector<64x256xf32>
    %84 = tpu.reciprocal %83 {approx = true} : vector<64x256xf32> -> vector<64x256xf32>
    %85 = vector.shape_cast %84 : vector<64x256xf32> to vector<4x16x256xf32>
    %86 = vector.extract_strided_slice %85 {offsets = [0, 0, 0], sizes = [4, 8, 256], strides = [1, 1, 1]} : vector<4x16x256xf32> to vector<4x8x256xf32>
    %87 = vector.extract_strided_slice %85 {offsets = [0, 8, 0], sizes = [4, 8, 256], strides = [1, 1, 1]} : vector<4x16x256xf32> to vector<4x8x256xf32>
    %88 = arith.maximumf %86, %87 : vector<4x8x256xf32>
    %89 = vector.extract_strided_slice %88 {offsets = [0, 0, 0], sizes = [4, 8, 128], strides = [1, 1, 1]} : vector<4x8x256xf32> to vector<4x8x128xf32>
    %90 = vector.extract_strided_slice %88 {offsets = [0, 0, 128], sizes = [4, 8, 128], strides = [1, 1, 1]} : vector<4x8x256xf32> to vector<4x8x128xf32>
    %91 = arith.maximumf %89, %90 : vector<4x8x128xf32>
    %92 = arith.truncf %91 : vector<4x8x128xf32> to vector<4x8x128xbf16>
    %93 = vector.extract_strided_slice %92 {offsets = [0, 0, 0], sizes = [1, 8, 128], strides = [1, 1, 1]} : vector<4x8x128xbf16> to vector<1x8x128xbf16>
    %94 = vector.shape_cast %93 : vector<1x8x128xbf16> to vector<8x128xbf16>
    %95 = vector.extract_strided_slice %92 {offsets = [1, 0, 0], sizes = [1, 8, 128], strides = [1, 1, 1]} : vector<4x8x128xbf16> to vector<1x8x128xbf16>
    %96 = vector.shape_cast %95 : vector<1x8x128xbf16> to vector<8x128xbf16>
    %97 = vector.extract_strided_slice %92 {offsets = [2, 0, 0], sizes = [1, 8, 128], strides = [1, 1, 1]} : vector<4x8x128xbf16> to vector<1x8x128xbf16>
    %98 = vector.shape_cast %97 : vector<1x8x128xbf16> to vector<8x128xbf16>
    %99 = vector.extract_strided_slice %92 {offsets = [3, 0, 0], sizes = [1, 8, 128], strides = [1, 1, 1]} : vector<4x8x128xbf16> to vector<1x8x128xbf16>
    %100 = vector.shape_cast %99 : vector<1x8x128xbf16> to vector<8x128xbf16>
    %101 = tpu.concatenate %94, %96, %98, %100 in 1 : vector<8x128xbf16>, vector<8x128xbf16>, vector<8x128xbf16>, vector<8x128xbf16> -> vector<8x512xbf16>
    %c0_45 = arith.constant 0 : index
    %c0_46 = arith.constant 0 : index
    %102 = vector.load %arg6[%c0_45, %c0_46] : memref<512x128xbf16, #tpu.memory_space<vmem>>, vector<512x128xbf16>
    %cst_47 = arith.constant dense<0.000000e+00> : vector<8x128xf32>
    %103 = tpu.matmul %101, %102, %cst_47 {dimension_numbers = #tpu.dot_dimension_numbers<[1], [0], [0], [1], [0, 0, 1, 1], [], []>} : vector<8x512xbf16>, vector<512x128xbf16>, vector<8x128xf32> -> vector<8x128xf32>
    %c0_48 = arith.constant 0 : index
    %c0_49 = arith.constant 0 : index
    %104 = vector.load %arg7[%c0_48, %c0_49] : memref<1x128xf32, #tpu.memory_space<vmem>>, vector<1x128xf32>
    %105 = vector.broadcast %104 : vector<1x128xf32> to vector<8x128xf32>
    %106 = arith.addf %103, %105 : vector<8x128xf32>
    %cst_50 = arith.constant 0.000000e+00 : f32
    %107 = vector.broadcast %cst_50 : f32 to vector<8x128xf32>
    %108 = arith.subf %107, %106 : vector<8x128xf32>
    %109 = math.exp %108 : vector<8x128xf32>
    %cst_51 = arith.constant 1.000000e+00 : f32
    %110 = vector.broadcast %cst_51 : f32 to vector<8x128xf32>
    %111 = arith.addf %110, %109 : vector<8x128xf32>
    %112 = tpu.reciprocal %111 {approx = true} : vector<8x128xf32> -> vector<8x128xf32>
    %113 = arith.truncf %112 : vector<8x128xf32> to vector<8x128xbf16>
    %c0_52 = arith.constant 0 : index
    %c0_53 = arith.constant 0 : index
    %114 = vector.load %arg8[%c0_52, %c0_53] : memref<128x128xbf16, #tpu.memory_space<vmem>>, vector<128x128xbf16>
    %cst_54 = arith.constant dense<0.000000e+00> : vector<8x128xf32>
    %115 = tpu.matmul %113, %114, %cst_54 {dimension_numbers = #tpu.dot_dimension_numbers<[1], [0], [0], [1], [0, 0, 1, 1], [], []>} : vector<8x128xbf16>, vector<128x128xbf16>, vector<8x128xf32> -> vector<8x128xf32>
    %c0_55 = arith.constant 0 : index
    %c0_56 = arith.constant 0 : index
    %116 = vector.load %arg9[%c0_55, %c0_56] : memref<1x128xf32, #tpu.memory_space<vmem>>, vector<1x128xf32>
    %117 = vector.broadcast %116 : vector<1x128xf32> to vector<8x128xf32>
    %118 = arith.addf %115, %117 : vector<8x128xf32>
    %cst_57 = arith.constant 0.000000e+00 : f32
    %119 = vector.broadcast %cst_57 : f32 to vector<8x128xf32>
    %120 = arith.subf %119, %118 : vector<8x128xf32>
    %121 = math.exp %120 : vector<8x128xf32>
    %cst_58 = arith.constant 1.000000e+00 : f32
    %122 = vector.broadcast %cst_58 : f32 to vector<8x128xf32>
    %123 = arith.addf %122, %121 : vector<8x128xf32>
    %124 = tpu.reciprocal %123 {approx = true} : vector<8x128xf32> -> vector<8x128xf32>
    %125 = arith.truncf %124 : vector<8x128xf32> to vector<8x128xbf16>
    %c0_59 = arith.constant 0 : index
    %c0_60 = arith.constant 0 : index
    %126 = vector.load %arg10[%c0_59, %c0_60] : memref<128x128xbf16, #tpu.memory_space<vmem>>, vector<128x128xbf16>
    %cst_61 = arith.constant dense<0.000000e+00> : vector<8x128xf32>
    %127 = tpu.matmul %125, %126, %cst_61 {dimension_numbers = #tpu.dot_dimension_numbers<[1], [0], [0], [1], [0, 0, 1, 1], [], []>} : vector<8x128xbf16>, vector<128x128xbf16>, vector<8x128xf32> -> vector<8x128xf32>
    %c0_62 = arith.constant 0 : index
    %c0_63 = arith.constant 0 : index
    %128 = vector.load %arg11[%c0_62, %c0_63] : memref<1x128xf32, #tpu.memory_space<vmem>>, vector<1x128xf32>
    %129 = vector.broadcast %128 : vector<1x128xf32> to vector<8x128xf32>
    %130 = arith.addf %127, %129 : vector<8x128xf32>
    %c0_64 = arith.constant 0 : index
    %c0_65 = arith.constant 0 : index
    %131 = vector.load %arg12[%c0_64, %c0_65] : memref<8x128xf32, #tpu.memory_space<vmem>>, vector<8x128xf32>
    tpu.vector_store %arg12[%c0_64, %c0_65], %130 {strides = array<i32>} : memref<8x128xf32, #tpu.memory_space<vmem>>, vector<8x128xf32>,
    return
  }
  func.func @transform_0(%arg0: i32) -> (i32, i32, i32) {
    %c0_i32 = arith.constant 0 : i32
    %c0_i32_0 = arith.constant 0 : i32
    %c0_i32_1 = arith.constant 0 : i32
    return %c0_i32, %arg0, %c0_i32_0 : i32, i32, i32
  }
  func.func @transform_1(%arg0: i32) -> (i32, i32, i32) {
    %c0_i32 = arith.constant 0 : i32
    %c0_i32_0 = arith.constant 0 : i32
    %c0_i32_1 = arith.constant 0 : i32
    %c0_i32_2 = arith.constant 0 : i32
    return %c0_i32, %c0_i32_0, %c0_i32_1 : i32, i32, i32
  }
  func.func @transform_2(%arg0: i32) -> (i32, i32) {
    %c0_i32 = arith.constant 0 : i32
    %c0_i32_0 = arith.constant 0 : i32
    %c0_i32_1 = arith.constant 0 : i32
    return %c0_i32, %c0_i32_0 : i32, i32
  }
  func.func @transform_3(%arg0: i32) -> (i32, i32, i32) {
    %c0_i32 = arith.constant 0 : i32
    %c0_i32_0 = arith.constant 0 : i32
    %c0_i32_1 = arith.constant 0 : i32
    %c0_i32_2 = arith.constant 0 : i32
    return %c0_i32, %c0_i32_0, %c0_i32_1 : i32, i32, i32
  }
  func.func @transform_4(%arg0: i32) -> (i32, i32) {
    %c0_i32 = arith.constant 0 : i32
    %c0_i32_0 = arith.constant 0 : i32
    %c0_i32_1 = arith.constant 0 : i32
    return %c0_i32, %c0_i32_0 : i32, i32
  }
  func.func @transform_5(%arg0: i32) -> (i32, i32) {
    %c0_i32 = arith.constant 0 : i32
    %c0_i32_0 = arith.constant 0 : i32
    %c0_i32_1 = arith.constant 0 : i32
    return %c0_i32, %c0_i32_0 : i32, i32
  }
  func.func @transform_6(%arg0: i32) -> (i32, i32) {
    %c0_i32 = arith.constant 0 : i32
    %c0_i32_0 = arith.constant 0 : i32
    %c0_i32_1 = arith.constant 0 : i32
    return %c0_i32, %c0_i32_0 : i32, i32
  }
  func.func @transform_7(%arg0: i32) -> (i32, i32) {
    %c0_i32 = arith.constant 0 : i32
    %c0_i32_0 = arith.constant 0 : i32
    %c0_i32_1 = arith.constant 0 : i32
    return %c0_i32, %c0_i32_0 : i32, i32
  }
  func.func @transform_8(%arg0: i32) -> (i32, i32) {
    %c0_i32 = arith.constant 0 : i32
    %c0_i32_0 = arith.constant 0 : i32
    %c0_i32_1 = arith.constant 0 : i32
    return %c0_i32, %c0_i32_0 : i32, i32
  }
  func.func @transform_9(%arg0: i32) -> (i32, i32) {
    %c0_i32 = arith.constant 0 : i32
    %c0_i32_0 = arith.constant 0 : i32
    %c0_i32_1 = arith.constant 0 : i32
    return %c0_i32, %c0_i32_0 : i32, i32
  }
  func.func @transform_10(%arg0: i32) -> (i32, i32) {
    %c0_i32 = arith.constant 0 : i32
    %c0_i32_0 = arith.constant 0 : i32
    %c0_i32_1 = arith.constant 0 : i32
    return %c0_i32, %c0_i32_0 : i32, i32
  }
  func.func @transform_11(%arg0: i32) -> (i32, i32) {
    %c0_i32 = arith.constant 0 : i32
    %c0_i32_0 = arith.constant 0 : i32
    return %arg0, %c0_i32 : i32, i32
  }
}

</mosaic_0001>

<bundles_post_ra>
// kernel: lenet_forward.1
= control target key start
LH: loop header
LB: loop body
LE: loop exit
PB: predicated region body
PF: predicated region fallthrough
CT: control target
= control target key end

     0   :  { %16 = vsyncpa [#allocation3], 0  ;;  %s7892_s0 = inlined_call_operand.vmem [shape: bf16[28,8,28], index: 0, kind: input, shape index: {}]   ;;  %s7893_s1 = inlined_call_operand.hbm [shape: bf16[5,28,384], index: 1, kind: input, shape index: {}]   ;;  %s7894_s2 = inlined_call_operand.vmem [shape: f32[1,384], index: 2, kind: input, shape index: {}]   ;;  %s7895_s3 = inlined_call_operand.hbm [shape: bf16[5,192,256], index: 3, kind: input, shape index: {}]   ;;  %s7896_s4 = inlined_call_operand.vmem [shape: f32[1,256], index: 4, kind: input, shape index: {}]   ;;  %s7897_s5 = inlined_call_operand.hbm [shape: bf16[512,128], index: 5, kind: input, shape index: {}]   ;;  %s7898_s6 = inlined_call_operand.vmem [shape: f32[1,128], index: 6, kind: input, shape index: {}]   ;;  %s7899_s7 = inlined_call_operand.vmem [shape: bf16[128,128], index: 7, kind: input, shape index: {}]   ;;  %s7900_s8 = inlined_call_operand.vmem [shape: f32[1,128], index: 8, kind: input, shape index: {}]   ;;  %s7901_s9 = inlined_call_operand.vmem [shape: bf16[128,128], index: 9, kind: input, shape index: {}]   ;;  %s7902_s10 = inlined_call_operand.vmem [shape: f32[1,128], index: 10, kind: input, shape index: {}]   ;;  %s7903_s11 = inlined_call_operand.vmem [shape: f32[8,128], index: 11, kind: output, shape index: {}]  }
   0x1   :  { %17 = vsyncpa [#allocation5], 0  ;;  %s6622_s17 = smov [#allocation4]   ;;  %s6552_s21 = scalar_lea.hbm %s7895_s3, 15360 }
   0x2   :  { %s39_s18 = sshll.u32 %s6622_s17, 4  ;;  %p6553_p0 = scmp.ne.s32.totalorder %s7895_s3, %s6552_s21  ;;  %s40_s18 = int_to_ptr.vmem [resolvable:$true] %s39_s18 }
   0x3   :  { %p6556_p1 = scmp.lt.u32.totalorder %s6552_s21, %s7895_s3 }
   0x5   :  { %p6558_p2 = pnand %p6556_p1, %p6553_p0 }
   0x7   :  { %6561 = shalt.err (!%p6558_p2)
}
   0x8   :  { %s6562_s26 = scalar_lea.vmem %s40_s18, 15360  ;;  %p6567_p4 = scmp.lt.s32.totalorder %s40_s18, %s40_s18 }
   0x9   :  { %p6563_p3 = scmp.ne.s32.totalorder %s40_s18, %s6562_s26  ;;  %p6568_p5 = scmp.lt.s32.totalorder %s6562_s26, %s6562_s26 }
   0xb   :  { %p6569_p6 = por %p6568_p5, %p6567_p4 }
   0xd   :  { %p6570_p7 = pnand %p6569_p6, %p6563_p3 }
   0xf   :  { %6573 = shalt.err (!%p6570_p7)
}
  0x10   :  { %s6623_s27 = smov 128   ;;  %s6624_s28 = smov 8  }
  0x11   :  { %45 = dma.hbm_to_vmem [thread:$0]  %s7895_s3, 15360, %s40_s18, [#allocation5], %s6623_s27, %s6623_s27, %s6624_s28  }
  0x12   :  { %s6625_s12 = smov [#allocation2]   ;;  %s6574_s16 = scalar_lea.hbm %s7893_s1, 3840 }
  0x13   :  { %s25_s13 = sshll.u32 %s6625_s12, 4  ;;  %p6575_p8 = scmp.ne.s32.totalorder %s7893_s1, %s6574_s16  ;;  %s26_s13 = int_to_ptr.vmem [resolvable:$true] %s25_s13 }
  0x14   :  { %p6578_p9 = scmp.lt.u32.totalorder %s6574_s16, %s7893_s1 }
  0x16   :  { %p6580_p10 = pnand %p6578_p9, %p6575_p8 }
  0x18   :  { %6583 = shalt.err (!%p6580_p10)
}
  0x19   :  { %s6584_s22 = scalar_lea.vmem %s26_s13, 3840  ;;  %p6589_p12 = scmp.lt.s32.totalorder %s26_s13, %s26_s13 }
  0x1a   :  { %p6585_p11 = scmp.ne.s32.totalorder %s26_s13, %s6584_s22  ;;  %p6590_p13 = scmp.lt.s32.totalorder %s6584_s22, %s6584_s22 }
  0x1c   :  { %p6591_p0 = por %p6590_p13, %p6589_p12 }
  0x1e   :  { %p6592_p1 = pnand %p6591_p0, %p6585_p11 }
  0x20   :  { %6595 = shalt.err (!%p6592_p1)
}
  0x21   :  { %s6626_s3 = smov 192   ;;  %s6627_s18 = smov 12  }
  0x22   :  { %31 = dma.hbm_to_vmem [thread:$0]  %s7893_s1, 3840, %s26_s13, [#allocation3], %s6626_s3, %s6626_s3, %s6627_s18  }
  0x23   :  { %s6628_s25 = smov [#allocation6]   ;;  %s6596_s29 = scalar_lea.hbm %s7897_s5, 4096 }
  0x24   :  { %s53_s26 = sshll.u32 %s6628_s25, 4  ;;  %p6597_p2 = scmp.ne.s32.totalorder %s7897_s5, %s6596_s29  ;;  %s54_s26 = int_to_ptr.vmem [resolvable:$true] %s53_s26 }
  0x25   :  { %p6600_p3 = scmp.lt.u32.totalorder %s6596_s29, %s7897_s5 }
  0x27   :  { %p6602_p4 = pnand %p6600_p3, %p6597_p2 }
  0x29   :  { %6605 = shalt.err (!%p6602_p4)
}
  0x2a   :  { %s6606_s16 = scalar_lea.vmem %s54_s26, 4096  ;;  %p6611_p6 = scmp.lt.s32.totalorder %s54_s26, %s54_s26 }
  0x2b   :  { %p6607_p5 = scmp.ne.s32.totalorder %s54_s26, %s6606_s16  ;;  %p6612_p7 = scmp.lt.s32.totalorder %s6606_s16, %s6606_s16 }
  0x2d   :  { %p6613_p8 = por %p6612_p7, %p6611_p6 }
  0x2f   :  { %p6614_p9 = pnand %p6613_p8, %p6607_p5 }
  0x31   :  { %6617 = shalt.err (!%p6614_p9)
}
  0x32   :  { %s6629_s1 = smov 64   ;;  %s6630_s13 = smov 4  }
  0x33   :  { %59 = dma.hbm_to_vmem [thread:$0]  %s7897_s5, 4096, %s54_s26, [#allocation5], %s6629_s1, %s6629_s1, %s6630_s13  }
  0x34   :  { %6618 = dma.done.wait [#allocation3], 3840  }
  0x35   :  { %6619 = vsyncadd [#allocation3], 4294963456 }
  0x36   :  { %6620 = dma.done.wait [#allocation5], 19456  }
  0x37   :  { %6621 = vsyncadd [#allocation5], 4294947840  ;;  %v6631_v0 = vmov 0   ;;  %v5897_v1 = vld [vmem:[#allocation2 + $0x34] ss:$12 sps:$4 sm:$0xff]   ;;  %vm251_vm0 = vcmask 1045504  }
  0x38   :  { %293 = vmatprep.mubr.bf16.mxu0 %v6631_v0  ;;  %403 = vmatprep.mubr.bf16.mxu1 %v6631_v0  ;;  %v5899_v2 = vld [vmem:[#allocation2 + $0x30] ss:$12 sps:$4 sm:$0xff]   ;;  %v5900_v3 = vld [vmem:[#allocation2 + $0x4c] ss:$12 sps:$4 sm:$0x3f]   ;;  %vm214_vm1 = vcmask 228352  }
  0x39   :  { %261 = vmatprep.subr.bf16.mxu0 %v5897_v1  ;;  %5464 = vmatprep.subr.bf16.mxu1 %v5897_v1  ;;  %v5902_v4 = vld [vmem:[#allocation2 + $0x48] ss:$12 sps:$4 sm:$0x3f]   ;;  %v6737_v5 = vld [vmem:[%s7892_s0 + $0x4] sm:$0xf]  ;;  %vm2691_vm2 = vcmask 523264  }
  0x3a   :  { %262 = vmatpush1.bf16.msra.mxu0 %v5899_v2  ;;  %5466 = vmatpush1.bf16.msra.mxu1 %v5899_v2  ;;  %v6742_v6 = vld [vmem:[%s7892_s0 + $0x8] sm:$0xf]  ;;  %v6747_v7 = vld [vmem:[%s7892_s0 + $0x5c] sm:$0xf]  ;;  %v253_v8 = vsel %vm251_vm0, %v5902_v4, 0  ;;  %vm6633_vm3 = vmmov 0  }
  0x3b   :  { %4753 = vmatprep.subr.msk.bf16.mxu0 %vm251_vm0, %v5900_v3  ;;  %5465 = vmatprep.subr.msk.bf16.mxu1 %vm251_vm0, %v5900_v3  ;;  %v6755_v9 = vld [vmem:[%s7892_s0 + $0x60] sm:$0xf]  ;;  %v5905_v10 = vld [vmem:[#allocation2 + $0x38] ss:$12 sps:$4 sm:$0xff]   ;;  %v4735_v11 = vcombine.low %v6737_v5, %v6742_v6  ;;  %v6769_v16 = vld [vmem:[%s7892_s0 + $0xc] sm:$0xf] }
  0x3c   :  { %v6761_v12 = vcombine.low %v6747_v7, %v6755_v9  ;;  %v5908_v13 = vld [vmem:[#allocation2 + $0x4] ss:$12 sps:$4 sm:$0xff]   ;;  %v5906_v14 = vld [vmem:[#allocation2] ss:$12 sps:$4 sm:$0xff]   ;;  %v6782_v19 = vld [vmem:[%s7892_s0 + $0x14] sm:$0xf]  ;;  %v6931_v57 = vcombine.low %v6742_v6, %v6769_v16 }
  0x3d   :  { %v5909_v15 = vld [vmem:[#allocation2 + $0x50] ss:$12 sps:$4 sm:$0x3f]   ;;  %v6787_v20 = vld [vmem:[%s7892_s0 + $0x18] sm:$0xf] }
  0x3e   :  { %264 = vmatpush1.bf16.msra.mxu0 %v253_v8  ;;  %5467 = vmatpush1.bf16.msra.mxu1 %v253_v8  ;;  %v6774_v17 = vld [vmem:[%s7892_s0 + $0x10] sm:$0xf]  ;;  %v259_v18 = vsel %vm251_vm0, %v5909_v15, 0  ;;  %v6796_v22 = vcombine.low %v6782_v19, %v6787_v20  ;;  %v5928_v23 = vld [vmem:[#allocation2 + $0x1c] ss:$12 sps:$4 sm:$0x3f]  }
  0x3f   :  { %5284 = vmatprep.subr.bf16.mxu1 %v5905_v10  ;;  %631 = vmatprep.subr.bf16.mxu0 %v5908_v13  ;;  %v6792_v21 = vcombine.low %v6769_v16, %v6774_v17  ;;  %v5930_v24 = vld [vmem:[#allocation2 + $0x18] ss:$12 sps:$4 sm:$0x3f]   ;;  %v6801_v25 = vld [vmem:[%s7892_s0 + $0x1c] sm:$0xf]  ;;  %v6935_v58 = vcombine.low %v6774_v17, %v6782_v19 }
  0x40   :  { %v6806_v26 = vld [vmem:[%s7892_s0 + $0x20] sm:$0xf]  ;;  %v623_v27 = vsel %vm251_vm0, %v5930_v24, 0  ;;  %v5934_v28 = vld [vmem:[#allocation2 + $0x8] ss:$12 sps:$4 sm:$0xff]   ;;  %v6948_v62 = vcombine.low %v6787_v20, %v6801_v25 }
  0x41   :  { %4754 = vmatmul.mubr.msk.bf16.vlgmr.msra.gmra.mrb[0].mxu0 %vm214_vm1, %v4735_v11  ;;  %4765 = vmatmul.mubr.msk.bf16.vlgmr.msra.gmra.mrb[0].mxu1 %vm214_vm1, %v6761_v12  ;;  %v5935_v29 = vld [vmem:[#allocation2 + $0x20] ss:$12 sps:$4 sm:$0x3f]   ;;  %v6820_v30 = vld [vmem:[%s7892_s0 + $0x24] sm:$0xf]  ;;  %v6829_v33 = vcombine.low %v6801_v25, %v6806_v26 }
  0x42   :  { %5285 = vmatpush3.bf16.msra.mxu1 %v5905_v10  ;;  %632 = vmatpush1.bf16.msra.mxu0 %v5906_v14  ;;  %v6825_v31 = vld [vmem:[%s7892_s0 + $0x28] sm:$0xf]  ;;  %v5939_v32 = vld [vmem:[#allocation2 + $0x64] ss:$12 sps:$4 sm:$0xff]   ;;  %v629_v34 = vsel %vm251_vm0, %v5935_v29, 0  ;;  %v6952_v1 = vcombine.low %v6806_v26, %v6820_v30 }
  0x43   :  { %5820 = vmatprep.subr.msk.bf16.mxu1 %vm251_vm0, %v5909_v15  ;;  %303 = vmatprep.mubr.bf16.mxu0 %v6631_v0  ;;  %v6835_v35 = vcombine.low %v6820_v30, %v6825_v31  ;;  %v5940_v36 = vld [vmem:[#allocation2 + $0x68] ss:$12 sps:$4 sm:$0xff]   ;;  %v6840_v37 = vld [vmem:[%s7892_s0 + $0x2c] sm:$0xf]  ;;  %v6845_v38 = vld [vmem:[%s7892_s0 + $0x30] sm:$0xf] }
  0x44   :  { %5288 = vmatprep.mubr.msk.bf16.mxu1 %vm214_vm1, %v4735_v11  ;;  %4796 = vmatprep.subr.msk.bf16.mxu0 %vm251_vm0, %v5928_v23  ;;  %v93_v39 = vld [vmem:[%s7892_s0 + $0x34] sm:$0xf]  ;;  %v94_v40 = vld [vmem:[%s7892_s0 + $0x38] sm:$0xf]  ;;  %v6862_v41 = vcombine.low %v6840_v37, %v6845_v38  ;;  %v95_v43 = vld [vmem:[%s7892_s0 + $0x3c] sm:$0xf]  ;;  %v6964_v3 = vcombine.low %v6825_v31, %v6840_v37 }
  0x45   :  { %v6864_v42 = vcombine.low %v93_v39, %v94_v40  ;;  %v96_v44 = vld [vmem:[%s7892_s0 + $0x40] sm:$0xf]  ;;  %v97_v45 = vld [vmem:[%s7892_s0 + $0x44] sm:$0xf]  ;;  %v98_v46 = vld [vmem:[%s7892_s0 + $0x48] sm:$0xf]  ;;  %v6967_v4 = vcombine.low %v6845_v38, %v93_v39 }
  0x46   :  { %5287 = vmatpush3.bf16.msra.mxu1 %v259_v18  ;;  %634 = vmatpush1.bf16.msra.mxu0 %v623_v27  ;;  %v6885_v47 = vcombine.low %v95_v43, %v96_v44  ;;  %v6887_v48 = vcombine.low %v97_v45, %v98_v46  ;;  %v99_v49 = vld [vmem:[%s7892_s0 + $0x4c] sm:$0xf]  ;;  %v100_v50 = vld [vmem:[%s7892_s0 + $0x50] sm:$0xf]  ;;  %v101_v51 = vld [vmem:[%s7892_s0 + $0x54] sm:$0xf]  ;;  %v6978_v6 = vcombine.low %v96_v44, %v97_v45 }
  0x47   :  { %5312 = vmatprep.subr.bf16.mxu1 %v5934_v28  ;;  %966 = vmatprep.subr.bf16.mxu0 %v5939_v32  ;;  %v102_v52 = vld [vmem:[%s7892_s0 + $0x58] sm:$0xf]  ;;  %v6908_v53 = vcombine.low %v99_v49, %v100_v50  ;;  %v80_v55 = vld [vmem:[%s7892_s0] sm:$0xf]  ;;  %v6987_v10 = vcombine.low %v98_v46, %v99_v49  ;;  %v6989_v13 = vcombine.low %v100_v50, %v101_v51  ;;  %v5952_v17 = vld [vmem:[#allocation2 + $0xc8] ss:$12 sps:$4 sm:$0xff]  }
  0x48   :  { %v6910_v54 = vcombine.low %v101_v51, %v102_v52  ;;  %v4778_v56 = vcombine.low %v80_v55, %v6737_v5  ;;  %v5941_v59 = vld [vmem:[#allocation2 + $0x80] ss:$12 sps:$4 sm:$0x3f]   ;;  %v5946_v60 = vld [vmem:[#allocation2 + $0x98] ss:$12 sps:$4 sm:$0xff]   ;;  %v6976_v5 = vcombine.low %v94_v40, %v95_v43  ;;  %v6999_v15 = vcombine.low %v102_v52, %v6747_v7 }
  0x49   :  { %4755 = vmatmul.mubr.msk.bf16.gmra.mrb[4].mxu0 %vm214_vm1, %v6792_v21  ;;  %5289 = vmatmul.mubr.msk.bf16.vlgmr.msra.gmra.mrb[4].mxu1 %vm214_vm1, %v6792_v21  ;;  %v964_v61 = vsel %vm251_vm0, %v5941_v59, 0  ;;  %v5944_v63 = vld [vmem:[#allocation2 + $0x78] ss:$12 sps:$4 sm:$0x3f]   ;;  %v5937_v8 = vld [vmem:[#allocation2 + $0x60] ss:$12 sps:$4 sm:$0xff]  }
  0x4a   :  { %313 = vmatprep.mubr.bf16.mxu0 %v6631_v0  ;;  %5292 = vmatprep.mubr.msk.bf16.mxu1 %vm214_vm1, %v6796_v22  ;;  %v958_v2 = vsel %vm251_vm0, %v5944_v63, 0  ;;  %v5942_v11 = vld [vmem:[#allocation2 + $0x7c] ss:$12 sps:$4 sm:$0x3f]   ;;  %v5950_v14 = vld [vmem:[#allocation2 + $0x94] ss:$12 sps:$4 sm:$0xff]  }
  0x4b   :  { %5313 = vmatpush3.bf16.msra.mxu1 %v5934_v28  ;;  %v5947_v16 = vld [vmem:[#allocation2 + $0xb0] ss:$12 sps:$4 sm:$0x3f]   ;;  %v105_v18 = vld [vmem:[%s7892_s0 + $0x64] sm:$0xf] }
  0x4c   :  { %5821 = vmatprep.subr.msk.bf16.mxu1 %vm251_vm0, %v5935_v29  ;;  %v1371_v7 = vsel %vm251_vm0, %v5947_v16, 0  ;;  %v7049_v19 = vcombine.low %v6755_v9, %v105_v18  ;;  %v5953_v20 = vld [vmem:[#allocation2 + $0xe0] ss:$12 sps:$4 sm:$0x3f]   ;;  %v5948_v23 = vld [vmem:[#allocation2 + $0x90] ss:$12 sps:$4 sm:$0xff]  }
  0x4d   :  { %v1778_v9 = vsel %vm251_vm0, %v5953_v20, 0  ;;  %v5954_v24 = vld [vmem:[#allocation2 + $0xac] ss:$12 sps:$4 sm:$0x3f]   ;;  %v106_v26 = vld [vmem:[%s7892_s0 + $0x68] sm:$0xf] }
  0x4e   :  { %v5956_v25 = vld [vmem:[#allocation2 + $0xa8] ss:$12 sps:$4 sm:$0x3f]   ;;  %v5960_v28 = vld [vmem:[#allocation2 + $0xc4] ss:$12 sps:$4 sm:$0xff]   ;;  %v7100_v29 = vcombine.low %v105_v18, %v106_v26 }
  0x4f   :  { %5315 = vmatpush3.bf16.msra.mxu1 %v629_v34  ;;  %v1365_v27 = vsel %vm251_vm0, %v5956_v25, 0  ;;  %v107_v30 = vld [vmem:[%s7892_s0 + $0x6c] sm:$0xf]  ;;  %v5961_v39 = vld [vmem:[#allocation2 + $0xdc] ss:$12 sps:$4 sm:$0x3f]  }
  0x50   :  { %5340 = vmatprep.subr.bf16.mxu1 %v5940_v36  ;;  %v7147_v31 = vcombine.low %v106_v26, %v107_v30  ;;  %v5958_v38 = vld [vmem:[#allocation2 + $0xc0] ss:$12 sps:$4 sm:$0xff]   ;;  %v5963_v40 = vld [vmem:[#allocation2 + $0xd8] ss:$12 sps:$4 sm:$0x3f]  }
  0x51   :  { %4756 = vmatmul.mubr.msk.bf16.gmra.mrb[8].mxu0 %vm214_vm1, %v6796_v22  ;;  %5293 = vmatmul.mubr.msk.bf16.gmra.mrb[8].mxu1 %vm214_vm1, %v6829_v33  ;;  %v1772_v43 = vsel %vm251_vm0, %v5963_v40, 0 }
  0x52   :  { %323 = vmatprep.mubr.bf16.mxu0 %v6631_v0  ;;  %5296 = vmatprep.mubr.msk.bf16.mxu1 %vm214_vm1, %v6835_v35 }
  0x59   :  { %4757 = vmatmul.mubr.msk.bf16.gmra.mrb[12].mxu0 %vm214_vm1, %v6829_v33  ;;  %5297 = vmatmul.mubr.msk.bf16.gmra.mrb[12].mxu1 %vm214_vm1, %v6862_v41 }
  0x5a   :  { %333 = vmatprep.mubr.bf16.mxu0 %v6631_v0  ;;  %5300 = vmatprep.mubr.msk.bf16.mxu1 %vm214_vm1, %v6864_v42 }
  0x61   :  { %4758 = vmatmul.mubr.msk.bf16.gmra.mrb[16].mxu0 %vm214_vm1, %v6835_v35  ;;  %5301 = vmatmul.mubr.msk.bf16.gmra.mrb[16].mxu1 %vm214_vm1, %v6885_v47 }
  0x62   :  { %343 = vmatprep.mubr.bf16.mxu0 %v6631_v0  ;;  %5304 = vmatprep.mubr.msk.bf16.mxu1 %vm214_vm1, %v6887_v48 }
  0x69   :  { %4759 = vmatmul.mubr.msk.bf16.gmra.mrb[20].mxu0 %vm214_vm1, %v6862_v41  ;;  %5305 = vmatmul.mubr.msk.bf16.gmra.mrb[20].mxu1 %vm214_vm1, %v6908_v53 }
  0x6a   :  { %353 = vmatprep.mubr.bf16.mxu0 %v6631_v0  ;;  %5308 = vmatprep.mubr.msk.bf16.mxu1 %vm214_vm1, %v6910_v54 }
  0x71   :  { %4760 = vmatmul.mubr.msk.bf16.gmra.mrb[24].mxu0 %vm214_vm1, %v6864_v42  ;;  %5309 = vmatmul.mubr.msk.bf16.gmra.mrb[24].mxu1 %vm214_vm1, %v6761_v12 }
  0x72   :  { %363 = vmatprep.mubr.bf16.mxu0 %v6631_v0  ;;  %5316 = vmatprep.mubr.msk.bf16.mxu1 %vm214_vm1, %v4778_v56 }
  0x79   :  { %4761 = vmatmul.mubr.msk.bf16.gmra.mrb[28].mxu0 %vm214_vm1, %v6885_v47  ;;  %5317 = vmatmul.mubr.msk.bf16.vlgmr.msra.gmra.mrb[4].mxu1 %vm214_vm1, %v6931_v57 }
  0x7a   :  { %373 = vmatprep.mubr.bf16.mxu0 %v6631_v0  ;;  %5320 = vmatprep.mubr.msk.bf16.mxu1 %vm214_vm1, %v6935_v58 }
  0x7b   :  { %5341 = vmatpush3.bf16.msra.mxu1 %v5940_v36 }
  0x7c   :  { %5822 = vmatprep.subr.msk.bf16.mxu1 %vm251_vm0, %v5941_v59 }
  0x7f   :  { %5343 = vmatpush3.bf16.msra.mxu1 %v964_v61 }
  0x80   :  { %5368 = vmatprep.subr.bf16.mxu1 %v5946_v60 }
  0x81   :  { %4762 = vmatmul.mubr.msk.bf16.gmra.mrb[32].mxu0 %vm214_vm1, %v6887_v48  ;;  %5321 = vmatmul.mubr.msk.bf16.gmra.mrb[8].mxu1 %vm214_vm1, %v6948_v62 }
  0x82   :  { %383 = vmatprep.mubr.bf16.mxu0 %v6631_v0  ;;  %5324 = vmatprep.mubr.msk.bf16.mxu1 %vm214_vm1, %v6952_v1 }
  0x89   :  { %4763 = vmatmul.mubr.msk.bf16.gmra.mrb[36].mxu0 %vm214_vm1, %v6908_v53  ;;  %5325 = vmatmul.mubr.msk.bf16.gmra.mrb[12].mxu1 %vm214_vm1, %v6964_v3 }
  0x8a   :  { %393 = vmatprep.mubr.bf16.mxu0 %v6631_v0  ;;  %5328 = vmatprep.mubr.msk.bf16.mxu1 %vm214_vm1, %v6967_v4 }
  0x91   :  { %4764 = vmatmul.mubr.msk.bf16.gmra.mrb[40].mxu0 %vm214_vm1, %v6910_v54  ;;  %5329 = vmatmul.mubr.msk.bf16.gmra.mrb[16].mxu1 %vm214_vm1, %v6976_v5 }
  0x92   :  { %663 = vmatprep.mubr.bf16.mxu0 %v6631_v0  ;;  %5332 = vmatprep.mubr.msk.bf16.mxu1 %vm214_vm1, %v6978_v6 }
  0x99   :  { %4797 = vmatmul.mubr.msk.bf16.vlgmr.msra.gmra.mrb[0].mxu0 %vm214_vm1, %v4778_v56  ;;  %5333 = vmatmul.mubr.msk.bf16.gmra.mrb[20].mxu1 %vm214_vm1, %v6987_v10 }
  0x9a   :  { %967 = vmatpush1.bf16.msra.mxu0 %v5937_v8  ;;  %673 = vmatprep.mubr.bf16.mxu0 %v6631_v0 }
  0x9b   :  { %5336 = vmatprep.mubr.msk.bf16.mxu1 %vm214_vm1, %v6989_v13  ;;  %4828 = vmatprep.subr.msk.bf16.mxu0 %vm251_vm0, %v5942_v11 }
  0x9e   :  { %969 = vmatpush1.bf16.msra.mxu0 %v958_v2 }
  0x9f   :  { %1373 = vmatprep.subr.bf16.mxu0 %v5950_v14 }
  0xa1   :  { %4798 = vmatmul.mubr.msk.bf16.gmra.mrb[4].mxu0 %vm214_vm1, %v6931_v57  ;;  %5337 = vmatmul.mubr.msk.bf16.gmra.mrb[24].mxu1 %vm214_vm1, %v6999_v15 }
  0xa2   :  { %683 = vmatprep.mubr.bf16.mxu0 %v6631_v0  ;;  %5344 = vmatprep.mubr.msk.bf16.mxu1 %vm214_vm1, %v6931_v57 }
  0xa9   :  { %4799 = vmatmul.mubr.msk.bf16.gmra.mrb[8].mxu0 %vm214_vm1, %v6935_v58  ;;  %5345 = vmatmul.mubr.msk.bf16.vlgmr.msra.gmra.mrb[4].mxu1 %vm214_vm1, %v6935_v58 }
  0xaa   :  { %693 = vmatprep.mubr.bf16.mxu0 %v6631_v0  ;;  %5348 = vmatprep.mubr.msk.bf16.mxu1 %vm214_vm1, %v6948_v62 }
  0xab   :  { %5369 = vmatpush3.bf16.msra.mxu1 %v5946_v60 }
  0xac   :  { %5823 = vmatprep.subr.msk.bf16.mxu1 %vm251_vm0, %v5947_v16 }
  0xaf   :  { %5371 = vmatpush3.bf16.msra.mxu1 %v1371_v7 }
  0xb0   :  { %5396 = vmatprep.subr.bf16.mxu1 %v5952_v17 }
  0xb1   :  { %4800 = vmatmul.mubr.msk.bf16.gmra.mrb[12].mxu0 %vm214_vm1, %v6948_v62  ;;  %5349 = vmatmul.mubr.msk.bf16.gmra.mrb[8].mxu1 %vm214_vm1, %v6952_v1 }
  0xb2   :  { %703 = vmatprep.mubr.bf16.mxu0 %v6631_v0  ;;  %5352 = vmatprep.mubr.msk.bf16.mxu1 %vm214_vm1, %v6964_v3 }
  0xb9   :  { %4801 = vmatmul.mubr.msk.bf16.gmra.mrb[16].mxu0 %vm214_vm1, %v6952_v1  ;;  %5353 = vmatmul.mubr.msk.bf16.gmra.mrb[12].mxu1 %vm214_vm1, %v6967_v4 }
  0xba   :  { %713 = vmatprep.mubr.bf16.mxu0 %v6631_v0  ;;  %5356 = vmatprep.mubr.msk.bf16.mxu1 %vm214_vm1, %v6976_v5 }
  0xc1   :  { %4802 = vmatmul.mubr.msk.bf16.gmra.mrb[20].mxu0 %vm214_vm1, %v6964_v3  ;;  %5357 = vmatmul.mubr.msk.bf16.gmra.mrb[16].mxu1 %vm214_vm1, %v6978_v6 }
  0xc2   :  { %723 = vmatprep.mubr.bf16.mxu0 %v6631_v0  ;;  %5360 = vmatprep.mubr.msk.bf16.mxu1 %vm214_vm1, %v6987_v10 }
  0xc9   :  { %4803 = vmatmul.mubr.msk.bf16.gmra.mrb[24].mxu0 %vm214_vm1, %v6967_v4  ;;  %5361 = vmatmul.mubr.msk.bf16.gmra.mrb[20].mxu1 %vm214_vm1, %v6989_v13 }
  0xca   :  { %733 = vmatprep.mubr.bf16.mxu0 %v6631_v0  ;;  %5364 = vmatprep.mubr.msk.bf16.mxu1 %vm214_vm1, %v6999_v15 }
  0xd1   :  { %4804 = vmatmul.mubr.msk.bf16.gmra.mrb[28].mxu0 %vm214_vm1, %v6976_v5  ;;  %5365 = vmatmul.mubr.msk.bf16.gmra.mrb[24].mxu1 %vm214_vm1, %v7049_v19 }
  0xd2   :  { %743 = vmatprep.mubr.bf16.mxu0 %v6631_v0  ;;  %5372 = vmatprep.mubr.msk.bf16.mxu1 %vm214_vm1, %v6792_v21 }
  0xd9   :  { %4805 = vmatmul.mubr.msk.bf16.gmra.mrb[32].mxu0 %vm214_vm1, %v6978_v6  ;;  %5373 = vmatmul.mubr.msk.bf16.vlgmr.msra.gmra.mrb[4].mxu1 %vm214_vm1, %v6796_v22 }
  0xda   :  { %753 = vmatprep.mubr.bf16.mxu0 %v6631_v0  ;;  %5376 = vmatprep.mubr.msk.bf16.mxu1 %vm214_vm1, %v6829_v33 }
  0xdb   :  { %5397 = vmatpush3.bf16.msra.mxu1 %v5952_v17 }
  0xdc   :  { %5824 = vmatprep.subr.msk.bf16.mxu1 %vm251_vm0, %v5953_v20 }
  0xdf   :  { %5399 = vmatpush3.bf16.msra.mxu1 %v1778_v9 }
  0xe1   :  { %4806 = vmatmul.mubr.msk.bf16.gmra.mrb[36].mxu0 %vm214_vm1, %v6987_v10  ;;  %5377 = vmatmul.mubr.msk.bf16.gmra.mrb[8].mxu1 %vm214_vm1, %v6835_v35 }
  0xe2   :  { %763 = vmatprep.mubr.bf16.mxu0 %v6631_v0  ;;  %5380 = vmatprep.mubr.msk.bf16.mxu1 %vm214_vm1, %v6862_v41 }
  0xe9   :  { %4807 = vmatmul.mubr.msk.bf16.gmra.mrb[40].mxu0 %vm214_vm1, %v6989_v13  ;;  %5381 = vmatmul.mubr.msk.bf16.gmra.mrb[12].mxu1 %vm214_vm1, %v6864_v42 }
  0xea   :  { %773 = vmatprep.mubr.bf16.mxu0 %v6631_v0  ;;  %5384 = vmatprep.mubr.msk.bf16.mxu1 %vm214_vm1, %v6885_v47 }
  0xf1   :  { %4808 = vmatmul.mubr.msk.bf16.gmra.mrb[44].mxu0 %vm214_vm1, %v6999_v15  ;;  %5385 = vmatmul.mubr.msk.bf16.gmra.mrb[16].mxu1 %vm214_vm1, %v6887_v48 }
  0xf2   :  { %998 = vmatprep.mubr.bf16.mxu0 %v6631_v0  ;;  %5388 = vmatprep.mubr.msk.bf16.mxu1 %vm214_vm1, %v6908_v53 }
  0xf9   :  { %4829 = vmatmul.mubr.msk.bf16.vlgmr.msra.gmra.mrb[0].mxu0 %vm214_vm1, %v6931_v57  ;;  %5389 = vmatmul.mubr.msk.bf16.gmra.mrb[20].mxu1 %vm214_vm1, %v6910_v54 }
  0xfa   :  { %1374 = vmatpush1.bf16.msra.mxu0 %v5948_v23  ;;  %1008 = vmatprep.mubr.bf16.mxu0 %v6631_v0 }
  0xfb   :  { %5392 = vmatprep.mubr.msk.bf16.mxu1 %vm214_vm1, %v6761_v12  ;;  %4860 = vmatprep.subr.msk.bf16.mxu0 %vm251_vm0, %v5954_v24 }
  0xfe   :  { %1376 = vmatpush1.bf16.msra.mxu0 %v1365_v27 }
  0xff   :  { %1780 = vmatprep.subr.bf16.mxu0 %v5960_v28 }
 0x101   :  { %4830 = vmatmul.mubr.msk.bf16.gmra.mrb[4].mxu0 %vm214_vm1, %v6935_v58  ;;  %5393 = vmatmul.mubr.msk.bf16.gmra.mrb[24].mxu1 %vm214_vm1, %v7100_v29 }
 0x102   :  { %1018 = vmatprep.mubr.bf16.mxu0 %v6631_v0  ;;  %5400 = vmatprep.mubr.msk.bf16.mxu1 %vm214_vm1, %v6935_v58 }
 0x109   :  { %4831 = vmatmul.mubr.msk.bf16.gmra.mrb[8].mxu0 %vm214_vm1, %v6948_v62  ;;  %5401 = vmatmul.mubr.msk.bf16.vlgmr.msra.gmra.mrb[4].mxu1 %vm214_vm1, %v6948_v62 }
 0x10a   :  { %1028 = vmatprep.mubr.bf16.mxu0 %v6631_v0  ;;  %5404 = vmatprep.mubr.msk.bf16.mxu1 %vm214_vm1, %v6952_v1 }
 0x111   :  { %4832 = vmatmul.mubr.msk.bf16.gmra.mrb[12].mxu0 %vm214_vm1, %v6952_v1  ;;  %5405 = vmatmul.mubr.msk.bf16.gmra.mrb[8].mxu1 %vm214_vm1, %v6964_v3 }
 0x112   :  { %1038 = vmatprep.mubr.bf16.mxu0 %v6631_v0  ;;  %5408 = vmatprep.mubr.msk.bf16.mxu1 %vm214_vm1, %v6967_v4 }
 0x114   :  { %v7165_v32 = vpop.f32.mrb[0].mxu1 }
 0x115   :  { %v7168_v34 = vpop.f32.mrb[1].mxu1 }
 0x116   :  { %v7170_v36 = vpop.f32.mrb[2].mxu1 }
 0x117   :  { %v7172_v37 = vpop.f32.mrb[3].mxu1 }
 0x119   :  { %4833 = vmatmul.mubr.msk.bf16.gmra.mrb[16].mxu0 %vm214_vm1, %v6964_v3  ;;  %5409 = vmatmul.mubr.msk.bf16.gmra.mrb[12].mxu1 %vm214_vm1, %v6976_v5 }
 0x11a   :  { %1048 = vmatprep.mubr.bf16.mxu0 %v6631_v0  ;;  %5412 = vmatprep.mubr.msk.bf16.mxu1 %vm214_vm1, %v6978_v6 }
 0x121   :  { %4834 = vmatmul.mubr.msk.bf16.gmra.mrb[20].mxu0 %vm214_vm1, %v6967_v4  ;;  %5413 = vmatmul.mubr.msk.bf16.gmra.mrb[16].mxu1 %vm214_vm1, %v6987_v10 }
 0x122   :  { %1058 = vmatprep.mubr.bf16.mxu0 %v6631_v0  ;;  %5416 = vmatprep.mubr.msk.bf16.mxu1 %vm214_vm1, %v6989_v13 }
 0x129   :  { %4835 = vmatmul.mubr.msk.bf16.gmra.mrb[24].mxu0 %vm214_vm1, %v6976_v5  ;;  %5417 = vmatmul.mubr.msk.bf16.gmra.mrb[20].mxu1 %vm214_vm1, %v6999_v15 }
 0x12a   :  { %1068 = vmatprep.mubr.bf16.mxu0 %v6631_v0  ;;  %5420 = vmatprep.mubr.msk.bf16.mxu1 %vm214_vm1, %v7049_v19 }
 0x131   :  { %4836 = vmatmul.mubr.msk.bf16.gmra.mrb[28].mxu0 %vm214_vm1, %v6978_v6  ;;  %5421 = vmatmul.mubr.msk.bf16.gmra.mrb[24].mxu1 %vm214_vm1, %v7147_v31 }
 0x132   :  { %1078 = vmatprep.mubr.bf16.mxu0 %v6631_v0 }
 0x139   :  { %4837 = vmatmul.mubr.msk.bf16.gmra.mrb[32].mxu0 %vm214_vm1, %v6987_v10 }
 0x13a   :  { %1088 = vmatprep.mubr.bf16.mxu0 %v6631_v0 }
 0x141   :  { %4838 = vmatmul.mubr.msk.bf16.gmra.mrb[36].mxu0 %vm214_vm1, %v6989_v13 }
 0x142   :  { %1098 = vmatprep.mubr.bf16.mxu0 %v6631_v0 }
 0x149   :  { %4839 = vmatmul.mubr.msk.bf16.gmra.mrb[40].mxu0 %vm214_vm1, %v6999_v15 }
 0x14a   :  { %1108 = vmatprep.mubr.bf16.mxu0 %v6631_v0 }
 0x151   :  { %4840 = vmatmul.mubr.msk.bf16.gmra.mrb[44].mxu0 %vm214_vm1, %v7049_v19 }
 0x152   :  { %1405 = vmatprep.mubr.bf16.mxu0 %v6631_v0 }
 0x159   :  { %4861 = vmatmul.mubr.msk.bf16.vlgmr.msra.gmra.mrb[0].mxu0 %vm214_vm1, %v6792_v21 }
 0x15a   :  { %1781 = vmatpush1.bf16.msra.mxu0 %v5958_v38  ;;  %1415 = vmatprep.mubr.bf16.mxu0 %v6631_v0 }
 0x15b   :  { %4892 = vmatprep.subr.msk.bf16.mxu0 %vm251_vm0, %v5961_v39 }
 0x15e   :  { %1783 = vmatpush1.bf16.msra.mxu0 %v1772_v43 }
 0x161   :  { %4862 = vmatmul.mubr.msk.bf16.gmra.mrb[4].mxu0 %vm214_vm1, %v6796_v22 }
 0x162   :  { %1425 = vmatprep.mubr.bf16.mxu0 %v6631_v0 }
 0x169   :  { %4863 = vmatmul.mubr.msk.bf16.gmra.mrb[8].mxu0 %vm214_vm1, %v6829_v33  ;;  %v7230_v33 = vld [vmem:[%s7894_s2] sm:$0x7] }
 0x16a   :  { %1435 = vmatprep.mubr.bf16.mxu0 %v6631_v0 }
 0x171   :  { %4864 = vmatmul.mubr.msk.bf16.gmra.mrb[12].mxu0 %vm214_vm1, %v6835_v35 }
 0x172   :  { %1445 = vmatprep.mubr.bf16.mxu0 %v6631_v0 }
 0x179   :  { %4865 = vmatmul.mubr.msk.bf16.gmra.mrb[16].mxu0 %vm214_vm1, %v6862_v41 }
 0x17a   :  { %1455 = vmatprep.mubr.bf16.mxu0 %v6631_v0 }
 0x181   :  { %4866 = vmatmul.mubr.msk.bf16.gmra.mrb[20].mxu0 %vm214_vm1, %v6864_v42 }
 0x182   :  { %1465 = vmatprep.mubr.bf16.mxu0 %v6631_v0 }
 0x189   :  { %4867 = vmatmul.mubr.msk.bf16.gmra.mrb[24].mxu0 %vm214_vm1, %v6885_v47 }
 0x18a   :  { %1475 = vmatprep.mubr.bf16.mxu0 %v6631_v0 }
 0x191   :  { %4868 = vmatmul.mubr.msk.bf16.gmra.mrb[28].mxu0 %vm214_vm1, %v6887_v48 }
 0x192   :  { %1485 = vmatprep.mubr.bf16.mxu0 %v6631_v0 }
 0x199   :  { %4869 = vmatmul.mubr.msk.bf16.gmra.mrb[32].mxu0 %vm214_vm1, %v6908_v53 }
 0x19a   :  { %1495 = vmatprep.mubr.bf16.mxu0 %v6631_v0 }
 0x1a1   :  { %4870 = vmatmul.mubr.msk.bf16.gmra.mrb[36].mxu0 %vm214_vm1, %v6910_v54 }
 0x1a2   :  { %1505 = vmatprep.mubr.bf16.mxu0 %v6631_v0 }
 0x1a9   :  { %4871 = vmatmul.mubr.msk.bf16.gmra.mrb[40].mxu0 %vm214_vm1, %v6761_v12  ;;  %v2136_v12 = vlaneseq }
 0x1aa   :  { %1515 = vmatprep.mubr.bf16.mxu0 %v6631_v0 }
 0x1ab   :  { %v7223_v21 = vshrl.u32 %v2136_v12, 7 }
 0x1ad   :  { %v2146_v22 = vsub.s32 2, %v7223_v21 }
 0x1af   :  { %v7235_v35 = vrot.slane %v7230_v33, %v2146_v22 }
 0x1b1   :  { %4872 = vmatmul.mubr.msk.bf16.gmra.mrb[44].mxu0 %vm214_vm1, %v7100_v29 }
 0x1b2   :  { %1812 = vmatprep.mubr.bf16.mxu0 %v6631_v0 }
 0x1b9   :  { %4893 = vmatmul.mubr.msk.bf16.vlgmr.msra.gmra.mrb[0].mxu0 %vm214_vm1, %v6935_v58 }
 0x1ba   :  { %1822 = vmatprep.mubr.bf16.mxu0 %v6631_v0 }
 0x1c1   :  { %4894 = vmatmul.mubr.msk.bf16.gmra.mrb[4].mxu0 %vm214_vm1, %v6948_v62 }
 0x1c2   :  { %1832 = vmatprep.mubr.bf16.mxu0 %v6631_v0 }
 0x1c9   :  { %4895 = vmatmul.mubr.msk.bf16.gmra.mrb[8].mxu0 %vm214_vm1, %v6952_v1 }
 0x1ca   :  { %1842 = vmatprep.mubr.bf16.mxu0 %v6631_v0 }
 0x1d1   :  { %4896 = vmatmul.mubr.msk.bf16.gmra.mrb[12].mxu0 %vm214_vm1, %v6964_v3 }
 0x1d2   :  { %1852 = vmatprep.mubr.bf16.mxu0 %v6631_v0 }
 0x1d9   :  { %4897 = vmatmul.mubr.msk.bf16.gmra.mrb[16].mxu0 %vm214_vm1, %v6967_v4 }
 0x1da   :  { %1862 = vmatprep.mubr.bf16.mxu0 %v6631_v0 }
 0x1dc   :  { %v5402_v41 = vpop.f32.mrb[4].mxu1 }
 0x1dd   :  { %v2159_v42 = vadd.f32 %v5402_v41, %v7235_v35  ;;  %v1967_v44 = vpop.f32.mrb[5].mxu1 }
 0x1de   :  { %v2153_v45 = vadd.f32 %v7235_v35, %v1967_v44  ;;  %v5403_v46 = vpop.f32.mrb[6].mxu1 }
 0x1df   :  { %v2231_v47 = vsub.f32 0.0, %v2159_v42  ;;  %v2162_v48 = vadd.f32 %v5403_v46, %v7235_v35  ;;  %v1970_v49 = vpop.f32.mrb[7].mxu1 }
 0x1e0   :  { %v2225_v50 = vsub.f32 0.0, %v2153_v45  ;;  %v2156_v51 = vadd.f32 %v7235_v35, %v1970_v49 }
 0x1e1   :  { %v2311_v52 = vmul.f32 1.442695, %v2231_v47  ;;  %v2234_v53 = vsub.f32 0.0, %v2162_v48  ;;  %4898 = vmatmul.mubr.msk.bf16.gmra.mrb[20].mxu0 %vm214_vm1, %v6976_v5 }
 0x1e2   :  { %v2299_v54 = vmul.f32 1.442695, %v2225_v50  ;;  %v2228_v55 = vsub.f32 0.0, %v2156_v51  ;;  %1872 = vmatprep.mubr.bf16.mxu0 %v6631_v0 }
 0x1e3   :  { %6192 = vpow2.f32 %v2311_v52  ;;  %v2317_v56 = vmul.f32 1.442695, %v2234_v53 }
 0x1e4   :  { %6194 = vpow2.f32 %v2299_v54  ;;  %v2305_v57 = vmul.f32 1.442695, %v2228_v55  ;;  %v5406_v58 = vpop.f32.mrb[8].mxu1 }
 0x1e5   :  { %6196 = vpow2.f32 %v2317_v56  ;;  %v2171_v59 = vadd.f32 %v5406_v58, %v7235_v35  ;;  %v1983_v60 = vpop.f32.mrb[9].mxu1 }
 0x1e6   :  { %6198 = vpow2.f32 %v2305_v57  ;;  %v2165_v61 = vadd.f32 %v7235_v35, %v1983_v60  ;;  %v5407_v62 = vpop.f32.mrb[10].mxu1 }
 0x1e7   :  { %v2243_v63 = vsub.f32 0.0, %v2171_v59  ;;  %v2174_v1 = vadd.f32 %v5407_v62, %v7235_v35  ;;  %v1986_v2 = vpop.f32.mrb[11].mxu1 }
 0x1e8   :  { %v2237_v3 = vsub.f32 0.0, %v2165_v61  ;;  %v2168_v4 = vadd.f32 %v7235_v35, %v1986_v2 }
 0x1e9   :  { %v2335_v5 = vmul.f32 1.442695, %v2243_v63  ;;  %v2246_v8 = vsub.f32 0.0, %v2174_v1  ;;  %4899 = vmatmul.mubr.msk.bf16.gmra.mrb[24].mxu0 %vm214_vm1, %v6978_v6 }
 0x1ea   :  { %v2323_v11 = vmul.f32 1.442695, %v2237_v3  ;;  %v2240_v14 = vsub.f32 0.0, %v2168_v4  ;;  %1882 = vmatprep.mubr.bf16.mxu0 %v6631_v0 }
 0x1eb   :  { %6200 = vpow2.f32 %v2335_v5  ;;  %v2341_v16 = vmul.f32 1.442695, %v2246_v8 }
 0x1ec   :  { %6202 = vpow2.f32 %v2323_v11  ;;  %v2329_v7 = vmul.f32 1.442695, %v2240_v14  ;;  %v5410_v17 = vpop.f32.mrb[12].mxu1 }
 0x1ed   :  { %v6193_v18 = vpop.eup %6192  ;;  %6204 = vpow2.f32 %v2341_v16  ;;  %v2183_v20 = vadd.f32 %v5410_v17, %v7235_v35  ;;  %v1999_v9 = vpop.f32.mrb[13].mxu1 }
 0x1ee   :  { %v6195_v23 = vpop.eup %6194  ;;  %v2447_v24 = vadd.f32 1.0, %v6193_v18  ;;  %6206 = vpow2.f32 %v2329_v7  ;;  %v2177_v25 = vadd.f32 %v7235_v35, %v1999_v9  ;;  %v5411_v6 = vpop.f32.mrb[14].mxu1 }
 0x1ef   :  { %v6197_v26 = vpop.eup %6196  ;;  %v2441_v27 = vadd.f32 1.0, %v6195_v23  ;;  %v2255_v28 = vsub.f32 0.0, %v2183_v20  ;;  %v2186_v29 = vadd.f32 %v5411_v6, %v7235_v35  ;;  %v2002_v30 = vpop.f32.mrb[15].mxu1 }
 0x1f0   :  { %v6199_v38 = vpop.eup %6198  ;;  %6208 = vrcp.f32 %v2447_v24  ;;  %v2450_v39 = vadd.f32 1.0, %v6197_v26  ;;  %v2249_v40 = vsub.f32 0.0, %v2177_v25  ;;  %v2180_v43 = vadd.f32 %v7235_v35, %v2002_v30 }
 0x1f1   :  { %6210 = vrcp.f32 %v2441_v27  ;;  %v2444_v12 = vadd.f32 1.0, %v6199_v38  ;;  %v2359_v22 = vmul.f32 1.442695, %v2255_v28  ;;  %v2258_v41 = vsub.f32 0.0, %v2186_v29  ;;  %4900 = vmatmul.mubr.msk.bf16.gmra.mrb[28].mxu0 %vm214_vm1, %v6987_v10 }
 0x1f2   :  { %6212 = vrcp.f32 %v2450_v39  ;;  %v2347_v42 = vmul.f32 1.442695, %v2249_v40  ;;  %v2252_v44 = vsub.f32 0.0, %v2180_v43  ;;  %1892 = vmatprep.mubr.bf16.mxu0 %v6631_v0 }
 0x1f3   :  { %6214 = vrcp.f32 %v2444_v12  ;;  %v2365_v45 = vmul.f32 1.442695, %v2258_v41 }
 0x1f4   :  { %6216 = vpow2.f32 %v2359_v22  ;;  %v2353_v46 = vmul.f32 1.442695, %v2252_v44  ;;  %v5414_v47 = vpop.f32.mrb[16].mxu1 }
 0x1f5   :  { %v6201_v48 = vpop.eup %6200  ;;  %6218 = vpow2.f32 %v2347_v42  ;;  %v2195_v49 = vadd.f32 %v5414_v47, %v7235_v35  ;;  %v2015_v50 = vpop.f32.mrb[17].mxu1 }
 0x1f6   :  { %v6203_v51 = vpop.eup %6202  ;;  %v2459_v52 = vadd.f32 1.0, %v6201_v48  ;;  %6220 = vpow2.f32 %v2365_v45  ;;  %v2189_v10 = vadd.f32 %v7235_v35, %v2015_v50  ;;  %v5415_v53 = vpop.f32.mrb[18].mxu1 }
 0x1f7   :  { %v6205_v54 = vpop.eup %6204  ;;  %v2453_v55 = vadd.f32 1.0, %v6203_v51  ;;  %6222 = vpow2.f32 %v2353_v46  ;;  %v2267_v56 = vsub.f32 0.0, %v2195_v49  ;;  %v2198_v57 = vadd.f32 %v5415_v53, %v7235_v35  ;;  %v2018_v58 = vpop.f32.mrb[19].mxu1 }
 0x1f8   :  { %v6207_v59 = vpop.eup %6206  ;;  %6224 = vrcp.f32 %v2459_v52  ;;  %v2462_v60 = vadd.f32 1.0, %v6205_v54  ;;  %v2261_v61 = vsub.f32 0.0, %v2189_v10  ;;  %v2192_v62 = vadd.f32 %v7235_v35, %v2018_v58 }
 0x1f9   :  { %6226 = vrcp.f32 %v2453_v55  ;;  %v2456_v63 = vadd.f32 1.0, %v6207_v59  ;;  %v2383_v1 = vmul.f32 1.442695, %v2267_v56  ;;  %v2270_v2 = vsub.f32 0.0, %v2198_v57  ;;  %4901 = vmatmul.mubr.msk.bf16.gmra.mrb[32].mxu0 %vm214_vm1, %v6989_v13 }
 0x1fa   :  { %v7265_v3 = vpop.eup %6208  ;;  %6228 = vrcp.f32 %v2462_v60  ;;  %v2371_v4 = vmul.f32 1.442695, %v2261_v61  ;;  %v2264_v5 = vsub.f32 0.0, %v2192_v62  ;;  %1902 = vmatprep.mubr.bf16.mxu0 %v6631_v0 }
 0x1fb   :  { %v7268_v8 = vpop.eup %6210  ;;  %6230 = vrcp.f32 %v2456_v63  ;;  %v2389_v11 = vmul.f32 1.442695, %v2270_v2 }
 0x1fc   :  { %v7270_v14 = vpop.eup %6212  ;;  %6232 = vpow2.f32 %v2383_v1  ;;  %v2377_v16 = vmul.f32 1.442695, %v2264_v5  ;;  %v5418_v7 = vpop.f32.mrb[20].mxu1 }
 0x1fd   :  { %v7272_v17 = vpop.eup %6214  ;;  %6234 = vpow2.f32 %v2371_v4  ;;  %v2207_v13 = vadd.f32 %v5418_v7, %v7235_v35  ;;  %v2031_v18 = vpop.f32.mrb[21].mxu1  ;;  %v2588_v20 = vmax.f32 %v7265_v3, %v7270_v14 }
 0x1fe   :  { %v6217_v9 = vpop.eup %6216  ;;  %6236 = vpow2.f32 %v2389_v11  ;;  %v2201_v23 = vadd.f32 %v7235_v35, %v2031_v18  ;;  %v5419_v24 = vpop.f32.mrb[22].mxu1 }
 0x1ff   :  { %v6219_v6 = vpop.eup %6218  ;;  %v2471_v26 = vadd.f32 1.0, %v6217_v9  ;;  %6238 = vpow2.f32 %v2377_v16  ;;  %v2279_v27 = vsub.f32 0.0, %v2207_v13  ;;  %v2210_v28 = vadd.f32 %v5419_v24, %v7235_v35  ;;  %v2034_v29 = vpop.f32.mrb[23].mxu1 }
 0x200   :  { %v6221_v30 = vpop.eup %6220  ;;  %v2465_v38 = vadd.f32 1.0, %v6219_v6  ;;  %v2273_v39 = vsub.f32 0.0, %v2201_v23  ;;  %v2204_v40 = vadd.f32 %v7235_v35, %v2034_v29 }
 0x201   :  { %v6223_v43 = vpop.eup %6222  ;;  %6240 = vrcp.f32 %v2471_v26  ;;  %v2474_v12 = vadd.f32 1.0, %v6221_v30  ;;  %v2407_v22 = vmul.f32 1.442695, %v2279_v27  ;;  %v2282_v41 = vsub.f32 0.0, %v2210_v28  ;;  %4902 = vmatmul.mubr.msk.bf16.gmra.mrb[36].mxu0 %vm214_vm1, %v6999_v15 }
 0x202   :  { %v7284_v42 = vpop.eup %6224  ;;  %6242 = vrcp.f32 %v2465_v38  ;;  %v2468_v44 = vadd.f32 1.0, %v6223_v43  ;;  %v2395_v45 = vmul.f32 1.442695, %v2273_v39  ;;  %v2276_v46 = vsub.f32 0.0, %v2204_v40  ;;  %1912 = vmatprep.mubr.bf16.mxu0 %v6631_v0 }
 0x203   :  { %v7287_v47 = vpop.eup %6226  ;;  %6244 = vrcp.f32 %v2474_v12  ;;  %v2413_v48 = vmul.f32 1.442695, %v2282_v41 }
 0x204   :  { %v7289_v49 = vpop.eup %6228  ;;  %6246 = vrcp.f32 %v2468_v44  ;;  %v2401_v50 = vmul.f32 1.442695, %v2276_v46  ;;  %v5422_v51 = vpop.f32.mrb[24].mxu1 }
 0x205   :  { %v7291_v52 = vpop.eup %6230  ;;  %6248 = vpow2.f32 %v2407_v22  ;;  %v2219_v15 = vadd.f32 %v5422_v51, %v7235_v35  ;;  %v2047_v10 = vpop.f32.mrb[25].mxu1  ;;  %v2594_v53 = vmax.f32 %v7284_v42, %v7289_v49 }
 0x206   :  { %v6233_v54 = vpop.eup %6232  ;;  %6250 = vpow2.f32 %v2395_v45  ;;  %v2213_v55 = vadd.f32 %v7235_v35, %v2047_v10  ;;  %v5423_v56 = vpop.f32.mrb[26].mxu1  ;;  %v2591_v57 = vmax.f32 %v7287_v47, %v7291_v52 }
 0x207   :  { %v6235_v58 = vpop.eup %6234  ;;  %v2483_v59 = vadd.f32 1.0, %v6233_v54  ;;  %6252 = vpow2.f32 %v2413_v48  ;;  %v2291_v60 = vsub.f32 0.0, %v2219_v15  ;;  %v2222_v61 = vadd.f32 %v5423_v56, %v7235_v35  ;;  %v2050_v62 = vpop.f32.mrb[27].mxu1 }
 0x208   :  { %v6237_v63 = vpop.eup %6236  ;;  %v2477_v1 = vadd.f32 1.0, %v6235_v58  ;;  %6254 = vpow2.f32 %v2401_v50  ;;  %v2285_v2 = vsub.f32 0.0, %v2213_v55  ;;  %v2216_v4 = vadd.f32 %v7235_v35, %v2050_v62 }
 0x209   :  { %v6239_v5 = vpop.eup %6238  ;;  %6256 = vrcp.f32 %v2483_v59  ;;  %v2486_v11 = vadd.f32 1.0, %v6237_v63  ;;  %v2431_v16 = vmul.f32 1.442695, %v2291_v60  ;;  %v2294_v7 = vsub.f32 0.0, %v2222_v61  ;;  %4903 = vmatmul.mubr.msk.bf16.gmra.mrb[40].mxu0 %vm214_vm1, %v7049_v19  ;;  %v5991_v63 = vld [vmem:[#allocation4 + $0x150] ss:$8 sps:$4 sm:$0xff]  }
 0x20a   :  { %6258 = vrcp.f32 %v2477_v1  ;;  %v2480_v13 = vadd.f32 1.0, %v6239_v5  ;;  %v2419_v18 = vmul.f32 1.442695, %v2285_v2  ;;  %v2288_v9 = vsub.f32 0.0, %v2216_v4  ;;  %1922 = vmatprep.mubr.bf16.mxu0 %v6631_v0 }
 0x20b   :  { %v7304_v23 = vpop.eup %6240  ;;  %6260 = vrcp.f32 %v2486_v11  ;;  %v2437_v24 = vmul.f32 1.442695, %v2294_v7  ;;  %v7905_v7 = vsub.s32 0, %v7223_v21 }
 0x20c   :  { %v7306_v6 = vpop.eup %6242  ;;  %6262 = vrcp.f32 %v2480_v13  ;;  %v2425_v35 = vmul.f32 1.442695, %v2288_v9  ;;  %v7904_v13 = vsub.s32 1, %v7223_v21  ;;  %v5966_v9 = vld [vmem:[#allocation4 + $0xc4] ss:$8 sps:$4 sm:$0xff]  }
 0x20d   :  { %v7308_v26 = vpop.eup %6244  ;;  %6264 = vpow2.f32 %v2431_v16  ;;  %3005 = vmatprep.subr.bf16.mxu1 %v5966_v9  ;;  %v5970_v9 = vld [vmem:[#allocation4 + $0xe0] ss:$8 sps:$4 sm:$0xff]  }
 0x20e   :  { %v7310_v27 = vpop.eup %6246  ;;  %6266 = vpow2.f32 %v2419_v18  ;;  %v2600_v19 = vmax.f32 %v7304_v23, %v7308_v26  ;;  %v5964_v18 = vld [vmem:[#allocation4 + $0xc0] ss:$8 sps:$4 sm:$0xff]  }
 0x20f   :  { %v6249_v28 = vpop.eup %6248  ;;  %6268 = vpow2.f32 %v2437_v24  ;;  %v2597_v0 = vmax.f32 %v7306_v6, %v7310_v27  ;;  %v7359_v24 = vrot.slane %v7230_v33, %v7905_v7  ;;  %3006 = vmatpush1.bf16.msra.mxu1 %v5964_v18 }
 0x210   :  { %v6251_v29 = vpop.eup %6250  ;;  %v2495_v30 = vadd.f32 1.0, %v6249_v28  ;;  %6270 = vpow2.f32 %v2425_v35  ;;  %v7364_v35 = vrot.slane %v7230_v33, %v7904_v13 }
 0x211   :  { %v6253_v38 = vpop.eup %6252  ;;  %v2489_v39 = vadd.f32 1.0, %v6251_v29  ;;  %4904 = vmatmul.mubr.msk.bf16.gmra.mrb[44].mxu0 %vm214_vm1, %v7147_v31 }
 0x212   :  { %v6255_v40 = vpop.eup %6254  ;;  %6272 = vrcp.f32 %v2495_v30  ;;  %v2498_v43 = vadd.f32 1.0, %v6253_v38 }
 0x213   :  { %v7318_v12 = vpop.eup %6256  ;;  %6274 = vrcp.f32 %v2489_v39  ;;  %v2492_v22 = vadd.f32 1.0, %v6255_v40 }
 0x214   :  { %v7320_v41 = vpop.eup %6258  ;;  %6276 = vrcp.f32 %v2498_v43 }
 0x215   :  { %v7322_v44 = vpop.eup %6260  ;;  %6278 = vrcp.f32 %v2492_v22 }
 0x216   :  { %v7324_v45 = vpop.eup %6262 }
 0x217   :  { %v6265_v48 = vpop.eup %6264 }
 0x218   :  { %v6267_v50 = vpop.eup %6266  ;;  %v2507_v51 = vadd.f32 1.0, %v6265_v48 }
 0x219   :  { %v6269_v15 = vpop.eup %6268  ;;  %v2501_v10 = vadd.f32 1.0, %v6267_v50 }
 0x21a   :  { %v6271_v54 = vpop.eup %6270  ;;  %6280 = vrcp.f32 %v2507_v51  ;;  %v2510_v55 = vadd.f32 1.0, %v6269_v15  ;;  %v5967_v51 = vld [vmem:[#allocation4 + $0xd0] ss:$8 sps:$4 sm:$0xff]   ;;  %v5969_v15 = vld [vmem:[#allocation4 + $0xd4] ss:$8 sps:$4 sm:$0xff]  }
 0x21b   :  { %6282 = vrcp.f32 %v2501_v10  ;;  %v2504_v56 = vadd.f32 1.0, %v6271_v54  ;;  %3007 = vmatprep.subr.bf16.mxu1 %v5969_v15 }
 0x21c   :  { %v7330_v58 = vpop.eup %6272  ;;  %6284 = vrcp.f32 %v2510_v55  ;;  %3008 = vmatpush1.bf16.msra.mxu1 %v5967_v51  ;;  %v5973_v51 = vld [vmem:[#allocation4 + $0xf0] ss:$8 sps:$4 sm:$0xff]  }
 0x21d   :  { %v7332_v59 = vpop.eup %6274  ;;  %6286 = vrcp.f32 %v2504_v56  ;;  %v5972_v56 = vld [vmem:[#allocation4 + $0xe4] ss:$8 sps:$4 sm:$0xff]  }
 0x21e   :  { %v7334_v60 = vpop.eup %6276  ;;  %3009 = vmatprep.subr.bf16.mxu1 %v5972_v56 }
 0x21f   :  { %v7336_v61 = vpop.eup %6278 }
 0x220   :  { %3010 = vmatpush1.bf16.msra.mxu1 %v5970_v9 }
 0x224   :  { %v7342_v1 = vpop.eup %6280 }
 0x225   :  { %v7344_v2 = vpop.eup %6282 }
 0x226   :  { %v7346_v4 = vpop.eup %6284 }
 0x227   :  { %v7348_v5 = vpop.eup %6286 }
 0x28c   :  { %v1814_v28 = vpop.f32.mrb[0].mxu0 }
 0x28d   :  { %v2151_v29 = vadd.f32 %v7359_v24, %v1814_v28  ;;  %v1816_v30 = vpop.f32.mrb[1].mxu0 }
 0x28e   :  { %v2152_v38 = vadd.f32 %v7364_v35, %v1816_v30  ;;  %v1818_v39 = vpop.f32.mrb[2].mxu0  ;;  %v5975_v30 = vld [vmem:[#allocation4 + $0xf4] ss:$8 sps:$4 sm:$0xff]  }
 0x28f   :  { %v2223_v40 = vsub.f32 0.0, %v2151_v29  ;;  %v2154_v43 = vadd.f32 %v7359_v24, %v1818_v39  ;;  %v1820_v22 = vpop.f32.mrb[3].mxu0  ;;  %3011 = vmatprep.subr.bf16.mxu1 %v5975_v30 }
 0x290   :  { %v2224_v48 = vsub.f32 0.0, %v2152_v38  ;;  %v2155_v50 = vadd.f32 %v7364_v35, %v1820_v22  ;;  %3012 = vmatpush1.bf16.msra.mxu1 %v5973_v51 }
 0x291   :  { %v2295_v10 = vmul.f32 1.442695, %v2223_v40  ;;  %v2226_v54 = vsub.f32 0.0, %v2154_v43 }
 0x292   :  { %v2297_v33 = vmul.f32 1.442695, %v2224_v48  ;;  %v2227_v55 = vsub.f32 0.0, %v2155_v50 }
 0x293   :  { %6288 = vpow2.f32 %v2295_v10  ;;  %v2301_v18 = vmul.f32 1.442695, %v2226_v54  ;;  %v5978_v54 = vld [vmem:[#allocation4 + $0x104] ss:$8 sps:$4 sm:$0xff]  }
 0x294   :  { %6290 = vpow2.f32 %v2297_v33  ;;  %v2303_v28 = vmul.f32 1.442695, %v2227_v55  ;;  %v1824_v29 = vpop.f32.mrb[4].mxu0  ;;  %3013 = vmatprep.subr.bf16.mxu1 %v5978_v54  ;;  %v5979_v54 = vld [vmem:[#allocation4 + $0x110] ss:$8 sps:$4 sm:$0xff]  }
 0x295   :  { %6292 = vpow2.f32 %v2301_v18  ;;  %v2157_v38 = vadd.f32 %v7359_v24, %v1824_v29  ;;  %v1826_v39 = vpop.f32.mrb[5].mxu0  ;;  %v5976_v29 = vld [vmem:[#allocation4 + $0x100] ss:$8 sps:$4 sm:$0xff]  }
 0x296   :  { %6294 = vpow2.f32 %v2303_v28  ;;  %v2158_v40 = vadd.f32 %v7364_v35, %v1826_v39  ;;  %v1828_v43 = vpop.f32.mrb[6].mxu0  ;;  %3014 = vmatpush1.bf16.msra.mxu1 %v5976_v29  ;;  %v5982_v29 = vld [vmem:[#allocation4 + $0x120] ss:$8 sps:$4 sm:$0xff]  }
 0x297   :  { %v2229_v22 = vsub.f32 0.0, %v2157_v38  ;;  %v2160_v48 = vadd.f32 %v7359_v24, %v1828_v43  ;;  %v1830_v50 = vpop.f32.mrb[7].mxu0  ;;  %v5981_v43 = vld [vmem:[#allocation4 + $0x114] ss:$8 sps:$4 sm:$0xff]  }
 0x298   :  { %v2230_v15 = vsub.f32 0.0, %v2158_v40  ;;  %v2161_v10 = vadd.f32 %v7364_v35, %v1830_v50  ;;  %3015 = vmatprep.subr.bf16.mxu1 %v5981_v43 }
 0x299   :  { %v2307_v33 = vmul.f32 1.442695, %v2229_v22  ;;  %v2232_v55 = vsub.f32 0.0, %v2160_v48 }
 0x29a   :  { %v2309_v56 = vmul.f32 1.442695, %v2230_v15  ;;  %v2233_v18 = vsub.f32 0.0, %v2161_v10  ;;  %3016 = vmatpush1.bf16.msra.mxu1 %v5979_v54 }
 0x29b   :  { %6296 = vpow2.f32 %v2307_v33  ;;  %v2313_v28 = vmul.f32 1.442695, %v2232_v55 }
 0x29c   :  { %6298 = vpow2.f32 %v2309_v56  ;;  %v2315_v38 = vmul.f32 1.442695, %v2233_v18  ;;  %v1834_v39 = vpop.f32.mrb[8].mxu0 }
 0x29d   :  { %v6289_v9 = vpop.eup %6288  ;;  %6300 = vpow2.f32 %v2313_v28  ;;  %v2163_v40 = vadd.f32 %v7359_v24, %v1834_v39  ;;  %v1836_v50 = vpop.f32.mrb[9].mxu0 }
 0x29e   :  { %v6291_v30 = vpop.eup %6290  ;;  %v2439_v13 = vadd.f32 1.0, %v6289_v9  ;;  %6302 = vpow2.f32 %v2315_v38  ;;  %v2164_v22 = vadd.f32 %v7364_v35, %v1836_v50  ;;  %v1838_v48 = vpop.f32.mrb[10].mxu0  ;;  %v5984_v9 = vld [vmem:[#allocation4 + $0x124] ss:$8 sps:$4 sm:$0xff]  }
 0x29f   :  { %v6293_v15 = vpop.eup %6292  ;;  %v2440_v10 = vadd.f32 1.0, %v6291_v30  ;;  %v2235_v51 = vsub.f32 0.0, %v2163_v40  ;;  %v2166_v33 = vadd.f32 %v7359_v24, %v1838_v48  ;;  %v1840_v55 = vpop.f32.mrb[11].mxu0  ;;  %3017 = vmatprep.subr.bf16.mxu1 %v5984_v9  ;;  %v5985_v9 = vld [vmem:[#allocation4 + $0x130] ss:$8 sps:$4 sm:$0xff]  }
 0x2a0   :  { %v6295_v56 = vpop.eup %6294  ;;  %6304 = vrcp.f32 %v2439_v13  ;;  %v2442_v18 = vadd.f32 1.0, %v6293_v15  ;;  %v2236_v28 = vsub.f32 0.0, %v2164_v22  ;;  %v2167_v39 = vadd.f32 %v7364_v35, %v1840_v55  ;;  %v5987_v22 = vld [vmem:[#allocation4 + $0x134] ss:$8 sps:$4 sm:$0xff]   ;;  %3018 = vmatpush1.bf16.msra.mxu1 %v5982_v29 }
 0x2a1   :  { %6306 = vrcp.f32 %v2440_v10  ;;  %v2443_v38 = vadd.f32 1.0, %v6295_v56  ;;  %v2319_v50 = vmul.f32 1.442695, %v2235_v51  ;;  %v2238_v7 = vsub.f32 0.0, %v2166_v33  ;;  %3019 = vmatprep.subr.bf16.mxu1 %v5987_v22 }
 0x2a2   :  { %6308 = vrcp.f32 %v2442_v18  ;;  %v2321_v30 = vmul.f32 1.442695, %v2236_v28  ;;  %v2239_v40 = vsub.f32 0.0, %v2167_v39 }
 0x2a3   :  { %6310 = vrcp.f32 %v2443_v38  ;;  %v2325_v48 = vmul.f32 1.442695, %v2238_v7 }
 0x2a4   :  { %6312 = vpow2.f32 %v2319_v50  ;;  %v2327_v11 = vmul.f32 1.442695, %v2239_v40  ;;  %v1844_v13 = vpop.f32.mrb[12].mxu0  ;;  %3020 = vmatpush1.bf16.msra.mxu1 %v5985_v9 }
 0x2a5   :  { %v6297_v15 = vpop.eup %6296  ;;  %6314 = vpow2.f32 %v2321_v30  ;;  %v2169_v43 = vadd.f32 %v7359_v24, %v1844_v13  ;;  %v1846_v10 = vpop.f32.mrb[13].mxu0 }
 0x2a6   :  { %v6299_v55 = vpop.eup %6298  ;;  %v2445_v51 = vadd.f32 1.0, %v6297_v15  ;;  %6316 = vpow2.f32 %v2325_v48  ;;  %v2170_v33 = vadd.f32 %v7364_v35, %v1846_v10  ;;  %v1848_v56 = vpop.f32.mrb[14].mxu0  ;;  %v5990_v48 = vld [vmem:[#allocation4 + $0x144] ss:$8 sps:$4 sm:$0xff]  }
 0x2a7   :  { %v6301_v18 = vpop.eup %6300  ;;  %v2446_v7 = vadd.f32 1.0, %v6299_v55  ;;  %6318 = vpow2.f32 %v2327_v11  ;;  %v2241_v54 = vsub.f32 0.0, %v2169_v43  ;;  %v2172_v28 = vadd.f32 %v7359_v24, %v1848_v56  ;;  %v1850_v39 = vpop.f32.mrb[15].mxu0  ;;  %3021 = vmatprep.subr.bf16.mxu1 %v5990_v48 }
 0x2a8   :  { %v6303_v38 = vpop.eup %6302  ;;  %6320 = vrcp.f32 %v2445_v51  ;;  %v2448_v50 = vadd.f32 1.0, %v6301_v18  ;;  %v2242_v30 = vsub.f32 0.0, %v2170_v33  ;;  %v2173_v40 = vadd.f32 %v7364_v35, %v1850_v39  ;;  %v5988_v51 = vld [vmem:[#allocation4 + $0x140] ss:$8 sps:$4 sm:$0xff]  }
 0x2a9   :  { %6322 = vrcp.f32 %v2446_v7  ;;  %v2449_v13 = vadd.f32 1.0, %v6303_v38  ;;  %v2331_v15 = vmul.f32 1.442695, %v2241_v54  ;;  %v2244_v10 = vsub.f32 0.0, %v2172_v28  ;;  %3022 = vmatpush1.bf16.msra.mxu1 %v5988_v51 }
 0x2aa   :  { %v7382_v55 = vpop.eup %6304  ;;  %6324 = vrcp.f32 %v2448_v50  ;;  %v2333_v11 = vmul.f32 1.442695, %v2242_v30  ;;  %v2245_v43 = vsub.f32 0.0, %v2173_v40 }
 0x2ab   :  { %v6307_v56 = vpop.eup %6306  ;;  %6326 = vrcp.f32 %v2449_v13  ;;  %v2337_v29 = vmul.f32 1.442695, %v2244_v10 }
 0x2ac   :  { %v7384_v18 = vpop.eup %6308  ;;  %6328 = vpow2.f32 %v2331_v15  ;;  %v2339_v33 = vmul.f32 1.442695, %v2245_v43  ;;  %v1854_v22 = vpop.f32.mrb[16].mxu0 }
 0x2ad   :  { %v6311_v7 = vpop.eup %6310  ;;  %6330 = vpow2.f32 %v2333_v11  ;;  %v2175_v54 = vadd.f32 %v7359_v24, %v1854_v22  ;;  %v1856_v28 = vpop.f32.mrb[17].mxu0 }
 0x2ae   :  { %v6313_v38 = vpop.eup %6312  ;;  %6332 = vpow2.f32 %v2337_v29  ;;  %v2176_v50 = vadd.f32 %v7364_v35, %v1856_v28  ;;  %v1858_v9 = vpop.f32.mrb[18].mxu0  ;;  %v7390_v30 = vmax.f32 %v6307_v56, %v6311_v7 }
 0x2af   :  { %v6315_v40 = vpop.eup %6314  ;;  %v2451_v13 = vadd.f32 1.0, %v6313_v38  ;;  %6334 = vpow2.f32 %v2339_v33  ;;  %v2247_v15 = vsub.f32 0.0, %v2175_v54  ;;  %v2178_v48 = vadd.f32 %v7359_v24, %v1858_v9  ;;  %v1860_v10 = vpop.f32.mrb[19].mxu0  ;;  %v5993_v38 = vld [vmem:[#allocation4 + $0x154] ss:$8 sps:$4 sm:$0xff]  }
 0x2b0   :  { %v6317_v11 = vpop.eup %6316  ;;  %v2452_v43 = vadd.f32 1.0, %v6315_v40  ;;  %v2248_v22 = vsub.f32 0.0, %v2176_v50  ;;  %v2179_v39 = vadd.f32 %v7364_v35, %v1860_v10  ;;  %3023 = vmatprep.subr.bf16.mxu1 %v5993_v38 }
 0x2b1   :  { %v6319_v16 = vpop.eup %6318  ;;  %6336 = vrcp.f32 %v2451_v13  ;;  %v2454_v29 = vadd.f32 1.0, %v6317_v11  ;;  %v2343_v28 = vmul.f32 1.442695, %v2247_v15  ;;  %v2250_v62 = vsub.f32 0.0, %v2178_v48  ;;  %v5996_v13 = vld [vmem:[#allocation4 + $0x164] ss:$8 sps:$4 sm:$0xff]   ;;  %3024 = vmatpush1.bf16.msra.mxu1 %v5991_v63 }
 0x2b2   :  { %v7394_v56 = vpop.eup %6320  ;;  %6338 = vrcp.f32 %v2452_v43  ;;  %v2455_v7 = vadd.f32 1.0, %v6319_v16  ;;  %v2345_v33 = vmul.f32 1.442695, %v2248_v22  ;;  %v2251_v54 = vsub.f32 0.0, %v2179_v39  ;;  %v5994_v39 = vld [vmem:[#allocation4 + $0x160] ss:$8 sps:$4 sm:$0xff]   ;;  %3025 = vmatprep.subr.bf16.mxu1 %v5996_v13 }
 0x2b3   :  { %v6323_v9 = vpop.eup %6322  ;;  %6340 = vrcp.f32 %v2454_v29  ;;  %v2349_v51 = vmul.f32 1.442695, %v2250_v62 }
 0x2b4   :  { %v7396_v40 = vpop.eup %6324  ;;  %6342 = vrcp.f32 %v2455_v7  ;;  %v2351_v50 = vmul.f32 1.442695, %v2251_v54  ;;  %v1864_v10 = vpop.f32.mrb[20].mxu0 }
 0x2b5   :  { %v6327_v15 = vpop.eup %6326  ;;  %6344 = vpow2.f32 %v2343_v28  ;;  %v2181_v48 = vadd.f32 %v7359_v24, %v1864_v10  ;;  %v1866_v11 = vpop.f32.mrb[21].mxu0  ;;  %3026 = vmatpush1.bf16.msra.mxu1 %v5994_v39 }
 0x2b6   :  { %v6329_v43 = vpop.eup %6328  ;;  %6346 = vpow2.f32 %v2345_v33  ;;  %v2182_v62 = vadd.f32 %v7364_v35, %v1866_v11  ;;  %v1868_v22 = vpop.f32.mrb[22].mxu0  ;;  %v7402_v29 = vmax.f32 %v6323_v9, %v6327_v15 }
 0x2b7   :  { %v6331_v7 = vpop.eup %6330  ;;  %v2457_v54 = vadd.f32 1.0, %v6329_v43  ;;  %6348 = vpow2.f32 %v2349_v51  ;;  %v2253_v28 = vsub.f32 0.0, %v2181_v48  ;;  %v2184_v38 = vadd.f32 %v7359_v24, %v1868_v22  ;;  %v1870_v10 = vpop.f32.mrb[23].mxu0  ;;  %v5999_v48 = vld [vmem:[#allocation4 + $0x174] ss:$8 sps:$4 sm:$0xff]  }
 0x2b8   :  { %v6333_v25 = vpop.eup %6332  ;;  %v2458_v46 = vadd.f32 1.0, %v6331_v7  ;;  %6350 = vpow2.f32 %v2351_v50  ;;  %v2254_v63 = vsub.f32 0.0, %v2182_v62  ;;  %v2185_v16 = vadd.f32 %v7364_v35, %v1870_v10  ;;  %v5997_v62 = vld [vmem:[#allocation4 + $0x170] ss:$8 sps:$4 sm:$0xff]   ;;  %3027 = vmatprep.subr.bf16.mxu1 %v5999_v48 }
 0x2b9   :  { %v6335_v33 = vpop.eup %6334  ;;  %6352 = vrcp.f32 %v2457_v54  ;;  %v2460_v11 = vadd.f32 1.0, %v6333_v25  ;;  %v2355_v31 = vmul.f32 1.442695, %v2253_v28  ;;  %v2256_v9 = vsub.f32 0.0, %v2184_v38  ;;  %3028 = vmatpush1.bf16.msra.mxu1 %v5997_v62 }
 0x2ba   :  { %6354 = vrcp.f32 %v2458_v46  ;;  %v2461_v13 = vadd.f32 1.0, %v6335_v33  ;;  %v2357_v15 = vmul.f32 1.442695, %v2254_v63  ;;  %v2257_v51 = vsub.f32 0.0, %v2185_v16 }
 0x2bb   :  { %v7406_v43 = vpop.eup %6336  ;;  %6356 = vrcp.f32 %v2460_v11  ;;  %v2361_v22 = vmul.f32 1.442695, %v2256_v9  ;;  %v5837_v50 = vpack.i.bf16 %v2588_v20, %v7402_v29 }
 0x2bc   :  { %v6339_v7 = vpop.eup %6338  ;;  %6358 = vrcp.f32 %v2461_v13  ;;  %v2363_v25 = vmul.f32 1.442695, %v2257_v51  ;;  %v1874_v54 = vpop.f32.mrb[24].mxu0 }
 0x2bd   :  { %v7412_v46 = vpop.eup %6340  ;;  %6360 = vpow2.f32 %v2355_v31  ;;  %5838 = vrot.lane.b32.xlu0 %v5837_v50, %s6629_s1  ;;  %v2187_v16 = vadd.f32 %v7359_v24, %v1874_v54  ;;  %v1876_v39 = vpop.f32.mrb[25].mxu0 }
 0x2be   :  { %v6343_v28 = vpop.eup %6342  ;;  %6362 = vpow2.f32 %v2357_v15  ;;  %v2188_v3 = vadd.f32 %v7364_v35, %v1876_v39  ;;  %v1878_v14 = vpop.f32.mrb[26].mxu0 }
 0x2bf   :  { %v6345_v38 = vpop.eup %6344  ;;  %6364 = vpow2.f32 %v2361_v22  ;;  %v2259_v10 = vsub.f32 0.0, %v2187_v16  ;;  %v2190_v63 = vadd.f32 %v7359_v24, %v1878_v14  ;;  %v1880_v31 = vpop.f32.mrb[27].mxu0  ;;  %v7420_v33 = vmax.f32 %v6339_v7, %v6343_v28 }
 0x2c0   :  { %v6347_v11 = vpop.eup %6346  ;;  %v2463_v9 = vadd.f32 1.0, %v6345_v38  ;;  %6366 = vpow2.f32 %v2363_v25  ;;  %v2260_v13 = vsub.f32 0.0, %v2188_v3  ;;  %v2191_v15 = vadd.f32 %v7364_v35, %v1880_v31 }
 0x2c1   :  { %v6349_v51 = vpop.eup %6348  ;;  %v2464_v48 = vadd.f32 1.0, %v6347_v11  ;;  %v2262_v50 = vsub.f32 0.0, %v2190_v63  ;;  %v5842_v22 = vpack.i.bf16 %v2591_v57, %v7420_v33  ;;  %v2367_v16 = vmul.f32 1.442695, %v2259_v10  ;;  %v6002_v10 = vld [vmem:[#allocation4 + $0x4] ss:$8 sps:$4 sm:$0xff]  }
 0x2c2   :  { %v6351_v62 = vpop.eup %6350  ;;  %6368 = vrcp.f32 %v2463_v9  ;;  %v2466_v54 = vadd.f32 1.0, %v6349_v51  ;;  %v2263_v7 = vsub.f32 0.0, %v2191_v15  ;;  %v2369_v28 = vmul.f32 1.442695, %v2260_v13  ;;  %3222 = vmatprep.subr.bf16.mxu1 %v6002_v10 }
 0x2c3   :  { %v7427_v39 = vpop.eup %6352  ;;  %6370 = vrcp.f32 %v2464_v48  ;;  %v2467_v25 = vadd.f32 1.0, %v6351_v62  ;;  %5843 = vrot.lane.b32.xlu0 %v5842_v22, %s6629_s1  ;;  %v2373_v14 = vmul.f32 1.442695, %v2262_v50 }
 0x2c4   :  { %v6355_v3 = vpop.eup %6354  ;;  %6372 = vrcp.f32 %v2466_v54  ;;  %v1884_v38 = vpop.f32.mrb[28].mxu0  ;;  %v2375_v47 = vmul.f32 1.442695, %v2263_v7 }
 0x2c5   :  { %v7430_v63 = vpop.eup %6356  ;;  %6374 = vrcp.f32 %v2467_v25  ;;  %v2193_v52 = vadd.f32 %v7359_v24, %v1884_v38  ;;  %v1886_v57 = vpop.f32.mrb[29].mxu0 }
 0x2c6   :  { %v6359_v31 = vpop.eup %6358  ;;  %6376 = vpow2.f32 %v2367_v16  ;;  %v2194_v11 = vadd.f32 %v7364_v35, %v1886_v57  ;;  %v1888_v9 = vpop.f32.mrb[30].mxu0 }
 0x2c7   :  { %v6361_v15 = vpop.eup %6360  ;;  %6378 = vpow2.f32 %v2369_v28  ;;  %v2265_v51 = vsub.f32 0.0, %v2193_v52  ;;  %v2196_v48 = vadd.f32 %v7359_v24, %v1888_v9  ;;  %v1890_v50 = vpop.f32.mrb[31].mxu0  ;;  %v7437_v22 = vmax.f32 %v6355_v3, %v6359_v31 }
 0x2c8   :  { %v6363_v62 = vpop.eup %6362  ;;  %v2469_v54 = vadd.f32 1.0, %v6361_v15  ;;  %6380 = vpow2.f32 %v2373_v14  ;;  %v2266_v7 = vsub.f32 0.0, %v2194_v11  ;;  %v2197_v16 = vadd.f32 %v7364_v35, %v1890_v50 }
 0x2c9   :  { %v6365_v25 = vpop.eup %6364  ;;  %v2470_v38 = vadd.f32 1.0, %v6363_v62  ;;  %6382 = vpow2.f32 %v2375_v47  ;;  %v2268_v57 = vsub.f32 0.0, %v2196_v48  ;;  %v2379_v52 = vmul.f32 1.442695, %v2265_v51 }
 0x2ca   :  { %v6367_v13 = vpop.eup %6366  ;;  %6384 = vrcp.f32 %v2469_v54  ;;  %v2472_v28 = vadd.f32 1.0, %v6365_v25  ;;  %v2269_v20 = vsub.f32 0.0, %v2197_v16  ;;  %v2381_v3 = vmul.f32 1.442695, %v2266_v7 }
 0x2cb   :  { %6386 = vrcp.f32 %v2470_v38  ;;  %v2473_v9 = vadd.f32 1.0, %v6367_v13  ;;  %v5847_v14 = vpack.i.bf16 %v2594_v53, %v7437_v22  ;;  %v2385_v31 = vmul.f32 1.442695, %v2268_v57 }
 0x2cc   :  { %v7444_v10 = vpop.eup %6368  ;;  %6388 = vrcp.f32 %v2472_v28  ;;  %v1894_v11 = vpop.f32.mrb[32].mxu0  ;;  %v2387_v15 = vmul.f32 1.442695, %v2269_v20 }
 0x2cd   :  { %v6371_v47 = vpop.eup %6370  ;;  %6390 = vrcp.f32 %v2473_v9  ;;  %5848 = vrot.lane.b32.xlu1 %v5847_v14, %s6629_s1  ;;  %v2199_v51 = vadd.f32 %v7359_v24, %v1894_v11  ;;  %v1896_v48 = vpop.f32.mrb[33].mxu0 }
 0x2ce   :  { %v7448_v13 = vpop.eup %6372  ;;  %6392 = vpow2.f32 %v2379_v52  ;;  %v2200_v50 = vadd.f32 %v7364_v35, %v1896_v48  ;;  %v1898_v42 = vpop.f32.mrb[34].mxu0 }
 0x2cf   :  { %v6375_v49 = vpop.eup %6374  ;;  %6394 = vpow2.f32 %v2381_v3  ;;  %v2271_v53 = vsub.f32 0.0, %v2199_v51  ;;  %v2202_v62 = vadd.f32 %v7359_v24, %v1898_v42  ;;  %v1900_v54 = vpop.f32.mrb[35].mxu0 }
 0x2d0   :  { %v6377_v7 = vpop.eup %6376  ;;  %6396 = vpow2.f32 %v2385_v31  ;;  %v2272_v16 = vsub.f32 0.0, %v2200_v50  ;;  %v2203_v25 = vadd.f32 %v7364_v35, %v1900_v54  ;;  %v7455_v38 = vmax.f32 %v6371_v47, %v6375_v49 }
 0x2d1   :  { %v6379_v57 = vpop.eup %6378  ;;  %v2475_v28 = vadd.f32 1.0, %v6377_v7  ;;  %6398 = vpow2.f32 %v2387_v15  ;;  %v2274_v52 = vsub.f32 0.0, %v2202_v62  ;;  %v2391_v48 = vmul.f32 1.442695, %v2271_v53 }
 0x2d2   :  { %v6381_v9 = vpop.eup %6380  ;;  %v2476_v3 = vadd.f32 1.0, %v6379_v57  ;;  %v2275_v14 = vsub.f32 0.0, %v2203_v25  ;;  %v5852_v11 = vpack.i.bf16 %v2597_v0, %v7455_v38  ;;  %v2393_v42 = vmul.f32 1.442695, %v2272_v16 }
 0x2d3   :  { %v6383_v51 = vpop.eup %6382  ;;  %6400 = vrcp.f32 %v2475_v28  ;;  %v2478_v31 = vadd.f32 1.0, %v6381_v9  ;;  %v2397_v62 = vmul.f32 1.442695, %v2274_v52 }
 0x2d4   :  { %v7461_v50 = vpop.eup %6384  ;;  %6402 = vrcp.f32 %v2476_v3  ;;  %v2479_v47 = vadd.f32 1.0, %v6383_v51  ;;  %5853 = vrot.lane.b32.xlu1 %v5852_v11, %s6629_s1  ;;  %v1904_v15 = vpop.f32.mrb[36].mxu0  ;;  %v2399_v27 = vmul.f32 1.442695, %v2275_v14 }
 0x2d5   :  { %v6387_v49 = vpop.eup %6386  ;;  %6404 = vrcp.f32 %v2478_v31  ;;  %v2205_v54 = vadd.f32 %v7359_v24, %v1904_v15  ;;  %v1906_v7 = vpop.f32.mrb[37].mxu0 }
 0x2d6   :  { %v7465_v6 = vpop.eup %6388  ;;  %6406 = vrcp.f32 %v2479_v47  ;;  %v2206_v0 = vadd.f32 %v7364_v35, %v1906_v7  ;;  %v1908_v53 = vpop.f32.mrb[38].mxu0 }
 0x2d7   :  { %v6391_v25 = vpop.eup %6390  ;;  %6408 = vpow2.f32 %v2391_v48  ;;  %v2277_v57 = vsub.f32 0.0, %v2205_v54  ;;  %v2208_v16 = vadd.f32 %v7359_v24, %v1908_v53  ;;  %v1910_v28 = vpop.f32.mrb[39].mxu0  ;;  %v2598_v9 = vmax.f32 %v7461_v50, %v7465_v6 }
 0x2d8   :  { %v6393_v52 = vpop.eup %6392  ;;  %6410 = vpow2.f32 %v2393_v42  ;;  %v2278_v3 = vsub.f32 0.0, %v2206_v0  ;;  %v2209_v11 = vadd.f32 %v7364_v35, %v1910_v28  ;;  %v7472_v51 = vmax.f32 %v6387_v49, %v6391_v25 }
 0x2d9   :  { %v6395_v14 = vpop.eup %6394  ;;  %v2481_v31 = vadd.f32 1.0, %v6393_v52  ;;  %6412 = vpow2.f32 %v2397_v62  ;;  %v2280_v47 = vsub.f32 0.0, %v2208_v16  ;;  %v2403_v20 = vmul.f32 1.442695, %v2277_v57 }
 0x2da   :  { %v6397_v15 = vpop.eup %6396  ;;  %v2482_v48 = vadd.f32 1.0, %v6395_v14  ;;  %6414 = vpow2.f32 %v2399_v27  ;;  %v2281_v54 = vsub.f32 0.0, %v2209_v11  ;;  %v5857_v42 = vpack.i.bf16 %v2600_v19, %v7472_v51 }
 0x2db   :  { %v6399_v7 = vpop.eup %6398  ;;  %6416 = vrcp.f32 %v2481_v31  ;;  %v2484_v53 = vadd.f32 1.0, %v6397_v15  ;;  %v2405_v0 = vmul.f32 1.442695, %v2278_v3  ;;  %v2409_v62 = vmul.f32 1.442695, %v2280_v47 }
 0x2dc   :  { %6418 = vrcp.f32 %v2482_v48  ;;  %v2485_v49 = vadd.f32 1.0, %v6399_v7  ;;  %v1914_v25 = vpop.f32.mrb[40].mxu0  ;;  %5858 = vrot.lane.b32.xlu0 %v5857_v42, %s6629_s1  ;;  %v2411_v57 = vmul.f32 1.442695, %v2281_v54 }
 0x2dd   :  { %v7478_v28 = vpop.eup %6400  ;;  %6420 = vrcp.f32 %v2484_v53  ;;  %v2211_v27 = vadd.f32 %v7359_v24, %v1914_v25  ;;  %v1916_v16 = vpop.f32.mrb[41].mxu0 }
 0x2de   :  { %v6403_v52 = vpop.eup %6402  ;;  %6422 = vrcp.f32 %v2485_v49  ;;  %v2212_v11 = vadd.f32 %v7364_v35, %v1916_v16  ;;  %v1918_v23 = vpop.f32.mrb[42].mxu0 }
 0x2df   :  { %v7483_v26 = vpop.eup %6404  ;;  %6424 = vpow2.f32 %v2403_v20  ;;  %v2283_v19 = vsub.f32 0.0, %v2211_v27  ;;  %v2214_v3 = vadd.f32 %v7359_v24, %v1918_v23  ;;  %v1920_v14 = vpop.f32.mrb[43].mxu0 }
 0x2e0   :  { %v6407_v31 = vpop.eup %6406  ;;  %6426 = vpow2.f32 %v2405_v0  ;;  %v2284_v47 = vsub.f32 0.0, %v2212_v11  ;;  %v2215_v15 = vadd.f32 %v7364_v35, %v1920_v14  ;;  %v2601_v48 = vmax.f32 %v7478_v28, %v7483_v26  ;;  %v6027_v28 = vld [vmem:[#allocation4 + $0x90] ss:$8 sps:$4 sm:$0xff]   ;;  %v6032_v26 = vld [vmem:[#allocation4 + $0xa4] ss:$8 sps:$4 sm:$0xff]  }
 0x2e1   :  { %v6409_v7 = vpop.eup %6408  ;;  %6428 = vpow2.f32 %v2409_v62  ;;  %v2415_v54 = vmul.f32 1.442695, %v2283_v19  ;;  %v2286_v53 = vsub.f32 0.0, %v2214_v3  ;;  %v7489_v42 = vmax.f32 %v6403_v52, %v6407_v31 }
 0x2e2   :  { %v6411_v49 = vpop.eup %6410  ;;  %v2487_v20 = vadd.f32 1.0, %v6409_v7  ;;  %6430 = vpow2.f32 %v2411_v57  ;;  %v2287_v25 = vsub.f32 0.0, %v2215_v15  ;;  %v7906_v0 = vmax.f32 %v7320_v41, %v7324_v45 }
 0x2e3   :  { %v6413_v27 = vpop.eup %6412  ;;  %v2488_v16 = vadd.f32 1.0, %v6411_v49  ;;  %6432 = vpow2.f32 %v2415_v54  ;;  %v2417_v62 = vmul.f32 1.442695, %v2284_v47  ;;  %v2421_v31 = vmul.f32 1.442695, %v2286_v53 }
 0x2e4   :  { %v5862_v11 = vpack.i.bf16 %v7906_v0, %v7489_v42  ;;  %v6415_v23 = vpop.eup %6414  ;;  %6434 = vrcp.f32 %v2487_v20  ;;  %v2490_v14 = vadd.f32 1.0, %v6413_v27  ;;  %v1924_v19 = vpop.f32.mrb[44].mxu0  ;;  %v2423_v54 = vmul.f32 1.442695, %v2287_v25 }
 0x2e5   :  { %v7495_v3 = vpop.eup %6416  ;;  %6436 = vrcp.f32 %v2488_v16  ;;  %v2491_v52 = vadd.f32 1.0, %v6415_v23  ;;  %v5468_v57 = vadd.f32 %v1924_v19, %v7165_v32  ;;  %v1926_v15 = vpop.f32.mrb[45].mxu0 }
 0x2e6   :  { %5863 = vrot.lane.b32.xlu1 %v5862_v11, %s6629_s1  ;;  %v6419_v7 = vpop.eup %6418  ;;  %6438 = vrcp.f32 %v2490_v14  ;;  %v5469_v41 = vadd.f32 %v1926_v15, %v7168_v34  ;;  %v1928_v45 = vpop.f32.mrb[46].mxu0 }
 0x2e7   :  { %v7500_v49 = vpop.eup %6420  ;;  %6440 = vrcp.f32 %v2491_v52  ;;  %v2217_v47 = vadd.f32 %v5468_v57, %v7359_v24  ;;  %v5470_v20 = vadd.f32 %v1928_v45, %v7170_v36  ;;  %v1930_v27 = vpop.f32.mrb[47].mxu0 }
 0x2e8   :  { %v6423_v53 = vpop.eup %6422  ;;  %6442 = vpow2.f32 %v2417_v62  ;;  %v2218_v16 = vadd.f32 %v5469_v41, %v7364_v35  ;;  %v5471_v32 = vadd.f32 %v1930_v27, %v7172_v37  ;;  %v2604_v25 = vmax.f32 %v7495_v3, %v7500_v49 }
 0x2e9   :  { %v6425_v0 = vpop.eup %6424  ;;  %6444 = vpow2.f32 %v2421_v31  ;;  %v2289_v34 = vsub.f32 0.0, %v2217_v47  ;;  %v2220_v11 = vadd.f32 %v5470_v20, %v7359_v24  ;;  %v7509_v23 = vmax.f32 %v6419_v7, %v6423_v53 }
 0x2ea   :  { %v6427_v14 = vpop.eup %6426  ;;  %v2493_v19 = vadd.f32 1.0, %v6425_v0  ;;  %6446 = vpow2.f32 %v2423_v54  ;;  %v2290_v36 = vsub.f32 0.0, %v2218_v16  ;;  %v2221_v62 = vadd.f32 %v5471_v32, %v7364_v35 }
 0x2eb   :  { %v6429_v52 = vpop.eup %6428  ;;  %v2494_v57 = vadd.f32 1.0, %v6427_v14  ;;  %v2292_v15 = vsub.f32 0.0, %v2220_v11  ;;  %v7907_v37 = vmax.f32 %v7318_v12, %v7322_v44  ;;  %v2427_v20 = vmul.f32 1.442695, %v2289_v34 }
 0x2ec   :  { %v6431_v31 = vpop.eup %6430  ;;  %6448 = vrcp.f32 %v2493_v19  ;;  %v2496_v45 = vadd.f32 1.0, %v6429_v52  ;;  %v2293_v24 = vsub.f32 0.0, %v2221_v62  ;;  %v2429_v27 = vmul.f32 1.442695, %v2290_v36 }
 0x2ed   :  { %v5867_v41 = vpack.i.bf16 %v7907_v37, %v7509_v23  ;;  %v6433_v7 = vpop.eup %6432  ;;  %6450 = vrcp.f32 %v2494_v57  ;;  %v2497_v47 = vadd.f32 1.0, %v6431_v31  ;;  %v2433_v16 = vmul.f32 1.442695, %v2292_v15 }
 0x2ee   :  { %v7517_v54 = vpop.eup %6434  ;;  %6452 = vrcp.f32 %v2496_v45  ;;  %v2499_v35 = vadd.f32 1.0, %v6433_v7  ;;  %v7908_v12 = vmax.f32 %v7268_v8, %v7272_v17  ;;  %v2435_v0 = vmul.f32 1.442695, %v2293_v24 }
 0x2ef   :  { %5868 = vrot.lane.b32.xlu0 %v5867_v41, %s6629_s1  ;;  %v6437_v53 = vpop.eup %6436  ;;  %6454 = vrcp.f32 %v2497_v47  ;;  %v7909_v52 = vmax.f32 %v7332_v59, %v7336_v61 }
 0x2f0   :  { %v5877_v44 = vpack.i.bf16 %v7908_v12, %v7390_v30  ;;  %v7523_v32 = vpop.eup %6438  ;;  %6456 = vrcp.f32 %v2499_v35  ;;  %v7910_v35 = vmax.f32 %v7330_v58, %v7334_v60  ;;  %v7911_v60 = vmax.f32 %v7344_v2, %v7348_v5 }
 0x2f1   :  { %v6441_v34 = vpop.eup %6440  ;;  %6458 = vpow2.f32 %v2427_v20  ;;  %v2607_v11 = vmax.f32 %v7517_v54, %v7523_v32 }
 0x2f2   :  { %v6443_v14 = vpop.eup %6442  ;;  %6460 = vpow2.f32 %v2429_v27  ;;  %v7528_v19 = vmax.f32 %v6437_v53, %v6441_v34 }
 0x2f3   :  { %5878 = vrot.lane.b32.xlu0 %v5877_v44, %s6629_s1  ;;  %v6445_v36 = vpop.eup %6444  ;;  %v2500_v62 = vadd.f32 1.0, %v6443_v14  ;;  %6462 = vpow2.f32 %v2433_v16 }
 0x2f4   :  { %v6447_v8 = vpop.eup %6446  ;;  %v2502_v17 = vadd.f32 1.0, %v6445_v36  ;;  %6464 = vpow2.f32 %v2435_v0  ;;  %v5872_v57 = vpack.i.bf16 %v7909_v52, %v7528_v19 }
 0x2f5   :  { %6466 = vrcp.f32 %v2500_v62  ;;  %v2503_v15 = vadd.f32 1.0, %v6447_v8 }
 0x2f6   :  { %v7534_v37 = vpop.eup %6448  ;;  %6468 = vrcp.f32 %v2502_v17  ;;  %5873 = vrot.lane.b32.xlu1 %v5872_v57, %s6629_s1 }
 0x2f7   :  { %v6451_v41 = vpop.eup %6450  ;;  %6470 = vrcp.f32 %v2503_v15 }
 0x2f8   :  { %v7537_v31 = vpop.eup %6452 }
 0x2f9   :  { %v6455_v45 = vpop.eup %6454  ;;  %v2610_v24 = vmax.f32 %v7534_v37, %v7537_v31  ;;  %v6039_v37 = vld [vmem:[#allocation4 + $0x190] ss:$8 sps:$4 sm:$0xff]   ;;  %v6044_v31 = vld [vmem:[#allocation4 + $0x1a4] ss:$8 sps:$4 sm:$0xff]  }
 0x2fa   :  { %v7541_v7 = vpop.eup %6456  ;;  %v7543_v47 = vmax.f32 %v6451_v41, %v6455_v45 }
 0x2fb   :  { %v6459_v59 = vpop.eup %6458 }
 0x2fc   :  { %v6461_v61 = vpop.eup %6460  ;;  %v2505_v20 = vadd.f32 1.0, %v6459_v59  ;;  %v5882_v27 = vpack.i.bf16 %v7910_v35, %v7543_v47  ;;  %v7912_v59 = vmax.f32 %v7342_v1, %v7346_v4  ;;  %v7913_v4 = vmax.f32 %v7394_v56, %v7396_v40  ;;  %v6008_v56 = vld [vmem:[#allocation4 + $0x24] ss:$8 sps:$4 sm:$0xff]  }
 0x2fd   :  { %v6463_v53 = vpop.eup %6462  ;;  %v2506_v16 = vadd.f32 1.0, %v6461_v61 }
 0x2fe   :  { %v6465_v12 = vpop.eup %6464  ;;  %6472 = vrcp.f32 %v2505_v20  ;;  %v2508_v44 = vadd.f32 1.0, %v6463_v53  ;;  %5883 = vrot.lane.b32.xlu1 %v5882_v27, %s6629_s1 }
 0x2ff   :  { %v6467_v0 = vpop.eup %6466  ;;  %6474 = vrcp.f32 %v2506_v16  ;;  %v2509_v34 = vadd.f32 1.0, %v6465_v12 }
 0x300   :  { %v7550_v14 = vpop.eup %6468  ;;  %6476 = vrcp.f32 %v2508_v44 }
 0x301   :  { %v6471_v36 = vpop.eup %6470  ;;  %6478 = vrcp.f32 %v2509_v34  ;;  %v2613_v62 = vmax.f32 %v7541_v7, %v7550_v14  ;;  %v7914_v34 = vmax.f32 %v7406_v43, %v7412_v46  ;;  %v6006_v46 = vld [vmem:[#allocation4 + $0x20] ss:$8 sps:$4 sm:$0xff]   ;;  %v6045_v7 = vld [vmem:[#allocation4 + $0x1b0] ss:$8 sps:$4 sm:$0xff]  }
 0x302   :  { %v7554_v58 = vmax.f32 %v6467_v0, %v6471_v36 }
 0x304   :  { %v5887_v8 = vpack.i.bf16 %v7911_v60, %v7554_v58 }
 0x306   :  { %5888 = vrot.lane.b32.xlu0 %v5887_v8, %s6629_s1  ;;  %v6000_v8 = vld [vmem:[#allocation4] ss:$8 sps:$4 sm:$0xff]  }
 0x308   :  { %v7561_v17 = vpop.eup %6472 }
 0x309   :  { %v6475_v52 = vpop.eup %6474 }
 0x30a   :  { %v7563_v57 = vpop.eup %6476 }
 0x30b   :  { %v6479_v15 = vpop.eup %6478  ;;  %v2616_v41 = vmax.f32 %v7561_v17, %v7563_v57  ;;  %v6059_v17 = vld [vmem:[#allocation4 + $0x1f4] ss:$8 sps:$4 sm:$0xff]   ;;  %v6057_v57 = vld [vmem:[#allocation4 + $0x1f0] ss:$8 sps:$4 sm:$0xff]  }
 0x30c   :  { %v7567_v45 = vmax.f32 %v6475_v52, %v6479_v15  ;;  %v6005_v52 = vld [vmem:[#allocation4 + $0x14] ss:$8 sps:$4 sm:$0xff]  }
 0x30e   :  { %v5892_v61 = vpack.i.bf16 %v7912_v59, %v7567_v45 }
 0x310   :  { %5893 = vrot.lane.b32.xlu1 %v5892_v61, %s6629_s1  ;;  %v7915_v61 = vmax.f32 %v7427_v39, %v7430_v63  ;;  %v7916_v39 = vmax.f32 %v7444_v10, %v7448_v13 }
 0x32f   :  { %v5839_v2 = vpop.permute.xlu0 %5838 }
 0x330   :  { %v5841_v5 = vunpack.i.h.bf16 %v5839_v2  ;;  %v5840_v20 = vunpack.i.l.bf16 %v5839_v2 }
 0x332   :  { %v2693_v27 = vsel %vm2691_vm2, %v5840_v20, %v5841_v5  ;;  %v7576_v12 = vmax.f32 %v7402_v29, %v5841_v5  ;;  %v6011_v5 = vld [vmem:[#allocation4 + $0x34] ss:$8 sps:$4 sm:$0xff]  }
 0x333   :  { %v7585_v0 = vmax.f32 %v7913_v4, %v2693_v27  ;;  %v6009_v27 = vld [vmem:[#allocation4 + $0x30] ss:$8 sps:$4 sm:$0xff]  }
 0x335   :  { %v5844_v35 = vpop.permute.xlu0 %5843 }
 0x336   :  { %v5846_v53 = vunpack.i.h.bf16 %v5844_v35  ;;  %v5845_v16 = vunpack.i.l.bf16 %v5844_v35 }
 0x338   :  { %v7579_v44 = vmax.f32 %v7420_v33, %v5846_v53  ;;  %v2694_v1 = vsel %vm2691_vm2, %v5845_v16, %v5846_v53  ;;  %v6003_v33 = vld [vmem:[#allocation4 + $0x10] ss:$8 sps:$4 sm:$0xff]  }
 0x339   :  { %v2732_v36 = vmax.f32 %v7914_v34, %v2694_v1  ;;  %v6014_v1 = vld [vmem:[#allocation4 + $0x44] ss:$8 sps:$4 sm:$0xff]  }
 0x33a   :  { %v5131_v60 = vpack.c.bf16 %v7579_v44, %v7576_v12 }
 0x33b   :  { %v5130_v29 = vpack.c.bf16 %v2732_v36, %v7585_v0 }
 0x33c   :  { %4949 = vmatprep.mubr.msk.bf16.mxu1 %vm2691_vm2, %v5131_v60 }
 0x33d   :  { %3038 = vmatmul.mubr.bf16.vlgmr.msra.gmra.mrb[28].mxu1 %v5130_v29 }
 0x33e   :  { %3223 = vmatpush1.bf16.msra.mxu1 %v6000_v8  ;;  %v6012_v8 = vld [vmem:[#allocation4 + $0x40] ss:$8 sps:$4 sm:$0xff]  }
 0x33f   :  { %v5849_v15 = vpop.permute.xlu1 %5848  ;;  %3224 = vmatprep.subr.bf16.mxu1 %v6005_v52  ;;  %v6015_v52 = vld [vmem:[#allocation4 + $0x50] ss:$8 sps:$4 sm:$0xff]  }
 0x340   :  { %v5851_v40 = vunpack.i.h.bf16 %v5849_v15  ;;  %v5850_v59 = vunpack.i.l.bf16 %v5849_v15 }
 0x342   :  { %v2695_v43 = vsel %vm2691_vm2, %v5850_v59, %v5851_v40  ;;  %3225 = vmatpush1.bf16.msra.mxu1 %v6003_v33  ;;  %v7601_v4 = vmax.f32 %v7437_v22, %v5851_v40  ;;  %v6017_v22 = vld [vmem:[#allocation4 + $0x54] ss:$8 sps:$4 sm:$0xff]   ;;  %v6020_v33 = vld [vmem:[#allocation4 + $0x64] ss:$8 sps:$4 sm:$0xff]  }
 0x343   :  { %3226 = vmatprep.subr.bf16.mxu1 %v6008_v56  ;;  %v2734_v2 = vmax.f32 %v7915_v61, %v2695_v43  ;;  %v6018_v56 = vld [vmem:[#allocation4 + $0x60] ss:$8 sps:$4 sm:$0xff]   ;;  %v6023_v59 = vld [vmem:[#allocation4 + $0x74] ss:$8 sps:$4 sm:$0xff]   ;;  %v6021_v61 = vld [vmem:[#allocation4 + $0x70] ss:$8 sps:$4 sm:$0xff]  }
 0x345   :  { %v7598_v20 = vpack.c.bf16 %v2734_v2, %v2732_v36 }
 0x346   :  { %v5854_v35 = vpop.permute.xlu1 %5853  ;;  %3227 = vmatpush1.bf16.msra.mxu1 %v6006_v46 }
 0x347   :  { %v5856_v53 = vunpack.i.h.bf16 %v5854_v35  ;;  %v5855_v16 = vunpack.i.l.bf16 %v5854_v35  ;;  %3228 = vmatprep.subr.bf16.mxu1 %v6011_v5  ;;  %v6026_v35 = vld [vmem:[#allocation4 + $0x84] ss:$8 sps:$4 sm:$0xff]  }
 0x349   :  { %v7604_v34 = vmax.f32 %v7455_v38, %v5856_v53  ;;  %v2696_v60 = vsel %vm2691_vm2, %v5855_v16, %v5856_v53  ;;  %v6024_v16 = vld [vmem:[#allocation4 + $0x80] ss:$8 sps:$4 sm:$0xff]  }
 0x34a   :  { %v2736_v63 = vmax.f32 %v7916_v39, %v2696_v60  ;;  %3229 = vmatpush1.bf16.msra.mxu1 %v6009_v27 }
 0x34b   :  { %v7612_v36 = vpack.c.bf16 %v7604_v34, %v7601_v4  ;;  %3230 = vmatprep.subr.bf16.mxu1 %v6014_v1 }
 0x34c   :  { %v7614_v29 = vpack.c.bf16 %v2736_v63, %v2734_v2 }
 0x34d   :  { %4950 = vmatprep.mubr.msk.bf16.mxu1 %vm2691_vm2, %v7612_v36 }
 0x34e   :  { %3048 = vmatmul.mubr.bf16.gmra.mrb[32].mxu1 %v7614_v29  ;;  %v5859_v38 = vpop.permute.xlu0 %5858 }
 0x34f   :  { %3231 = vmatpush1.bf16.msra.mxu1 %v6012_v8  ;;  %v5861_v10 = vunpack.i.h.bf16 %v5859_v38  ;;  %v5860_v13 = vunpack.i.l.bf16 %v5859_v38 }
 0x350   :  { %3232 = vmatprep.subr.bf16.mxu1 %v6017_v22 }
 0x351   :  { %v2697_v15 = vsel %vm2691_vm2, %v5860_v13, %v5861_v10  ;;  %v7626_v27 = vmax.f32 %v7472_v51, %v5861_v10  ;;  %v6029_v51 = vld [vmem:[#allocation4 + $0x94] ss:$8 sps:$4 sm:$0xff]  }
 0x352   :  { %v2738_v40 = vmax.f32 %v2598_v9, %v2697_v15  ;;  %v6035_v10 = vld [vmem:[#allocation4 + $0xb4] ss:$8 sps:$4 sm:$0xff]   ;;  %v7917_v15 = vmax.f32 %v7382_v55, %v7384_v18 }
 0x353   :  { %3233 = vmatpush1.bf16.msra.mxu1 %v6015_v52  ;;  %v6030_v52 = vld [vmem:[#allocation4 + $0xa0] ss:$8 sps:$4 sm:$0xff]  }
 0x354   :  { %3234 = vmatprep.subr.bf16.mxu1 %v6020_v33  ;;  %v7623_v43 = vpack.c.bf16 %v2738_v40, %v2736_v63 }
 0x357   :  { %3235 = vmatpush1.bf16.msra.mxu1 %v6018_v56 }
 0x358   :  { %v5864_v46 = vpop.permute.xlu1 %5863  ;;  %3236 = vmatprep.subr.bf16.mxu1 %v6023_v59  ;;  %v6033_v59 = vld [vmem:[#allocation4 + $0xb0] ss:$8 sps:$4 sm:$0xff]  }
 0x359   :  { %v5866_v2 = vunpack.i.h.bf16 %v5864_v46  ;;  %v5865_v5 = vunpack.i.l.bf16 %v5864_v46  ;;  %v6038_v46 = vld [vmem:[#allocation4 + $0x184] ss:$8 sps:$4 sm:$0xff]  }
 0x35b   :  { %v7629_v53 = vmax.f32 %v7489_v42, %v5866_v2  ;;  %v2698_v50 = vsel %vm2691_vm2, %v5865_v5, %v5866_v2  ;;  %3237 = vmatpush1.bf16.msra.mxu1 %v6021_v61 }
 0x35c   :  { %v2740_v6 = vmax.f32 %v2601_v48, %v2698_v50  ;;  %3238 = vmatprep.subr.bf16.mxu1 %v6026_v35  ;;  %v6041_v50 = vld [vmem:[#allocation4 + $0x194] ss:$8 sps:$4 sm:$0xff]  }
 0x35d   :  { %v7637_v9 = vpack.c.bf16 %v7629_v53, %v7626_v27 }
 0x35e   :  { %v7639_v1 = vpack.c.bf16 %v2740_v6, %v2738_v40 }
 0x35f   :  { %4951 = vmatprep.mubr.msk.bf16.mxu1 %vm2691_vm2, %v7637_v9  ;;  %3239 = vmatpush1.bf16.msra.mxu1 %v6024_v16  ;;  %v5141_v16 = vpack.c.bf16 %v7601_v4, %v7579_v44  ;;  %v6042_v4 = vld [vmem:[#allocation4 + $0x1a0] ss:$8 sps:$4 sm:$0xff]  }
 0x360   :  { %3058 = vmatmul.mubr.bf16.gmra.mrb[36].mxu1 %v7639_v1  ;;  %3240 = vmatprep.subr.bf16.mxu1 %v6029_v51 }
 0x361   :  { %v5869_v42 = vpop.permute.xlu0 %5868 }
 0x362   :  { %v5871_v60 = vunpack.i.h.bf16 %v5869_v42  ;;  %v5870_v39 = vunpack.i.l.bf16 %v5869_v42 }
 0x363   :  { %3241 = vmatpush1.bf16.msra.mxu1 %v6027_v28 }
 0x364   :  { %v2699_v48 = vsel %vm2691_vm2, %v5870_v39, %v5871_v60  ;;  %3242 = vmatprep.subr.bf16.mxu1 %v6032_v26  ;;  %v2743_v61 = vmax.f32 %v7509_v23, %v5871_v60  ;;  %v6047_v39 = vld [vmem:[#allocation4 + $0x1b4] ss:$8 sps:$4 sm:$0xff]   ;;  %v7708_v26 = vpack.c.bf16 %v7626_v27, %v7604_v34  ;;  %v6048_v27 = vld [vmem:[#allocation4 + $0x1c0] ss:$8 sps:$4 sm:$0xff]  }
 0x365   :  { %v5879_v63 = vpop.permute.xlu0 %5878  ;;  %v2742_v8 = vmax.f32 %v2604_v25, %v2699_v48 }
 0x366   :  { %v5881_v22 = vunpack.i.h.bf16 %v5879_v63  ;;  %v5880_v38 = vunpack.i.l.bf16 %v5879_v63 }
 0x367   :  { %v7648_v13 = vpack.c.bf16 %v2742_v8, %v2740_v6  ;;  %3243 = vmatpush1.bf16.msra.mxu1 %v6030_v52 }
 0x368   :  { %v2692_v33 = vsel %vm2691_vm2, %v5880_v38, %v5881_v22  ;;  %v5874_v40 = vpop.permute.xlu1 %5873  ;;  %3244 = vmatprep.subr.bf16.mxu1 %v6035_v10  ;;  %v2729_v2 = vmax.f32 %v7390_v30, %v5881_v22  ;;  %v7726_v38 = vpack.c.bf16 %v2743_v61, %v7629_v53  ;;  %v6051_v10 = vld [vmem:[#allocation4 + $0x1d0] ss:$8 sps:$4 sm:$0xff]   ;;  %v6060_v53 = vld [vmem:[#allocation4 + $0x200] ss:$8 sps:$4 sm:$0xff]  }
 0x369   :  { %v2728_v56 = vmax.f32 %v7917_v15, %v2692_v33  ;;  %v5876_v49 = vunpack.i.h.bf16 %v5874_v40  ;;  %v5875_v25 = vunpack.i.l.bf16 %v5874_v40  ;;  %v6056_v33 = vld [vmem:[#allocation4 + $0x1e4] ss:$8 sps:$4 sm:$0xff]   ;;  %v6054_v15 = vld [vmem:[#allocation4 + $0x1e0] ss:$8 sps:$4 sm:$0xff]   ;;  %v6063_v40 = vld [vmem:[#allocation4 + $0x210] ss:$8 sps:$4 sm:$0xff]  }
 0x36a   :  { %v5139_v23 = vpack.c.bf16 %v7576_v12, %v2729_v2  ;;  %v6036_v12 = vld [vmem:[#allocation4 + $0x180] ss:$8 sps:$4 sm:$0xff]   ;;  %v6069_v2 = vld [vmem:[#allocation4 + $0x230] ss:$8 sps:$4 sm:$0xff]  }
 0x36b   :  { %v5138_v3 = vpack.c.bf16 %v7585_v0, %v2728_v56  ;;  %v7658_v5 = vmax.f32 %v7528_v19, %v5876_v49  ;;  %v2700_v35 = vsel %vm2691_vm2, %v5875_v25, %v5876_v49  ;;  %3245 = vmatpush1.bf16.msra.mxu1 %v6033_v59  ;;  %v6065_v56 = vld [vmem:[#allocation4 + $0x214] ss:$8 sps:$4 sm:$0xff]   ;;  %v6068_v59 = vld [vmem:[#allocation4 + $0x224] ss:$8 sps:$4 sm:$0xff]  }
 0x36c   :  { %v2744_v55 = vmax.f32 %v2607_v11, %v2700_v35  ;;  %3450 = vmatprep.subr.bf16.mxu1 %v6038_v46  ;;  %v6071_v49 = vld [vmem:[#allocation4 + $0x234] ss:$8 sps:$4 sm:$0xff]   ;;  %v6144_v25 = vld [vmem:[#allocation6 + $0xc0] sm:$0xff]  }
 0x36d   :  { %v7665_v18 = vpack.c.bf16 %v7658_v5, %v2743_v61  ;;  %v6145_v46 = vld [vmem:[#allocation6 + $0x80] sm:$0xff]   ;;  %v6146_v61 = vld [vmem:[#allocation6 + $0xc8] sm:$0xff]   ;;  %5244 = vmatprep.subr.bf16.mxu0 %v6144_v25  ;;  %v6125_v25 = vld [vmem:[#allocation4 + $0x354] ss:$8 sps:$4 sm:$0xff]  }
 0x36e   :  { %v7667_v0 = vpack.c.bf16 %v2744_v55, %v2742_v8  ;;  %v6053_v8 = vld [vmem:[#allocation4 + $0x1d4] ss:$8 sps:$4 sm:$0xff]   ;;  %v6074_v35 = vld [vmem:[#allocation4 + $0x244] ss:$8 sps:$4 sm:$0xff]   ;;  %5245 = vmatpush3.bf16.msra.mxu0 %v6145_v46 }
 0x36f   :  { %4952 = vmatprep.mubr.msk.bf16.mxu1 %vm2691_vm2, %v7665_v18  ;;  %5246 = vmatprep.subr.bf16.mxu0 %v6146_v61  ;;  %v6126_v61 = vld [vmem:[#allocation4 + $0x360] ss:$8 sps:$4 sm:$0xff]  }
 0x370   :  { %3068 = vmatmul.mubr.bf16.gmra.mrb[40].mxu1 %v7667_v0  ;;  %v7673_v30 = vpop.permute.xlu1 %5883 }
 0x371   :  { %v5886_v19 = vunpack.i.h.bf16 %v7673_v30  ;;  %v5885_v54 = vunpack.i.l.bf16 %v7673_v30  ;;  %4985 = vmatprep.mubr.msk.bf16.mxu1 %vm2691_vm2, %v5139_v23  ;;  %v6148_v23 = vld [vmem:[#allocation6 + $0xd0] sm:$0xff]   ;;  %v6092_v30 = vld [vmem:[#allocation4 + $0x2a4] ss:$8 sps:$4 sm:$0xff]  }
 0x373   :  { %v2701_v32 = vsel %vm2691_vm2, %v5885_v54, %v5886_v19  ;;  %v6072_v54 = vld [vmem:[#allocation4 + $0x240] ss:$8 sps:$4 sm:$0xff]  }
 0x374   :  { %v7684_v11 = vmax.f32 %v2610_v24, %v2701_v32  ;;  %v6077_v32 = vld [vmem:[#allocation4 + $0x254] ss:$8 sps:$4 sm:$0xff]  }
 0x376   :  { %v7687_v6 = vpack.c.bf16 %v7684_v11, %v2744_v55  ;;  %v6147_v55 = vld [vmem:[#allocation6 + $0x88] sm:$0xff]  }
 0x377   :  { %5247 = vmatpush3.bf16.msra.mxu0 %v6147_v55  ;;  %v6140_v55 = vld [vmem:[#allocation4 + $0x3a4] ss:$8 sps:$4 sm:$0xff]  }
 0x378   :  { %3255 = vmatmul.mubr.bf16.vlgmr.msra.gmra.mrb[28].mxu1 %v5138_v3  ;;  %v7691_v51 = vpop.permute.xlu0 %5888  ;;  %v6066_v3 = vld [vmem:[#allocation4 + $0x220] ss:$8 sps:$4 sm:$0xff]   ;;  %5248 = vmatprep.subr.bf16.mxu0 %v6148_v23 }
 0x379   :  { %3451 = vmatpush1.bf16.msra.mxu1 %v6036_v12  ;;  %v5891_v42 = vunpack.i.h.bf16 %v7691_v51  ;;  %v5890_v60 = vunpack.i.l.bf16 %v7691_v51  ;;  %4986 = vmatprep.mubr.msk.bf16.mxu1 %vm2691_vm2, %v5141_v16  ;;  %v6149_v12 = vld [vmem:[#allocation6 + $0x90] sm:$0xff]   ;;  %v6138_v23 = vld [vmem:[#allocation4 + $0x3a0] ss:$8 sps:$4 sm:$0xff]  }
 0x37a   :  { %3452 = vmatprep.subr.bf16.mxu1 %v6041_v50  ;;  %v6075_v50 = vld [vmem:[#allocation4 + $0x250] ss:$8 sps:$4 sm:$0xff]   ;;  %v6131_v51 = vld [vmem:[#allocation4 + $0x374] ss:$8 sps:$4 sm:$0xff]  }
 0x37b   :  { %v2702_v24 = vsel %vm2691_vm2, %v5890_v60, %v5891_v42  ;;  %5249 = vmatpush3.bf16.msra.mxu0 %v6149_v12  ;;  %v6078_v60 = vld [vmem:[#allocation4 + $0x260] ss:$8 sps:$4 sm:$0xff]   ;;  %v6150_v12 = vld [vmem:[#allocation6 + $0xd8] sm:$0xff]  }
 0x37c   :  { %v7702_v44 = vmax.f32 %v2613_v62, %v2702_v24  ;;  %v6050_v62 = vld [vmem:[#allocation4 + $0x1c4] ss:$8 sps:$4 sm:$0xff]   ;;  %v7744_v24 = vmax.f32 %v7543_v47, %v5886_v19  ;;  %v6090_v47 = vld [vmem:[#allocation4 + $0x2a0] ss:$8 sps:$4 sm:$0xff]   ;;  %v6095_v19 = vld [vmem:[#allocation4 + $0x2b4] ss:$8 sps:$4 sm:$0xff]   ;;  %5250 = vmatprep.subr.bf16.mxu0 %v6150_v12 }
 0x37d   :  { %3453 = vmatpush1.bf16.msra.mxu1 %v6039_v37  ;;  %v6083_v37 = vld [vmem:[#allocation4 + $0x274] ss:$8 sps:$4 sm:$0xff]  }
 0x37e   :  { %3454 = vmatprep.subr.bf16.mxu1 %v6044_v31  ;;  %v5148_v28 = vpack.c.bf16 %v7702_v44, %v7684_v11  ;;  %v6086_v31 = vld [vmem:[#allocation4 + $0x284] ss:$8 sps:$4 sm:$0xff]   ;;  %v6143_v11 = vld [vmem:[#allocation4 + $0x3b4] ss:$8 sps:$4 sm:$0xff]  }
 0x380   :  { %3265 = vmatmul.mubr.bf16.gmra.mrb[32].mxu1 %v7598_v20 }
 0x381   :  { %3455 = vmatpush1.bf16.msra.mxu1 %v6042_v4  ;;  %4987 = vmatprep.mubr.msk.bf16.mxu1 %vm2691_vm2, %v7708_v26  ;;  %v6084_v4 = vld [vmem:[#allocation4 + $0x280] ss:$8 sps:$4 sm:$0xff]  }
 0x382   :  { %v7713_v14 = vpop.permute.xlu1 %5893  ;;  %3456 = vmatprep.subr.bf16.mxu1 %v6047_v39  ;;  %v6089_v39 = vld [vmem:[#allocation4 + $0x294] ss:$8 sps:$4 sm:$0xff]  }
 0x383   :  { %v5896_v48 = vunpack.i.h.bf16 %v7713_v14  ;;  %v5895_v63 = vunpack.i.l.bf16 %v7713_v14  ;;  %v6151_v14 = vld [vmem:[#allocation6 + $0x98] sm:$0xff]  }
 0x384   :  { %5251 = vmatpush3.bf16.msra.mxu0 %v6151_v14 }
 0x385   :  { %v2703_v34 = vsel %vm2691_vm2, %v5895_v63, %v5896_v48  ;;  %3457 = vmatpush1.bf16.msra.mxu1 %v6045_v7  ;;  %v7748_v7 = vpack.c.bf16 %v7744_v24, %v7658_v5  ;;  %v6093_v5 = vld [vmem:[#allocation4 + $0x2b0] ss:$8 sps:$4 sm:$0xff]   ;;  %v6098_v63 = vld [vmem:[#allocation4 + $0x2c4] ss:$8 sps:$4 sm:$0xff]  }
 0x386   :  { %3458 = vmatprep.subr.bf16.mxu1 %v6050_v62  ;;  %v7723_v22 = vmax.f32 %v2616_v41, %v2703_v34  ;;  %v6062_v41 = vld [vmem:[#allocation4 + $0x204] ss:$8 sps:$4 sm:$0xff]   ;;  %v6087_v62 = vld [vmem:[#allocation4 + $0x290] ss:$8 sps:$4 sm:$0xff]   ;;  %v6096_v34 = vld [vmem:[#allocation4 + $0x2c0] ss:$8 sps:$4 sm:$0xff]  }
 0x388   :  { %3275 = vmatmul.mubr.bf16.gmra.mrb[36].mxu1 %v7623_v43  ;;  %v5150_v52 = vpack.c.bf16 %v7723_v22, %v7702_v44  ;;  %v6164_v44 = vld [vmem:[#allocation6 + $0x60] sm:$0xff]  }
 0x389   :  { %3459 = vmatpush1.bf16.msra.mxu1 %v6048_v27  ;;  %4988 = vmatprep.mubr.msk.bf16.mxu1 %vm2691_vm2, %v7726_v38  ;;  %v6101_v27 = vld [vmem:[#allocation4 + $0x2d4] ss:$8 sps:$4 sm:$0xff]   ;;  %v6165_v22 = vld [vmem:[#allocation6 + $0x20] sm:$0xff]  }
 0x38a   :  { %3460 = vmatprep.subr.bf16.mxu1 %v6053_v8  ;;  %v6099_v8 = vld [vmem:[#allocation4 + $0x2d0] ss:$8 sps:$4 sm:$0xff]  }
 0x38d   :  { %3461 = vmatpush1.bf16.msra.mxu1 %v6051_v10  ;;  %v6104_v10 = vld [vmem:[#allocation4 + $0x2e4] ss:$8 sps:$4 sm:$0xff]  }
 0x38e   :  { %3462 = vmatprep.subr.bf16.mxu1 %v6056_v33  ;;  %v6102_v33 = vld [vmem:[#allocation4 + $0x2e0] ss:$8 sps:$4 sm:$0xff]  }
 0x390   :  { %3285 = vmatmul.mubr.bf16.gmra.mrb[40].mxu1 %v7648_v13 }
 0x391   :  { %3463 = vmatpush1.bf16.msra.mxu1 %v6054_v15  ;;  %5015 = vmatprep.mubr.msk.bf16.mxu1 %vm2691_vm2, %v5141_v16  ;;  %v6080_v16 = vld [vmem:[#allocation4 + $0x264] ss:$8 sps:$4 sm:$0xff]   ;;  %v6107_v15 = vld [vmem:[#allocation4 + $0x2f4] ss:$8 sps:$4 sm:$0xff]  }
 0x392   :  { %3464 = vmatprep.subr.bf16.mxu1 %v6059_v17  ;;  %v6105_v17 = vld [vmem:[#allocation4 + $0x2f0] ss:$8 sps:$4 sm:$0xff]  }
 0x395   :  { %3465 = vmatpush1.bf16.msra.mxu1 %v6057_v57  ;;  %v6110_v57 = vld [vmem:[#allocation4 + $0x304] ss:$8 sps:$4 sm:$0xff]  }
 0x396   :  { %3466 = vmatprep.subr.bf16.mxu1 %v6062_v41  ;;  %v6113_v41 = vld [vmem:[#allocation4 + $0x314] ss:$8 sps:$4 sm:$0xff]  }
 0x399   :  { %3467 = vmatpush1.bf16.msra.mxu1 %v6060_v53  ;;  %v6111_v53 = vld [vmem:[#allocation4 + $0x310] ss:$8 sps:$4 sm:$0xff]  }
 0x39a   :  { %3468 = vmatprep.subr.bf16.mxu1 %v6065_v56  ;;  %v6116_v56 = vld [vmem:[#allocation4 + $0x324] ss:$8 sps:$4 sm:$0xff]  }
 0x39d   :  { %3469 = vmatpush1.bf16.msra.mxu1 %v6063_v40  ;;  %v6114_v40 = vld [vmem:[#allocation4 + $0x320] ss:$8 sps:$4 sm:$0xff]  }
 0x39e   :  { %3470 = vmatprep.subr.bf16.mxu1 %v6068_v59  ;;  %v6119_v59 = vld [vmem:[#allocation4 + $0x334] ss:$8 sps:$4 sm:$0xff]  }
 0x3a1   :  { %3471 = vmatpush1.bf16.msra.mxu1 %v6066_v3  ;;  %v6117_v3 = vld [vmem:[#allocation4 + $0x330] ss:$8 sps:$4 sm:$0xff]  }
 0x3a2   :  { %3472 = vmatprep.subr.bf16.mxu1 %v6071_v49  ;;  %v6120_v49 = vld [vmem:[#allocation4 + $0x340] ss:$8 sps:$4 sm:$0xff]  }
 0x3a5   :  { %3473 = vmatpush1.bf16.msra.mxu1 %v6069_v2  ;;  %v6137_v2 = vld [vmem:[#allocation4 + $0x394] ss:$8 sps:$4 sm:$0xff]  }
 0x3a6   :  { %3694 = vmatprep.subr.bf16.mxu1 %v6074_v35  ;;  %v6135_v35 = vld [vmem:[#allocation4 + $0x390] ss:$8 sps:$4 sm:$0xff]  }
 0x3a8   :  { %3483 = vmatmul.mubr.bf16.vlgmr.msra.gmra.mrb[28].mxu1 %v7598_v20  ;;  %v6081_v20 = vld [vmem:[#allocation4 + $0x270] ss:$8 sps:$4 sm:$0xff]  }
 0x3a9   :  { %5016 = vmatprep.mubr.msk.bf16.mxu1 %vm2691_vm2, %v7708_v26  ;;  %3695 = vmatpush1.bf16.msra.mxu1 %v6072_v54 }
 0x3aa   :  { %3696 = vmatprep.subr.bf16.mxu1 %v6077_v32  ;;  %v6157_v32 = vld [vmem:[#allocation6 + $0x8] sm:$0xff]  }
 0x3ad   :  { %3697 = vmatpush1.bf16.msra.mxu1 %v6075_v50  ;;  %v6162_v50 = vld [vmem:[#allocation6 + $0x18] sm:$0xff]  }
 0x3ae   :  { %3698 = vmatprep.subr.bf16.mxu1 %v6080_v16  ;;  %v6167_v16 = vld [vmem:[#allocation6 + $0x28] sm:$0xff]  }
 0x3b0   :  { %3493 = vmatmul.mubr.bf16.gmra.mrb[32].mxu1 %v7623_v43 }
 0x3b1   :  { %5017 = vmatprep.mubr.msk.bf16.mxu1 %vm2691_vm2, %v7726_v38  ;;  %3699 = vmatpush1.bf16.msra.mxu1 %v6078_v60  ;;  %v6153_v60 = vld [vmem:[#allocation6 + $0xe0] sm:$0xff]  }
 0x3b2   :  { %3700 = vmatprep.subr.bf16.mxu1 %v6083_v37  ;;  %v6155_v37 = vld [vmem:[#allocation6 + $0xa0] sm:$0xff]   ;;  %5252 = vmatprep.subr.bf16.mxu0 %v6153_v60 }
 0x3b3   :  { %5253 = vmatpush3.bf16.msra.mxu0 %v6155_v37 }
 0x3b5   :  { %3701 = vmatpush1.bf16.msra.mxu1 %v6081_v20  ;;  %v6168_v20 = vld [vmem:[#allocation6 + $0x70] sm:$0xff]  }
 0x3b6   :  { %3702 = vmatprep.subr.bf16.mxu1 %v6086_v31  ;;  %v6170_v31 = vld [vmem:[#allocation6 + $0x30] sm:$0xff]  }
 0x3b8   :  { %3503 = vmatmul.mubr.bf16.gmra.mrb[36].mxu1 %v7648_v13 }
 0x3b9   :  { %5018 = vmatprep.mubr.msk.bf16.mxu1 %vm2691_vm2, %v7748_v7  ;;  %3703 = vmatpush1.bf16.msra.mxu1 %v6084_v4  ;;  %v6173_v4 = vld [vmem:[#allocation6 + $0x38] sm:$0xff]  }
 0x3ba   :  { %3704 = vmatprep.subr.bf16.mxu1 %v6089_v39  ;;  %v6161_v39 = vld [vmem:[#allocation6 + $0xe8] sm:$0xff]  }
 0x3bb   :  { %5254 = vmatprep.subr.bf16.mxu0 %v6161_v39 }
 0x3bd   :  { %3705 = vmatpush1.bf16.msra.mxu1 %v6087_v62  ;;  %v6169_v62 = vld [vmem:[#allocation6 + $0xf0] sm:$0xff]  }
 0x3be   :  { %3706 = vmatprep.subr.bf16.mxu1 %v6092_v30  ;;  %v6171_v30 = vld [vmem:[#allocation6 + $0xb0] sm:$0xff]  }
 0x3c0   :  { %3513 = vmatmul.mubr.bf16.gmra.mrb[40].mxu1 %v7687_v6 }
 0x3c1   :  { %3707 = vmatpush1.bf16.msra.mxu1 %v6090_v47  ;;  %5045 = vmatprep.mubr.msk.bf16.mxu1 %vm2691_vm2, %v7612_v36  ;;  %v6108_v36 = vld [vmem:[#allocation4 + $0x300] ss:$8 sps:$4 sm:$0xff]   ;;  %v6174_v47 = vld [vmem:[#allocation6 + $0xf8] sm:$0xff]  }
 0x3c2   :  { %3708 = vmatprep.subr.bf16.mxu1 %v6095_v19  ;;  %v6175_v19 = vld [vmem:[#allocation6 + $0xb8] sm:$0xff]  }
 0x3c5   :  { %3709 = vmatpush1.bf16.msra.mxu1 %v6093_v5  ;;  %v4027_v5 = vld [vmem:[%s7896_s4] sm:$0x3] }
 0x3c6   :  { %3710 = vmatprep.subr.bf16.mxu1 %v6098_v63  ;;  %v7918_v63 = vsub.s32 0, %v7223_v21 }
 0x3c9   :  { %3711 = vmatpush1.bf16.msra.mxu1 %v6096_v34  ;;  %v7792_v34 = vrot.slane %v4027_v5, %v7918_v63 }
 0x3ca   :  { %3712 = vmatprep.subr.bf16.mxu1 %v6101_v27  ;;  %v7919_v27 = vsub.s32 1, %v7223_v21 }
 0x3cd   :  { %3713 = vmatpush1.bf16.msra.mxu1 %v6099_v8  ;;  %v7796_v8 = vrot.slane %v4027_v5, %v7919_v27 }
 0x3ce   :  { %3714 = vmatprep.subr.bf16.mxu1 %v6104_v10 }
 0x3d1   :  { %3715 = vmatpush1.bf16.msra.mxu1 %v6102_v33 }
 0x3d2   :  { %3716 = vmatprep.subr.bf16.mxu1 %v6107_v15 }
 0x3d5   :  { %3717 = vmatpush1.bf16.msra.mxu1 %v6105_v17 }
 0x3d6   :  { %3938 = vmatprep.subr.bf16.mxu1 %v6110_v57 }
 0x3d8   :  { %3727 = vmatmul.mubr.bf16.vlgmr.msra.gmra.mrb[28].mxu1 %v7614_v29  ;;  %v6122_v29 = vld [vmem:[#allocation4 + $0x344] ss:$8 sps:$4 sm:$0xff]  }
 0x3d9   :  { %5046 = vmatprep.mubr.msk.bf16.mxu1 %vm2691_vm2, %v7637_v9  ;;  %3939 = vmatpush1.bf16.msra.mxu1 %v6108_v36  ;;  %v2749_v9 = vmax.f32 %v7554_v58, %v5891_v42  ;;  %v6129_v58 = vld [vmem:[#allocation4 + $0x370] ss:$8 sps:$4 sm:$0xff]   ;;  %v6132_v42 = vld [vmem:[#allocation4 + $0x380] ss:$8 sps:$4 sm:$0xff]  }
 0x3da   :  { %3940 = vmatprep.subr.bf16.mxu1 %v6113_v41 }
 0x3db   :  { %v5149_v46 = vpack.c.bf16 %v2749_v9, %v7744_v24  ;;  %v6172_v24 = vld [vmem:[#allocation6 + $0x78] sm:$0xff]  }
 0x3dd   :  { %3941 = vmatpush1.bf16.msra.mxu1 %v6111_v53 }
 0x3de   :  { %3942 = vmatprep.subr.bf16.mxu1 %v6116_v56 }
 0x3e0   :  { %3737 = vmatmul.mubr.bf16.gmra.mrb[32].mxu1 %v7639_v1  ;;  %v6123_v1 = vld [vmem:[#allocation4 + $0x350] ss:$8 sps:$4 sm:$0xff]  }
 0x3e1   :  { %5047 = vmatprep.mubr.msk.bf16.mxu1 %vm2691_vm2, %v7665_v18  ;;  %3943 = vmatpush1.bf16.msra.mxu1 %v6114_v40  ;;  %v6128_v18 = vld [vmem:[#allocation4 + $0x364] ss:$8 sps:$4 sm:$0xff]  }
 0x3e2   :  { %3944 = vmatprep.subr.bf16.mxu1 %v6119_v59 }
 0x3e5   :  { %3945 = vmatpush1.bf16.msra.mxu1 %v6117_v3 }
 0x3e6   :  { %3946 = vmatprep.subr.bf16.mxu1 %v6122_v29 }
 0x3e8   :  { %3747 = vmatmul.mubr.bf16.gmra.mrb[36].mxu1 %v7667_v0  ;;  %v6134_v0 = vld [vmem:[#allocation4 + $0x384] ss:$8 sps:$4 sm:$0xff]  }
 0x3e9   :  { %5048 = vmatprep.mubr.msk.bf16.mxu1 %vm2691_vm2, %v5149_v46  ;;  %3947 = vmatpush1.bf16.msra.mxu1 %v6120_v49 }
 0x3ea   :  { %3948 = vmatprep.subr.bf16.mxu1 %v6125_v25 }
 0x3ed   :  { %3949 = vmatpush1.bf16.msra.mxu1 %v6123_v1 }
 0x3ee   :  { %3950 = vmatprep.subr.bf16.mxu1 %v6128_v18 }
 0x3f0   :  { %3757 = vmatmul.mubr.bf16.gmra.mrb[40].mxu1 %v5148_v28  ;;  %v6141_v28 = vld [vmem:[#allocation4 + $0x3b0] ss:$8 sps:$4 sm:$0xff]  }
 0x3f1   :  { %3951 = vmatpush1.bf16.msra.mxu1 %v6126_v61  ;;  %5075 = vmatprep.mubr.msk.bf16.mxu1 %vm2691_vm2, %v7708_v26  ;;  %v2751_v26 = vmax.f32 %v7567_v45, %v5896_v48  ;;  %v6158_v45 = vld [vmem:[#allocation6 + $0x50] sm:$0xff]  }
 0x3f2   :  { %3952 = vmatprep.subr.bf16.mxu1 %v6131_v51  ;;  %v6159_v48 = vld [vmem:[#allocation6 + $0x10] sm:$0xff]  }
 0x3f3   :  { %v5151_v54 = vpack.c.bf16 %v2751_v26, %v2749_v9 }
 0x3f5   :  { %3953 = vmatpush1.bf16.msra.mxu1 %v6129_v58 }
 0x3f6   :  { %3954 = vmatprep.subr.bf16.mxu1 %v6134_v0 }
 0x3f9   :  { %3955 = vmatpush1.bf16.msra.mxu1 %v6132_v42 }
 0x3fa   :  { %3956 = vmatprep.subr.bf16.mxu1 %v6137_v2 }
 0x3fd   :  { %3957 = vmatpush1.bf16.msra.mxu1 %v6135_v35 }
 0x3fe   :  { %3958 = vmatprep.subr.bf16.mxu1 %v6140_v55 }
 0x401   :  { %3959 = vmatpush1.bf16.msra.mxu1 %v6138_v23 }
 0x402   :  { %3960 = vmatprep.subr.bf16.mxu1 %v6143_v11 }
 0x405   :  { %3961 = vmatpush1.bf16.msra.mxu1 %v6141_v28 }
 0x408   :  { %3971 = vmatmul.mubr.bf16.vlgmr.msra.gmra.mrb[28].mxu1 %v7623_v43  ;;  %v6152_v43 = vld [vmem:[#allocation6 + $0x40] sm:$0xff]  }
 0x409   :  { %5076 = vmatprep.mubr.msk.bf16.mxu1 %vm2691_vm2, %v7726_v38  ;;  %v6154_v38 = vld [vmem:[#allocation6] sm:$0xff]   ;;  %5222 = vmatprep.subr.bf16.mxu1 %v6152_v43 }
 0x40a   :  { %5223 = vmatpush3.bf16.msra.mxu1 %v6154_v38 }
 0x410   :  { %3981 = vmatmul.mubr.bf16.gmra.mrb[32].mxu1 %v7648_v13  ;;  %v6156_v13 = vld [vmem:[#allocation6 + $0x48] sm:$0xff]  }
 0x411   :  { %5077 = vmatprep.mubr.msk.bf16.mxu1 %vm2691_vm2, %v7748_v7  ;;  %5224 = vmatprep.subr.bf16.mxu1 %v6156_v13  ;;  %v6163_v7 = vld [vmem:[#allocation6 + $0xa8] sm:$0xff]  }
 0x412   :  { %5225 = vmatpush3.bf16.msra.mxu1 %v6157_v32  ;;  %5255 = vmatpush3.bf16.msra.mxu0 %v6163_v7 }
 0x413   :  { %5226 = vmatprep.subr.bf16.mxu1 %v6158_v45  ;;  %5256 = vmatprep.subr.bf16.mxu0 %v6169_v62 }
 0x416   :  { %5227 = vmatpush3.bf16.msra.mxu1 %v6159_v48  ;;  %5257 = vmatpush3.bf16.msra.mxu0 %v6171_v30 }
 0x417   :  { %5258 = vmatprep.subr.bf16.mxu0 %v6174_v47 }
 0x418   :  { %3991 = vmatmul.mubr.bf16.gmra.mrb[36].mxu1 %v7687_v6  ;;  %v6160_v6 = vld [vmem:[#allocation6 + $0x58] sm:$0xff]  }
 0x419   :  { %5078 = vmatprep.mubr.msk.bf16.mxu1 %vm2691_vm2, %v5151_v54  ;;  %5228 = vmatprep.subr.bf16.mxu1 %v6160_v6 }
 0x41a   :  { %5229 = vmatpush3.bf16.msra.mxu1 %v6162_v50  ;;  %5259 = vmatpush3.bf16.msra.mxu0 %v6175_v19 }
 0x41b   :  { %5230 = vmatprep.subr.bf16.mxu1 %v6164_v44 }
 0x41e   :  { %5231 = vmatpush3.bf16.msra.mxu1 %v6165_v22 }
 0x420   :  { %4001 = vmatmul.mubr.bf16.gmra.mrb[40].mxu1 %v5150_v52  ;;  %v6166_v52 = vld [vmem:[#allocation6 + $0x68] sm:$0xff]  }
 0x421   :  { %5232 = vmatprep.subr.bf16.mxu1 %v6166_v52 }
 0x422   :  { %5233 = vmatpush3.bf16.msra.mxu1 %v6167_v16 }
 0x423   :  { %5234 = vmatprep.subr.bf16.mxu1 %v6168_v20 }
 0x426   :  { %5235 = vmatpush3.bf16.msra.mxu1 %v6170_v31 }
 0x427   :  { %5236 = vmatprep.subr.bf16.mxu1 %v6172_v24 }
 0x42a   :  { %5237 = vmatpush3.bf16.msra.mxu1 %v6173_v4 }
 0x4db   :  { %v3972_v10 = vpop.f32.mrb[28].mxu1 }
 0x4dc   :  { %v4039_v33 = vadd.f32 %v7792_v34, %v3972_v10  ;;  %v3974_v15 = vpop.f32.mrb[29].mxu1 }
 0x4dd   :  { %v4040_v17 = vadd.f32 %v7796_v8, %v3974_v15  ;;  %v3976_v57 = vpop.f32.mrb[30].mxu1 }
 0x4de   :  { %v4055_v36 = vsub.f32 0.0, %v4039_v33  ;;  %v4041_v41 = vadd.f32 %v7792_v34, %v3976_v57  ;;  %v3978_v53 = vpop.f32.mrb[31].mxu1 }
 0x4df   :  { %v4056_v56 = vsub.f32 0.0, %v4040_v17  ;;  %v4042_v40 = vadd.f32 %v7796_v8, %v3978_v53 }
 0x4e0   :  { %v4071_v59 = vmul.f32 1.442695, %v4055_v36  ;;  %v4057_v3 = vsub.f32 0.0, %v4041_v41 }
 0x4e1   :  { %v4073_v29 = vmul.f32 1.442695, %v4056_v56  ;;  %v4058_v21 = vsub.f32 0.0, %v4042_v40 }
 0x4e2   :  { %6480 = vpow2.f32 %v4071_v59  ;;  %v4075_v9 = vmul.f32 1.442695, %v4057_v3 }
 0x4e3   :  { %6482 = vpow2.f32 %v4073_v29  ;;  %v4077_v49 = vmul.f32 1.442695, %v4058_v21  ;;  %v3982_v25 = vpop.f32.mrb[32].mxu1 }
 0x4e4   :  { %6484 = vpow2.f32 %v4075_v9  ;;  %v4043_v46 = vadd.f32 %v7792_v34, %v3982_v25  ;;  %v3984_v1 = vpop.f32.mrb[33].mxu1 }
 0x4e5   :  { %6486 = vpow2.f32 %v4077_v49  ;;  %v4044_v18 = vadd.f32 %v7796_v8, %v3984_v1  ;;  %v3986_v61 = vpop.f32.mrb[34].mxu1 }
 0x4e6   :  { %v4059_v51 = vsub.f32 0.0, %v4043_v46  ;;  %v4045_v58 = vadd.f32 %v7792_v34, %v3986_v61  ;;  %v3988_v0 = vpop.f32.mrb[35].mxu1 }
 0x4e7   :  { %v4060_v42 = vsub.f32 0.0, %v4044_v18  ;;  %v4046_v2 = vadd.f32 %v7796_v8, %v3988_v0 }
 0x4e8   :  { %v4079_v35 = vmul.f32 1.442695, %v4059_v51  ;;  %v4061_v55 = vsub.f32 0.0, %v4045_v58 }
 0x4e9   :  { %v4081_v23 = vmul.f32 1.442695, %v4060_v42  ;;  %v4062_v11 = vsub.f32 0.0, %v4046_v2 }
 0x4ea   :  { %6488 = vpow2.f32 %v4079_v35  ;;  %v4083_v28 = vmul.f32 1.442695, %v4061_v55 }
 0x4eb   :  { %6490 = vpow2.f32 %v4081_v23  ;;  %v4085_v26 = vmul.f32 1.442695, %v4062_v11  ;;  %v3992_v54 = vpop.f32.mrb[36].mxu1 }
 0x4ec   :  { %v6481_v43 = vpop.eup %6480  ;;  %6492 = vpow2.f32 %v4083_v28  ;;  %v4047_v38 = vadd.f32 %v7792_v34, %v3992_v54  ;;  %v3994_v13 = vpop.f32.mrb[37].mxu1 }
 0x4ed   :  { %v6483_v32 = vpop.eup %6482  ;;  %v4103_v12 = vadd.f32 1.0, %v6481_v43  ;;  %6494 = vpow2.f32 %v4085_v26  ;;  %v4048_v14 = vadd.f32 %v7796_v8, %v3994_v13  ;;  %v3996_v45 = vpop.f32.mrb[38].mxu1 }
 0x4ee   :  { %v6485_v48 = vpop.eup %6484  ;;  %v4104_v6 = vadd.f32 1.0, %v6483_v32  ;;  %v4063_v50 = vsub.f32 0.0, %v4047_v38  ;;  %v4049_v44 = vadd.f32 %v7792_v34, %v3996_v45  ;;  %v3998_v22 = vpop.f32.mrb[39].mxu1 }
 0x4ef   :  { %v6487_v52 = vpop.eup %6486  ;;  %6496 = vrcp.f32 %v4103_v12  ;;  %v4105_v16 = vadd.f32 1.0, %v6485_v48  ;;  %v4064_v60 = vsub.f32 0.0, %v4048_v14  ;;  %v4050_v37 = vadd.f32 %v7796_v8, %v3998_v22 }
 0x4f0   :  { %6498 = vrcp.f32 %v4104_v6  ;;  %v4106_v20 = vadd.f32 1.0, %v6487_v52  ;;  %v4087_v31 = vmul.f32 1.442695, %v4063_v50  ;;  %v4065_v24 = vsub.f32 0.0, %v4049_v44 }
 0x4f1   :  { %6500 = vrcp.f32 %v4105_v16  ;;  %v4089_v4 = vmul.f32 1.442695, %v4064_v60  ;;  %v4066_v39 = vsub.f32 0.0, %v4050_v37 }
 0x4f2   :  { %6502 = vrcp.f32 %v4106_v20  ;;  %v4091_v7 = vmul.f32 1.442695, %v4065_v24 }
 0x4f3   :  { %6504 = vpow2.f32 %v4087_v31  ;;  %v4093_v62 = vmul.f32 1.442695, %v4066_v39  ;;  %v4002_v30 = vpop.f32.mrb[40].mxu1 }
 0x4f4   :  { %v6489_v47 = vpop.eup %6488  ;;  %6506 = vpow2.f32 %v4089_v4  ;;  %v4051_v19 = vadd.f32 %v7792_v34, %v4002_v30  ;;  %v4004_v5 = vpop.f32.mrb[41].mxu1 }
 0x4f5   :  { %v6491_v63 = vpop.eup %6490  ;;  %v4107_v27 = vadd.f32 1.0, %v6489_v47  ;;  %6508 = vpow2.f32 %v4091_v7  ;;  %v4052_v10 = vadd.f32 %v7796_v8, %v4004_v5  ;;  %v4006_v33 = vpop.f32.mrb[42].mxu1 }
 0x4f6   :  { %v6493_v15 = vpop.eup %6492  ;;  %v4108_v17 = vadd.f32 1.0, %v6491_v63  ;;  %6510 = vpow2.f32 %v4093_v62  ;;  %v4067_v57 = vsub.f32 0.0, %v4051_v19  ;;  %v4053_v36 = vadd.f32 %v7792_v34, %v4006_v33  ;;  %v4008_v41 = vpop.f32.mrb[43].mxu1 }
 0x4f7   :  { %v6495_v53 = vpop.eup %6494  ;;  %6512 = vrcp.f32 %v4107_v27  ;;  %v4109_v56 = vadd.f32 1.0, %v6493_v15  ;;  %v4068_v40 = vsub.f32 0.0, %v4052_v10  ;;  %v4054_v59 = vadd.f32 %v7796_v8, %v4008_v41  ;;  %v6176_v15 = vld [vmem:[%s7899_s7] sm:$0xff]   ;;  %v6179_v41 = vld [vmem:[%s7899_s7 + $0x18] sm:$0xff]  }
 0x4f8   :  { %6514 = vrcp.f32 %v4108_v17  ;;  %v4110_v3 = vadd.f32 1.0, %v6495_v53  ;;  %v4095_v29 = vmul.f32 1.442695, %v4067_v57  ;;  %v4069_v21 = vsub.f32 0.0, %v4053_v36  ;;  %v6177_v57 = vld [vmem:[%s7899_s7 + $0x8] sm:$0xff]   ;;  %v6178_v36 = vld [vmem:[%s7899_s7 + $0x10] sm:$0xff]  }
 0x4f9   :  { %v6497_v9 = vpop.eup %6496  ;;  %6516 = vrcp.f32 %v4109_v56  ;;  %v4097_v49 = vmul.f32 1.442695, %v4068_v40  ;;  %v4070_v25 = vsub.f32 0.0, %v4054_v59  ;;  %v6632_v17 = vmov 0.0   ;;  %v6180_v53 = vld [vmem:[%s7899_s7 + $0x20] sm:$0xff]   ;;  %v6181_v56 = vld [vmem:[%s7899_s7 + $0x28] sm:$0xff]  }
 0x4fa   :  { %v6499_v46 = vpop.eup %6498  ;;  %6518 = vrcp.f32 %v4110_v3  ;;  %v4099_v1 = vmul.f32 1.442695, %v4069_v21  ;;  %5424 = vmatprep.subr.bf16.mxu1 %v6632_v17  ;;  %5444 = vmatprep.subr.bf16.mxu0 %v6632_v17  ;;  %v6182_v40 = vld [vmem:[%s7899_s7 + $0x30] sm:$0xff]   ;;  %v6183_v59 = vld [vmem:[%s7899_s7 + $0x38] sm:$0xff]  }
 0x4fb   :  { %v6501_v18 = vpop.eup %6500  ;;  %6520 = vpow2.f32 %v4095_v29  ;;  %v4101_v34 = vmul.f32 1.442695, %v4070_v25  ;;  %v5079_v25 = vld [vmem:[%s7898_s6] ss:$0 sm:$0xff] }
 0x4fc   :  { %v6503_v61 = vpop.eup %6502  ;;  %6522 = vpow2.f32 %v4097_v49  ;;  %v4135_v51 = vmax.f32 %v6497_v9, %v6501_v18 }
 0x4fd   :  { %v6505_v58 = vpop.eup %6504  ;;  %6524 = vpow2.f32 %v4099_v1  ;;  %v4136_v8 = vmax.f32 %v6499_v46, %v6503_v61 }
 0x4fe   :  { %v6507_v0 = vpop.eup %6506  ;;  %v4111_v42 = vadd.f32 1.0, %v6505_v58  ;;  %6526 = vpow2.f32 %v4101_v34 }
 0x4ff   :  { %v6509_v2 = vpop.eup %6508  ;;  %v4112_v35 = vadd.f32 1.0, %v6507_v0  ;;  %v4143_v55 = vmax.f32 %v4135_v51, %v4136_v8 }
 0x500   :  { %v6511_v23 = vpop.eup %6510  ;;  %6528 = vrcp.f32 %v4111_v42  ;;  %v4113_v11 = vadd.f32 1.0, %v6509_v2 }
 0x501   :  { %v6513_v28 = vpop.eup %6512  ;;  %6530 = vrcp.f32 %v4112_v35  ;;  %v4114_v26 = vadd.f32 1.0, %v6511_v23  ;;  %v4147_v37 = vpack.c.bf16 %v4143_v55, %v4143_v55  ;;  %v6184_v23 = vld [vmem:[%s7901_s9] sm:$0xff]  }
 0x502   :  { %v6515_v54 = vpop.eup %6514  ;;  %6532 = vrcp.f32 %v4113_v11  ;;  %v6185_v11 = vld [vmem:[%s7901_s9 + $0x8] sm:$0xff]  }
 0x503   :  { %v6517_v43 = vpop.eup %6516  ;;  %6534 = vrcp.f32 %v4114_v26  ;;  %v6187_v26 = vld [vmem:[%s7901_s9 + $0x18] sm:$0xff]  }
 0x504   :  { %v6519_v38 = vpop.eup %6518  ;;  %v4137_v13 = vmax.f32 %v6513_v28, %v6517_v43  ;;  %v6186_v28 = vld [vmem:[%s7901_s9 + $0x10] sm:$0xff]   ;;  %v6189_v43 = vld [vmem:[%s7901_s9 + $0x28] sm:$0xff]  }
 0x505   :  { %v6521_v32 = vpop.eup %6520  ;;  %v4138_v12 = vmax.f32 %v6515_v54, %v6519_v38  ;;  %v6188_v54 = vld [vmem:[%s7901_s9 + $0x20] sm:$0xff]   ;;  %v6190_v38 = vld [vmem:[%s7901_s9 + $0x30] sm:$0xff]  }
 0x506   :  { %v6523_v14 = vpop.eup %6522  ;;  %v4115_v45 = vadd.f32 1.0, %v6521_v32  ;;  %v5112_v32 = vld [vmem:[%s7900_s8] ss:$0 sm:$0xff] }
 0x507   :  { %v6525_v48 = vpop.eup %6524  ;;  %v4116_v6 = vadd.f32 1.0, %v6523_v14  ;;  %v4144_v50 = vmax.f32 %v4137_v13, %v4138_v12  ;;  %v6191_v13 = vld [vmem:[%s7901_s9 + $0x38] sm:$0xff]  }
 0x508   :  { %v6527_v44 = vpop.eup %6526  ;;  %6536 = vrcp.f32 %v4115_v45  ;;  %v4117_v22 = vadd.f32 1.0, %v6525_v48 }
 0x509   :  { %6538 = vrcp.f32 %v4116_v6  ;;  %v4118_v52 = vadd.f32 1.0, %v6527_v44  ;;  %v4148_v16 = vpack.c.bf16 %v4144_v50, %v4144_v50 }
 0x50a   :  { %v6529_v60 = vpop.eup %6528  ;;  %6540 = vrcp.f32 %v4117_v22 }
 0x50b   :  { %v6531_v20 = vpop.eup %6530  ;;  %6542 = vrcp.f32 %v4118_v52  ;;  %4446 = vmatprep.mubr.bf16.mxu1 %v4148_v16 }
 0x50c   :  { %v6533_v31 = vpop.eup %6532  ;;  %4447 = vmatmul.mubr.bf16.vlgmr.msra.gmra.mrb[44].mxu1 %v4147_v37  ;;  %v5121_v37 = vld [vmem:[%s7902_s10] ss:$0 sm:$0xff] }
 0x50d   :  { %v6535_v24 = vpop.eup %6534  ;;  %v4139_v4 = vmax.f32 %v6529_v60, %v6533_v31  ;;  %5425 = vmatpush3.bf16.msra.mxu1 %v6176_v15  ;;  %5440 = vmatprep.mubr.msk.bf16.mxu1 %vm6633_vm3, %v6632_v17 }
 0x50e   :  { %v4140_v39 = vmax.f32 %v6531_v20, %v6535_v24  ;;  %5426 = vmatprep.subr.bf16.mxu1 %v6632_v17 }
 0x510   :  { %v4145_v7 = vmax.f32 %v4139_v4, %v4140_v39 }
 0x511   :  { %5427 = vmatpush3.bf16.msra.mxu1 %v6177_v57 }
 0x512   :  { %v6537_v62 = vpop.eup %6536  ;;  %v4149_v33 = vpack.c.bf16 %v4145_v7, %v4145_v7  ;;  %5428 = vmatprep.subr.bf16.mxu1 %v6632_v17 }
 0x513   :  { %v6539_v30 = vpop.eup %6538 }
 0x514   :  { %v6541_v47 = vpop.eup %6540 }
 0x515   :  { %v6543_v19 = vpop.eup %6542  ;;  %v4141_v5 = vmax.f32 %v6537_v62, %v6541_v47  ;;  %5429 = vmatpush3.bf16.msra.mxu1 %v6178_v36 }
 0x516   :  { %v4142_v63 = vmax.f32 %v6539_v30, %v6543_v19  ;;  %5430 = vmatprep.subr.bf16.mxu1 %v6632_v17 }
 0x518   :  { %v4146_v27 = vmax.f32 %v4141_v5, %v4142_v63 }
 0x519   :  { %5431 = vmatpush3.bf16.msra.mxu1 %v6179_v41 }
 0x51a   :  { %v4150_v10 = vpack.c.bf16 %v4146_v27, %v4146_v27  ;;  %5432 = vmatprep.subr.bf16.mxu1 %v6632_v17 }
 0x51c   :  { %4486 = vmatprep.mubr.bf16.mxu0 %v4150_v10 }
 0x51d   :  { %4487 = vmatmul.mubr.bf16.vlgmr.msra.gmra.mrb[48].mxu0 %v4149_v33  ;;  %5433 = vmatpush3.bf16.msra.mxu1 %v6180_v53 }
 0x51e   :  { %5434 = vmatprep.subr.bf16.mxu1 %v6632_v17  ;;  %5460 = vmatprep.mubr.msk.bf16.mxu0 %vm6633_vm3, %v6632_v17 }
 0x51f   :  { %5445 = vmatpush3.bf16.msra.mxu0 %v6184_v23 }
 0x520   :  { %5446 = vmatprep.subr.bf16.mxu0 %v6632_v17 }
 0x521   :  { %5435 = vmatpush3.bf16.msra.mxu1 %v6181_v56 }
 0x522   :  { %5436 = vmatprep.subr.bf16.mxu1 %v6632_v17 }
 0x523   :  { %5447 = vmatpush3.bf16.msra.mxu0 %v6185_v11 }
 0x524   :  { %5448 = vmatprep.subr.bf16.mxu0 %v6632_v17 }
 0x525   :  { %5437 = vmatpush3.bf16.msra.mxu1 %v6182_v40 }
 0x526   :  { %5438 = vmatprep.subr.bf16.mxu1 %v6632_v17 }
 0x527   :  { %5449 = vmatpush3.bf16.msra.mxu0 %v6186_v28 }
 0x528   :  { %5450 = vmatprep.subr.bf16.mxu0 %v6632_v17 }
 0x529   :  { %5439 = vmatpush3.bf16.msra.mxu1 %v6183_v59 }
 0x52b   :  { %5451 = vmatpush3.bf16.msra.mxu0 %v6187_v26 }
 0x52c   :  { %5452 = vmatprep.subr.bf16.mxu0 %v6632_v17 }
 0x52f   :  { %5453 = vmatpush3.bf16.msra.mxu0 %v6188_v54 }
 0x530   :  { %5454 = vmatprep.subr.bf16.mxu0 %v6632_v17 }
 0x533   :  { %5455 = vmatpush3.bf16.msra.mxu0 %v6189_v43 }
 0x534   :  { %5456 = vmatprep.subr.bf16.mxu0 %v6632_v17 }
 0x537   :  { %5457 = vmatpush3.bf16.msra.mxu0 %v6190_v38 }
 0x538   :  { %5458 = vmatprep.subr.bf16.mxu0 %v6632_v17 }
 0x53b   :  { %5459 = vmatpush3.bf16.msra.mxu0 %v6191_v13 }
 0x5df   :  { %v5238_v3 = vpop.f32.mrb[44].mxu1 }
 0x5e0   :  { %v5239_v29 = vpop.f32.mrb[45].mxu1 }
 0x5e1   :  { %v5240_v21 = vadd.f32 %v5239_v29, %v5238_v3  ;;  %v5241_v9 = vpop.f32.mrb[46].mxu1 }
 0x5e2   :  { %v5242_v49 = vpop.f32.mrb[47].mxu1 }
 0x5e3   :  { %v4449_v18 = vadd.f32 %v5240_v21, %v5079_v25 }
 0x5f0   :  { %v5260_v46 = vpop.f32.mrb[48].mxu0 }
 0x5f1   :  { %v5261_v1 = vpop.f32.mrb[49].mxu0 }
 0x5f2   :  { %v5262_v34 = vadd.f32 %v5261_v1, %v5260_v46  ;;  %v5263_v61 = vpop.f32.mrb[50].mxu0 }
 0x5f3   :  { %v5264_v51 = vpop.f32.mrb[51].mxu0 }
 0x5f4   :  { %v4489_v58 = vadd.f32 %v5262_v34, %v4449_v18 }
 0x5f6   :  { %v4494_v8 = vsub.f32 0.0, %v4489_v58 }
 0x5f8   :  { %v4495_v0 = vmul.f32 1.442695, %v4494_v8 }
 0x5fa   :  { %6544 = vpow2.f32 %v4495_v0 }
 0x604   :  { %v6545_v42 = vpop.eup %6544 }
 0x605   :  { %v4497_v2 = vadd.f32 1.0, %v6545_v42 }
 0x607   :  { %6546 = vrcp.f32 %v4497_v2 }
 0x611   :  { %v6547_v35 = vpop.eup %6546 }
 0x612   :  { %v4499_v55 = vpack.c.bf16 %v6547_v35, %v6547_v35 }
 0x614   :  { %5441 = vmatmul.mubr.bf16.vlgmr.msra.gmra.mrb[48].mxu1 %v4499_v55 }
 0x6e7   :  { %v4605_v12 = vpop.f32.mrb[48].mxu1 }
 0x6e8   :  { %v4606_v14 = vadd.f32 %v5112_v32, %v4605_v12  ;;  %v5442_v45 = vpop.f32.mrb[49].mxu1 }
 0x6e9   :  { %v4608_v48 = vpop.f32.mrb[50].mxu1 }
 0x6ea   :  { %v4611_v6 = vsub.f32 0.0, %v4606_v14  ;;  %v5443_v50 = vpop.f32.mrb[51].mxu1 }
 0x6ec   :  { %v4612_v44 = vmul.f32 1.442695, %v4611_v6 }
 0x6ee   :  { %6548 = vpow2.f32 %v4612_v44 }
 0x6f8   :  { %v6549_v22 = vpop.eup %6548 }
 0x6f9   :  { %v4614_v52 = vadd.f32 1.0, %v6549_v22 }
 0x6fb   :  { %6550 = vrcp.f32 %v4614_v52 }
 0x705   :  { %v6551_v16 = vpop.eup %6550 }
 0x706   :  { %v4616_v60 = vpack.c.bf16 %v6551_v16, %v6551_v16 }
 0x708   :  { %5461 = vmatmul.mubr.bf16.vlgmr.msra.gmra.mrb[52].mxu0 %v4616_v60 }
 0x7db   :  { %v4722_v20 = vpop.f32.mrb[52].mxu0 }
 0x7dc   :  { %v4723_v31 = vadd.f32 %v5121_v37, %v4722_v20  ;;  %v5462_v24 = vpop.f32.mrb[53].mxu0 }
 0x7dd   :  { %v4725_v4 = vpop.f32.mrb[54].mxu0 }
 0x7de   :  { %4728 = vst [vmem:[%s7903_s11] sm:$0xff] %v4723_v31  ;;  %v5463_v39 = vpop.f32.mrb[55].mxu0 }
 0x7df   :  { %4733 = vsyncpa [#allocation3], 1 }
 0x7e0   :  { %4734 = vsyncpa [#allocation5], 1 }

</bundles_post_ra>
